<compile_context>
chip_gen: v6e
topology: v6e:2x2x1
jax: 0.10.0
libtpu: 0.0.40
codegen_flags: <defaults>
</compile_context>

<pallas_src>
import numpy as np
import jax
import jax.numpy as jnp
from jax import lax
from jax.experimental import pallas as pl
from jax.experimental.pallas import tpu as pltpu  # noqa: F401  (TPU backend)

# ----------------------------- model hyper-params (small, deterministic) ------
N, CIN, H, W = 2, 3, 32, 32            # input images, NCHW
PATCH = 4                              # synthetic backbone downsample factor
HF, WF = H // PATCH, W // PATCH        # backbone feature map: 8 x 8
HWF = HF * WF                          # 64 coarse pixels per image
M = N * HWF                            # 128 rows (batch folded into rows)
F = 32                                 # backbone out_features (stand-in for 512)
NC = 16                                # ASPP num_channels (stand-in for 256)
RATES = [12, 24, 36]                   # atrous rates (as in the module)
NUM_CLASSES = 5
BN_EPS = 1e-5


# ----------------------------- host-side constant matrices --------------------
def _bilinear_matrix_np(out_size, in_size):
    """Row-stochastic interpolation matrix matching F.interpolate(align_corners=False)."""
    scale = in_size / out_size
    A = np.zeros((out_size, in_size), np.float32)
    for o in range(out_size):
        src = max((o + 0.5) * scale - 0.5, 0.0)
        i0 = min(int(np.floor(src)), in_size - 1)
        i1 = min(i0 + 1, in_size - 1)
        frac = src - i0
        A[o, i0] += 1.0 - frac
        A[o, i1] += frac
    return A


def _shift_matrices_np(hs, ws):
    """S[t] maps flattened pixel q=(i+di, j+dj) -> p=(i,j) for tap t=(di+1)*3+(dj+1)."""
    S = np.zeros((9, hs * ws, hs * ws), np.float32)
    for di in (-1, 0, 1):
        for dj in (-1, 0, 1):
            t = (di + 1) * 3 + (dj + 1)
            for i in range(hs):
                for j in range(ws):
                    si, sj = i + di, j + dj
                    if 0 <= si < hs and 0 <= sj < ws:
                        S[t, i * ws + j, si * ws + sj] = 1.0
    return S


_S_TAPS = jnp.asarray(_shift_matrices_np(HF, WF))                       # (9, 64, 64)
_KRON_T = jnp.asarray(
    np.kron(_bilinear_matrix_np(H, HF), _bilinear_matrix_np(W, WF)).T)  # (64, 1024)

_row_img = np.repeat(np.arange(N), HWF)
_POOL_P = jnp.asarray(                                                  # (N, M): per-image mean
    (_row_img[None, :] == np.arange(N)[:, None]).astype(np.float32) / HWF)
_POOL_B = jnp.asarray(                                                  # (M, N): broadcast back
    (_row_img[:, None] == np.arange(N)[None, :]).astype(np.float32))


# ----------------------------- the fused Pallas kernel -------------------------
def _fused_deeplab_kernel(patches_ref, bb_w_ref, bb_sh_ref,
                          br_w_ref, br_sh_ref,
                          pool_p_ref, pool_bc_ref, pool_w_ref, pool_sh_ref,
                          head_w_ref, head_sh_ref,
                          s_ref, w1_ref, h1_sh_ref,
                          w2_ref, b2_ref, kront_ref,
                          o_ref):
    f32 = jnp.float32

    # --- backbone: 4x4/stride-4 patch-embed conv (as matmul) + folded BN + ReLU ---
    feat = jnp.maximum(
        jnp.dot(patches_ref[...], bb_w_ref[...], preferred_element_type=f32)
        + bb_sh_ref[...], 0.0)                                           # (M, F)

    # --- ASPP ---
    # Branch k in {0..3}: 1x1 conv (k=0) and three dilated 3x3 convs. Since every
    # rate >= HF, the non-center taps read only zero padding, so each dilated
    # branch is exactly its center-tap 1x1 conv.  Each branch multiplies directly
    # into its row-block of the (BN-folded) ASPP-head weight -> no concat buffer.
    acc = jnp.zeros((M, F), f32)
    for k in range(4):
        bk = jnp.maximum(
            jnp.dot(feat, br_w_ref[k], preferred_element_type=f32) + br_sh_ref[k],
            0.0)                                                         # (M, NC)
        acc = acc + jnp.dot(bk, head_w_ref[k], preferred_element_type=f32)

    # Image-pooling branch: per-image global mean -> 1x1 conv + BN + ReLU ->
    # broadcast back over that image's pixels (bilinear from 1x1 == broadcast).
    pm = jnp.dot(pool_p_ref[...], feat, preferred_element_type=f32)      # (N, F)
    pb = jnp.maximum(
        jnp.dot(pm, pool_w_ref[...], preferred_element_type=f32) + pool_sh_ref[...],
        0.0)                                                             # (N, NC)
    b_pool = jnp.dot(pool_bc_ref[...], pb, preferred_element_type=f32)   # (M, NC)
    acc = acc + jnp.dot(b_pool, head_w_ref[4], preferred_element_type=f32)

    # ASPP head 1x1 conv (accumulated block-wise above) + BN + ReLU.
    # nn.Dropout(p=0.5) is identity in eval mode.
    aspp_out = jnp.maximum(acc + head_sh_ref[...], 0.0)                  # (M, F)

    # --- DeepLabHead + bilinear upsample, per image (rows are 64-aligned) ---
    for n in range(N):
        a_n = aspp_out[n * HWF:(n + 1) * HWF, :]                         # (64, F)
        # 3x3 same-padding conv as 9 shift-matrix taps (all MXU; tap 4 is identity).
        h_n = jnp.dot(a_n, w1_ref[4], preferred_element_type=f32)
        for t in range(9):
            if t == 4:
                continue
            h_n = h_n + jnp.dot(
                jnp.dot(s_ref[t], a_n, preferred_element_type=f32),
                w1_ref[t], preferred_element_type=f32)
        h_n = jnp.maximum(h_n + h1_sh_ref[...], 0.0)                     # (64, F)

        # final 1x1 conv with bias
        l_n = jnp.dot(h_n, w2_ref[...], preferred_element_type=f32) + b2_ref[...]  # (64, C)

        # bilinear upsample: (C, H*W) = l_n^T @ kron(Ah, Aw)^T  (lane-dense: 1024 lanes)
        o_ref[n] = lax.dot_general(
            l_n, kront_ref[...],
            dimension_numbers=(((0,), (0,)), ((), ())),
            preferred_element_type=f32)


# ----------------------------- glue helpers ------------------------------------
def fold_bn(bn, eps=BN_EPS):
    gamma, beta, mean, var = bn
    scale = gamma / jnp.sqrt(var + eps)
    shift = beta - mean * scale
    return scale, shift


def init_params(key):
    ks = jax.random.split(key, 32)

    def conv(k, *shape):
        return 0.1 * jax.random.normal(k, shape, jnp.float32)

    def bn(k, c):
        k1, k2, k3, k4 = jax.random.split(k, 4)
        return (1.0 + 0.1 * jax.random.normal(k1, (c,), jnp.float32),
                0.1 * jax.random.normal(k2, (c,), jnp.float32),
                0.1 * jax.random.normal(k3, (c,), jnp.float32),
                0.5 + 0.5 * jax.random.uniform(k4, (c,), jnp.float32))

    p = {}
    # TODO(synk): pretrained torchvision backbone (resnet18 / vgg11_bn / mobilenet_v3_small)
    # replaced by a synthetic 4x4 stride-4 patch-embed Conv+BN+ReLU with random weights.
    p['bb_w'] = conv(ks[0], PATCH * PATCH * CIN, F)
    p['bb_bn'] = bn(ks[1], F)
    p['aspp0_w'] = conv(ks[2], F, NC)
    p['aspp0_bn'] = bn(ks[3], NC)
    for i in range(len(RATES)):
        p[f'aspp{i + 1}_w'] = conv(ks[4 + 2 * i], 3, 3, F, NC)
        p[f'aspp{i + 1}_bn'] = bn(ks[5 + 2 * i], NC)
    p['aspp_pool_w'] = conv(ks[10], F, NC)
    p['aspp_pool_bn'] = bn(ks[11], NC)
    p['aspp_head_w'] = conv(ks[12], (2 + len(RATES)) * NC, F)
    p['aspp_head_bn'] = bn(ks[13], F)
    p['head_w1'] = conv(ks[14], 3, 3, F, F)
    p['head_bn'] = bn(ks[15], F)
    p['head_w2'] = conv(ks[16], F, NUM_CLASSES)
    p['head_b2'] = 0.1 * jax.random.normal(ks[17], (NUM_CLASSES,), jnp.float32)
    return p


# ----------------------------- DeepLab forward (one fused Pallas call) ---------
@jax.jit
def deeplab_forward(x_nchw, p):
    x = jnp.transpose(x_nchw, (0, 2, 3, 1)).astype(jnp.float32)          # NCHW -> NHWC
    # TODO(synk): patch-embed rearrangement kept in XLA glue; folding it into the
    # kernel's loads only matters at real (non-toy) resolutions.
    patches = x.reshape(N, HF, PATCH, WF, PATCH, CIN).transpose(0, 1, 3, 2, 4, 5)
    patches = patches.reshape(M, PATCH * PATCH * CIN)                    # (128, 48)

    # ---- fold every BatchNorm scale into the preceding conv weights ----
    s_bb, sh_bb = fold_bn(p['bb_bn'])
    bb_w = p['bb_w'] * s_bb[None, :]

    br_ws, br_shs = [], []
    s0, sh0 = fold_bn(p['aspp0_bn'])
    br_ws.append(p['aspp0_w'] * s0[None, :])
    br_shs.append(sh0)
    for i in range(len(RATES)):
        s_i, sh_i = fold_bn(p[f'aspp{i + 1}_bn'])
        # rate >= HF: dilated 3x3 conv == its center tap (exact, verified vs. reference)
        br_ws.append(p[f'aspp{i + 1}_w'][1, 1] * s_i[None, :])
        br_shs.append(sh_i)
    br_w = jnp.stack(br_ws)                                              # (4, F, NC)
    br_sh = jnp.stack(br_shs)[:, None, :]                                # (4, 1, NC)

    s_pl, sh_pl = fold_bn(p['aspp_pool_bn'])
    pool_w = p['aspp_pool_w'] * s_pl[None, :]

    s_hd, sh_hd = fold_bn(p['aspp_head_bn'])
    head_w = (p['aspp_head_w'] * s_hd[None, :]).reshape(5, NC, F)        # per-branch blocks

    s_h1, sh_h1 = fold_bn(p['head_bn'])
    w1 = (p['head_w1'] * s_h1[None, None, None, :]).reshape(9, F, F)     # 9 conv taps

    out = pl.pallas_call(
        _fused_deeplab_kernel,
        out_shape=jax.ShapeDtypeStruct((N, NUM_CLASSES, H * W), jnp.float32),
    )(patches, bb_w, sh_bb.reshape(1, F),
      br_w, br_sh,
      _POOL_P, _POOL_B, pool_w, sh_pl.reshape(1, NC),
      head_w, sh_hd.reshape(1, F),
      _S_TAPS, w1, sh_h1.reshape(1, F),
      p['head_w2'], p['head_b2'].reshape(1, NUM_CLASSES),
      _KRON_T)

    return out.reshape(N, NUM_CLASSES, H, W)


# ----------------------------- pure-JAX reference (for checking) ---------------
def ref_forward(x_nchw, p):
    dn = ('NHWC', 'HWIO', 'NHWC')
    x = jnp.transpose(x_nchw, (0, 2, 3, 1)).astype(jnp.float32)
    n = x.shape[0]
    s, b = fold_bn(p['bb_bn'])
    w4 = p['bb_w'].reshape(PATCH, PATCH, CIN, F)
    feat = lax.conv_general_dilated(x, w4, (PATCH, PATCH), 'VALID', dimension_numbers=dn)
    feat = jnp.maximum(feat * s + b, 0.0)
    branches = []
    s, b = fold_bn(p['aspp0_bn'])
    branches.append(jnp.maximum((feat @ p['aspp0_w']) * s + b, 0.0))
    for i, rate in enumerate(RATES):
        s, b = fold_bn(p[f'aspp{i + 1}_bn'])
        y = lax.conv_general_dilated(feat, p[f'aspp{i + 1}_w'], (1, 1),
                                     [(rate, rate), (rate, rate)],
                                     rhs_dilation=(rate, rate), dimension_numbers=dn)
        branches.append(jnp.maximum(y * s + b, 0.0))
    s, b = fold_bn(p['aspp_pool_bn'])
    pooled = jnp.mean(feat, axis=(1, 2), keepdims=True)
    pooled = jnp.maximum((pooled @ p['aspp_pool_w']) * s + b, 0.0)
    branches.append(jnp.broadcast_to(pooled, (n, HF, WF, NC)))
    cat = jnp.concatenate(branches, axis=-1)
    s, b = fold_bn(p['aspp_head_bn'])
    aspp_out = jnp.maximum((cat @ p['aspp_head_w']) * s + b, 0.0)
    s, b = fold_bn(p['head_bn'])
    h1 = lax.conv_general_dilated(aspp_out, p['head_w1'], (1, 1),
                                  [(1, 1), (1, 1)], dimension_numbers=dn)
    h1 = jnp.maximum(h1 * s + b, 0.0)
    logits = jnp.transpose(h1 @ p['head_w2'] + p['head_b2'], (0, 3, 1, 2))
    ah = jnp.asarray(_bilinear_matrix_np(H, HF))
    aw = jnp.asarray(_bilinear_matrix_np(W, WF))
    return jnp.einsum('yi,xj,ncij->ncyx', ah, aw, logits)


# ----------------------------- main --------------------------------------------
if __name__ == "__main__":
    key = jax.random.PRNGKey(0)
    kx, kp = jax.random.split(key)
    x = jax.random.normal(kx, (N, CIN, H, W), jnp.float32)
    params = init_params(kp)

    out = jax.block_until_ready(deeplab_forward(x, params))
    assert out.shape == (N, NUM_CLASSES, H, W), out.shape
    assert bool(jnp.all(jnp.isfinite(out)))

    ref = jax.block_until_ready(ref_forward(x, params))
    np.testing.assert_allclose(np.asarray(out), np.asarray(ref), rtol=5e-2, atol=5e-2)

    print("KERNEL_OK")
</pallas_src>

<mosaic_0001>
module attributes {stable_mosaic.version = 11 : i64} {
  func.func @_fused_deeplab_kernel(%arg0: memref<128x48xf32, #tpu.memory_space<vmem>>, %arg1: memref<48x32xf32, #tpu.memory_space<vmem>>, %arg2: memref<1x32xf32, #tpu.memory_space<vmem>>, %arg3: memref<4x32x16xf32, #tpu.memory_space<vmem>>, %arg4: memref<4x1x16xf32, #tpu.memory_space<vmem>>, %arg5: memref<2x128xf32, #tpu.memory_space<vmem>>, %arg6: memref<128x2xf32, #tpu.memory_space<vmem>>, %arg7: memref<32x16xf32, #tpu.memory_space<vmem>>, %arg8: memref<1x16xf32, #tpu.memory_space<vmem>>, %arg9: memref<5x16x32xf32, #tpu.memory_space<vmem>>, %arg10: memref<1x32xf32, #tpu.memory_space<vmem>>, %arg11: memref<9x64x64xf32, #tpu.memory_space<vmem>>, %arg12: memref<9x32x32xf32, #tpu.memory_space<vmem>>, %arg13: memref<1x32xf32, #tpu.memory_space<vmem>>, %arg14: memref<32x5xf32, #tpu.memory_space<vmem>>, %arg15: memref<1x5xf32, #tpu.memory_space<vmem>>, %arg16: memref<64x1024xf32, #tpu.memory_space<vmem>>, %arg17: memref<2x5x1024xf32, #tpu.memory_space<vmem>>) attributes {dimension_semantics = [], scalar_prefetch = 0 : i64, scratch_operands = 0 : i64, tpu.core_type = #tpu.core_type<tc>} {
    %c0 = arith.constant 0 : index
    %c0_0 = arith.constant 0 : index
    %0 = vector.load %arg0[%c0, %c0_0] : memref<128x48xf32, #tpu.memory_space<vmem>>, vector<128x48xf32>
    %c0_1 = arith.constant 0 : index
    %c0_2 = arith.constant 0 : index
    %1 = vector.load %arg1[%c0_1, %c0_2] : memref<48x32xf32, #tpu.memory_space<vmem>>, vector<48x32xf32>
    %cst = arith.constant dense<0.000000e+00> : vector<128x32xf32>
    %2 = tpu.matmul %0, %1, %cst {dimension_numbers = #tpu.dot_dimension_numbers<[1], [0], [0], [1], [0, 0, 1, 1], [], []>} : vector<128x48xf32>, vector<48x32xf32>, vector<128x32xf32> -> vector<128x32xf32>
    %c0_3 = arith.constant 0 : index
    %c0_4 = arith.constant 0 : index
    %3 = vector.load %arg2[%c0_3, %c0_4] : memref<1x32xf32, #tpu.memory_space<vmem>>, vector<1x32xf32>
    %4 = vector.broadcast %3 : vector<1x32xf32> to vector<128x32xf32>
    %5 = arith.addf %2, %4 : vector<128x32xf32>
    %cst_5 = arith.constant 0.000000e+00 : f32
    %6 = vector.broadcast %cst_5 : f32 to vector<128x32xf32>
    %7 = arith.maximumf %5, %6 : vector<128x32xf32>
    %cst_6 = arith.constant 0.000000e+00 : f32
    %8 = vector.broadcast %cst_6 : f32 to vector<128x32xf32>
    %c0_7 = arith.constant 0 : index
    %c0_8 = arith.constant 0 : index
    %c0_9 = arith.constant 0 : index
    %9 = vector.load %arg3[%c0_7, %c0_8, %c0_9] : memref<4x32x16xf32, #tpu.memory_space<vmem>>, vector<1x32x16xf32>
    %10 = vector.shape_cast %9 : vector<1x32x16xf32> to vector<32x16xf32>
    %cst_10 = arith.constant dense<0.000000e+00> : vector<128x16xf32>
    %11 = tpu.matmul %7, %10, %cst_10 {dimension_numbers = #tpu.dot_dimension_numbers<[1], [0], [0], [1], [0, 0, 1, 1], [], []>} : vector<128x32xf32>, vector<32x16xf32>, vector<128x16xf32> -> vector<128x16xf32>
    %c0_11 = arith.constant 0 : index
    %c0_12 = arith.constant 0 : index
    %c0_13 = arith.constant 0 : index
    %12 = vector.load %arg4[%c0_11, %c0_12, %c0_13] : memref<4x1x16xf32, #tpu.memory_space<vmem>>, vector<1x1x16xf32>
    %13 = vector.shape_cast %12 : vector<1x1x16xf32> to vector<1x16xf32>
    %14 = vector.broadcast %13 : vector<1x16xf32> to vector<128x16xf32>
    %15 = arith.addf %11, %14 : vector<128x16xf32>
    %cst_14 = arith.constant 0.000000e+00 : f32
    %16 = vector.broadcast %cst_14 : f32 to vector<128x16xf32>
    %17 = arith.maximumf %15, %16 : vector<128x16xf32>
    %c0_15 = arith.constant 0 : index
    %c0_16 = arith.constant 0 : index
    %c0_17 = arith.constant 0 : index
    %18 = vector.load %arg9[%c0_15, %c0_16, %c0_17] : memref<5x16x32xf32, #tpu.memory_space<vmem>>, vector<1x16x32xf32>
    %19 = vector.shape_cast %18 : vector<1x16x32xf32> to vector<16x32xf32>
    %cst_18 = arith.constant dense<0.000000e+00> : vector<128x32xf32>
    %20 = tpu.matmul %17, %19, %cst_18 {dimension_numbers = #tpu.dot_dimension_numbers<[1], [0], [0], [1], [0, 0, 1, 1], [], []>} : vector<128x16xf32>, vector<16x32xf32>, vector<128x32xf32> -> vector<128x32xf32>
    %21 = arith.addf %8, %20 : vector<128x32xf32>
    %c1 = arith.constant 1 : index
    %c0_19 = arith.constant 0 : index
    %c0_20 = arith.constant 0 : index
    %22 = vector.load %arg3[%c1, %c0_19, %c0_20] : memref<4x32x16xf32, #tpu.memory_space<vmem>>, vector<1x32x16xf32>
    %23 = vector.shape_cast %22 : vector<1x32x16xf32> to vector<32x16xf32>
    %cst_21 = arith.constant dense<0.000000e+00> : vector<128x16xf32>
    %24 = tpu.matmul %7, %23, %cst_21 {dimension_numbers = #tpu.dot_dimension_numbers<[1], [0], [0], [1], [0, 0, 1, 1], [], []>} : vector<128x32xf32>, vector<32x16xf32>, vector<128x16xf32> -> vector<128x16xf32>
    %c1_22 = arith.constant 1 : index
    %c0_23 = arith.constant 0 : index
    %c0_24 = arith.constant 0 : index
    %25 = vector.load %arg4[%c1_22, %c0_23, %c0_24] : memref<4x1x16xf32, #tpu.memory_space<vmem>>, vector<1x1x16xf32>
    %26 = vector.shape_cast %25 : vector<1x1x16xf32> to vector<1x16xf32>
    %27 = vector.broadcast %26 : vector<1x16xf32> to vector<128x16xf32>
    %28 = arith.addf %24, %27 : vector<128x16xf32>
    %cst_25 = arith.constant 0.000000e+00 : f32
    %29 = vector.broadcast %cst_25 : f32 to vector<128x16xf32>
    %30 = arith.maximumf %28, %29 : vector<128x16xf32>
    %c1_26 = arith.constant 1 : index
    %c0_27 = arith.constant 0 : index
    %c0_28 = arith.constant 0 : index
    %31 = vector.load %arg9[%c1_26, %c0_27, %c0_28] : memref<5x16x32xf32, #tpu.memory_space<vmem>>, vector<1x16x32xf32>
    %32 = vector.shape_cast %31 : vector<1x16x32xf32> to vector<16x32xf32>
    %cst_29 = arith.constant dense<0.000000e+00> : vector<128x32xf32>
    %33 = tpu.matmul %30, %32, %cst_29 {dimension_numbers = #tpu.dot_dimension_numbers<[1], [0], [0], [1], [0, 0, 1, 1], [], []>} : vector<128x16xf32>, vector<16x32xf32>, vector<128x32xf32> -> vector<128x32xf32>
    %34 = arith.addf %21, %33 : vector<128x32xf32>
    %c2 = arith.constant 2 : index
    %c0_30 = arith.constant 0 : index
    %c0_31 = arith.constant 0 : index
    %35 = vector.load %arg3[%c2, %c0_30, %c0_31] : memref<4x32x16xf32, #tpu.memory_space<vmem>>, vector<1x32x16xf32>
    %36 = vector.shape_cast %35 : vector<1x32x16xf32> to vector<32x16xf32>
    %cst_32 = arith.constant dense<0.000000e+00> : vector<128x16xf32>
    %37 = tpu.matmul %7, %36, %cst_32 {dimension_numbers = #tpu.dot_dimension_numbers<[1], [0], [0], [1], [0, 0, 1, 1], [], []>} : vector<128x32xf32>, vector<32x16xf32>, vector<128x16xf32> -> vector<128x16xf32>
    %c2_33 = arith.constant 2 : index
    %c0_34 = arith.constant 0 : index
    %c0_35 = arith.constant 0 : index
    %38 = vector.load %arg4[%c2_33, %c0_34, %c0_35] : memref<4x1x16xf32, #tpu.memory_space<vmem>>, vector<1x1x16xf32>
    %39 = vector.shape_cast %38 : vector<1x1x16xf32> to vector<1x16xf32>
    %40 = vector.broadcast %39 : vector<1x16xf32> to vector<128x16xf32>
    %41 = arith.addf %37, %40 : vector<128x16xf32>
    %cst_36 = arith.constant 0.000000e+00 : f32
    %42 = vector.broadcast %cst_36 : f32 to vector<128x16xf32>
    %43 = arith.maximumf %41, %42 : vector<128x16xf32>
    %c2_37 = arith.constant 2 : index
    %c0_38 = arith.constant 0 : index
    %c0_39 = arith.constant 0 : index
    %44 = vector.load %arg9[%c2_37, %c0_38, %c0_39] : memref<5x16x32xf32, #tpu.memory_space<vmem>>, vector<1x16x32xf32>
    %45 = vector.shape_cast %44 : vector<1x16x32xf32> to vector<16x32xf32>
    %cst_40 = arith.constant dense<0.000000e+00> : vector<128x32xf32>
    %46 = tpu.matmul %43, %45, %cst_40 {dimension_numbers = #tpu.dot_dimension_numbers<[1], [0], [0], [1], [0, 0, 1, 1], [], []>} : vector<128x16xf32>, vector<16x32xf32>, vector<128x32xf32> -> vector<128x32xf32>
    %47 = arith.addf %34, %46 : vector<128x32xf32>
    %c3 = arith.constant 3 : index
    %c0_41 = arith.constant 0 : index
    %c0_42 = arith.constant 0 : index
    %48 = vector.load %arg3[%c3, %c0_41, %c0_42] : memref<4x32x16xf32, #tpu.memory_space<vmem>>, vector<1x32x16xf32>
    %49 = vector.shape_cast %48 : vector<1x32x16xf32> to vector<32x16xf32>
    %cst_43 = arith.constant dense<0.000000e+00> : vector<128x16xf32>
    %50 = tpu.matmul %7, %49, %cst_43 {dimension_numbers = #tpu.dot_dimension_numbers<[1], [0], [0], [1], [0, 0, 1, 1], [], []>} : vector<128x32xf32>, vector<32x16xf32>, vector<128x16xf32> -> vector<128x16xf32>
    %c3_44 = arith.constant 3 : index
    %c0_45 = arith.constant 0 : index
    %c0_46 = arith.constant 0 : index
    %51 = vector.load %arg4[%c3_44, %c0_45, %c0_46] : memref<4x1x16xf32, #tpu.memory_space<vmem>>, vector<1x1x16xf32>
    %52 = vector.shape_cast %51 : vector<1x1x16xf32> to vector<1x16xf32>
    %53 = vector.broadcast %52 : vector<1x16xf32> to vector<128x16xf32>
    %54 = arith.addf %50, %53 : vector<128x16xf32>
    %cst_47 = arith.constant 0.000000e+00 : f32
    %55 = vector.broadcast %cst_47 : f32 to vector<128x16xf32>
    %56 = arith.maximumf %54, %55 : vector<128x16xf32>
    %c3_48 = arith.constant 3 : index
    %c0_49 = arith.constant 0 : index
    %c0_50 = arith.constant 0 : index
    %57 = vector.load %arg9[%c3_48, %c0_49, %c0_50] : memref<5x16x32xf32, #tpu.memory_space<vmem>>, vector<1x16x32xf32>
    %58 = vector.shape_cast %57 : vector<1x16x32xf32> to vector<16x32xf32>
    %cst_51 = arith.constant dense<0.000000e+00> : vector<128x32xf32>
    %59 = tpu.matmul %56, %58, %cst_51 {dimension_numbers = #tpu.dot_dimension_numbers<[1], [0], [0], [1], [0, 0, 1, 1], [], []>} : vector<128x16xf32>, vector<16x32xf32>, vector<128x32xf32> -> vector<128x32xf32>
    %60 = arith.addf %47, %59 : vector<128x32xf32>
    %c0_52 = arith.constant 0 : index
    %c0_53 = arith.constant 0 : index
    %61 = vector.load %arg5[%c0_52, %c0_53] : memref<2x128xf32, #tpu.memory_space<vmem>>, vector<2x128xf32>
    %cst_54 = arith.constant dense<0.000000e+00> : vector<2x32xf32>
    %62 = tpu.matmul %61, %7, %cst_54 {dimension_numbers = #tpu.dot_dimension_numbers<[1], [0], [0], [1], [0, 0, 1, 1], [], []>} : vector<2x128xf32>, vector<128x32xf32>, vector<2x32xf32> -> vector<2x32xf32>
    %c0_55 = arith.constant 0 : index
    %c0_56 = arith.constant 0 : index
    %63 = vector.load %arg7[%c0_55, %c0_56] : memref<32x16xf32, #tpu.memory_space<vmem>>, vector<32x16xf32>
    %cst_57 = arith.constant dense<0.000000e+00> : vector<2x16xf32>
    %64 = tpu.matmul %62, %63, %cst_57 {dimension_numbers = #tpu.dot_dimension_numbers<[1], [0], [0], [1], [0, 0, 1, 1], [], []>} : vector<2x32xf32>, vector<32x16xf32>, vector<2x16xf32> -> vector<2x16xf32>
    %c0_58 = arith.constant 0 : index
    %c0_59 = arith.constant 0 : index
    %65 = vector.load %arg8[%c0_58, %c0_59] : memref<1x16xf32, #tpu.memory_space<vmem>>, vector<1x16xf32>
    %66 = vector.broadcast %65 : vector<1x16xf32> to vector<2x16xf32>
    %67 = arith.addf %64, %66 : vector<2x16xf32>
    %cst_60 = arith.constant 0.000000e+00 : f32
    %68 = vector.broadcast %cst_60 : f32 to vector<2x16xf32>
    %69 = arith.maximumf %67, %68 : vector<2x16xf32>
    %c0_61 = arith.constant 0 : index
    %c0_62 = arith.constant 0 : index
    %70 = vector.load %arg6[%c0_61, %c0_62] : memref<128x2xf32, #tpu.memory_space<vmem>>, vector<128x2xf32>
    %cst_63 = arith.constant dense<0.000000e+00> : vector<128x16xf32>
    %71 = tpu.matmul %70, %69, %cst_63 {dimension_numbers = #tpu.dot_dimension_numbers<[1], [0], [0], [1], [0, 0, 1, 1], [], []>} : vector<128x2xf32>, vector<2x16xf32>, vector<128x16xf32> -> vector<128x16xf32>
    %c4 = arith.constant 4 : index
    %c0_64 = arith.constant 0 : index
    %c0_65 = arith.constant 0 : index
    %72 = vector.load %arg9[%c4, %c0_64, %c0_65] : memref<5x16x32xf32, #tpu.memory_space<vmem>>, vector<1x16x32xf32>
    %73 = vector.shape_cast %72 : vector<1x16x32xf32> to vector<16x32xf32>
    %cst_66 = arith.constant dense<0.000000e+00> : vector<128x32xf32>
    %74 = tpu.matmul %71, %73, %cst_66 {dimension_numbers = #tpu.dot_dimension_numbers<[1], [0], [0], [1], [0, 0, 1, 1], [], []>} : vector<128x16xf32>, vector<16x32xf32>, vector<128x32xf32> -> vector<128x32xf32>
    %75 = arith.addf %60, %74 : vector<128x32xf32>
    %c0_67 = arith.constant 0 : index
    %c0_68 = arith.constant 0 : index
    %76 = vector.load %arg10[%c0_67, %c0_68] : memref<1x32xf32, #tpu.memory_space<vmem>>, vector<1x32xf32>
    %77 = vector.broadcast %76 : vector<1x32xf32> to vector<128x32xf32>
    %78 = arith.addf %75, %77 : vector<128x32xf32>
    %cst_69 = arith.constant 0.000000e+00 : f32
    %79 = vector.broadcast %cst_69 : f32 to vector<128x32xf32>
    %80 = arith.maximumf %78, %79 : vector<128x32xf32>
    %81 = vector.extract_strided_slice %80 {offsets = [0, 0], sizes = [64, 32], strides = [1, 1]} : vector<128x32xf32> to vector<64x32xf32>
    %c4_70 = arith.constant 4 : index
    %c0_71 = arith.constant 0 : index
    %c0_72 = arith.constant 0 : index
    %82 = vector.load %arg12[%c4_70, %c0_71, %c0_72] : memref<9x32x32xf32, #tpu.memory_space<vmem>>, vector<1x32x32xf32>
    %83 = vector.shape_cast %82 : vector<1x32x32xf32> to vector<32x32xf32>
    %cst_73 = arith.constant dense<0.000000e+00> : vector<64x32xf32>
    %84 = tpu.matmul %81, %83, %cst_73 {dimension_numbers = #tpu.dot_dimension_numbers<[1], [0], [0], [1], [0, 0, 1, 1], [], []>} : vector<64x32xf32>, vector<32x32xf32>, vector<64x32xf32> -> vector<64x32xf32>
    %c0_74 = arith.constant 0 : index
    %c0_75 = arith.constant 0 : index
    %c0_76 = arith.constant 0 : index
    %85 = vector.load %arg11[%c0_74, %c0_75, %c0_76] : memref<9x64x64xf32, #tpu.memory_space<vmem>>, vector<1x64x64xf32>
    %86 = vector.shape_cast %85 : vector<1x64x64xf32> to vector<64x64xf32>
    %cst_77 = arith.constant dense<0.000000e+00> : vector<64x32xf32>
    %87 = tpu.matmul %86, %81, %cst_77 {dimension_numbers = #tpu.dot_dimension_numbers<[1], [0], [0], [1], [0, 0, 1, 1], [], []>} : vector<64x64xf32>, vector<64x32xf32>, vector<64x32xf32> -> vector<64x32xf32>
    %c0_78 = arith.constant 0 : index
    %c0_79 = arith.constant 0 : index
    %c0_80 = arith.constant 0 : index
    %88 = vector.load %arg12[%c0_78, %c0_79, %c0_80] : memref<9x32x32xf32, #tpu.memory_space<vmem>>, vector<1x32x32xf32>
    %89 = vector.shape_cast %88 : vector<1x32x32xf32> to vector<32x32xf32>
    %cst_81 = arith.constant dense<0.000000e+00> : vector<64x32xf32>
    %90 = tpu.matmul %87, %89, %cst_81 {dimension_numbers = #tpu.dot_dimension_numbers<[1], [0], [0], [1], [0, 0, 1, 1], [], []>} : vector<64x32xf32>, vector<32x32xf32>, vector<64x32xf32> -> vector<64x32xf32>
    %91 = arith.addf %84, %90 : vector<64x32xf32>
    %c1_82 = arith.constant 1 : index
    %c0_83 = arith.constant 0 : index
    %c0_84 = arith.constant 0 : index
    %92 = vector.load %arg11[%c1_82, %c0_83, %c0_84] : memref<9x64x64xf32, #tpu.memory_space<vmem>>, vector<1x64x64xf32>
    %93 = vector.shape_cast %92 : vector<1x64x64xf32> to vector<64x64xf32>
    %cst_85 = arith.constant dense<0.000000e+00> : vector<64x32xf32>
    %94 = tpu.matmul %93, %81, %cst_85 {dimension_numbers = #tpu.dot_dimension_numbers<[1], [0], [0], [1], [0, 0, 1, 1], [], []>} : vector<64x64xf32>, vector<64x32xf32>, vector<64x32xf32> -> vector<64x32xf32>
    %c1_86 = arith.constant 1 : index
    %c0_87 = arith.constant 0 : index
    %c0_88 = arith.constant 0 : index
    %95 = vector.load %arg12[%c1_86, %c0_87, %c0_88] : memref<9x32x32xf32, #tpu.memory_space<vmem>>, vector<1x32x32xf32>
    %96 = vector.shape_cast %95 : vector<1x32x32xf32> to vector<32x32xf32>
    %cst_89 = arith.constant dense<0.000000e+00> : vector<64x32xf32>
    %97 = tpu.matmul %94, %96, %cst_89 {dimension_numbers = #tpu.dot_dimension_numbers<[1], [0], [0], [1], [0, 0, 1, 1], [], []>} : vector<64x32xf32>, vector<32x32xf32>, vector<64x32xf32> -> vector<64x32xf32>
    %98 = arith.addf %91, %97 : vector<64x32xf32>
    %c2_90 = arith.constant 2 : index
    %c0_91 = arith.constant 0 : index
    %c0_92 = arith.constant 0 : index
    %99 = vector.load %arg11[%c2_90, %c0_91, %c0_92] : memref<9x64x64xf32, #tpu.memory_space<vmem>>, vector<1x64x64xf32>
    %100 = vector.shape_cast %99 : vector<1x64x64xf32> to vector<64x64xf32>
    %cst_93 = arith.constant dense<0.000000e+00> : vector<64x32xf32>
    %101 = tpu.matmul %100, %81, %cst_93 {dimension_numbers = #tpu.dot_dimension_numbers<[1], [0], [0], [1], [0, 0, 1, 1], [], []>} : vector<64x64xf32>, vector<64x32xf32>, vector<64x32xf32> -> vector<64x32xf32>
    %c2_94 = arith.constant 2 : index
    %c0_95 = arith.constant 0 : index
    %c0_96 = arith.constant 0 : index
    %102 = vector.load %arg12[%c2_94, %c0_95, %c0_96] : memref<9x32x32xf32, #tpu.memory_space<vmem>>, vector<1x32x32xf32>
    %103 = vector.shape_cast %102 : vector<1x32x32xf32> to vector<32x32xf32>
    %cst_97 = arith.constant dense<0.000000e+00> : vector<64x32xf32>
    %104 = tpu.matmul %101, %103, %cst_97 {dimension_numbers = #tpu.dot_dimension_numbers<[1], [0], [0], [1], [0, 0, 1, 1], [], []>} : vector<64x32xf32>, vector<32x32xf32>, vector<64x32xf32> -> vector<64x32xf32>
    %105 = arith.addf %98, %104 : vector<64x32xf32>
    %c3_98 = arith.constant 3 : index
    %c0_99 = arith.constant 0 : index
    %c0_100 = arith.constant 0 : index
    %106 = vector.load %arg11[%c3_98, %c0_99, %c0_100] : memref<9x64x64xf32, #tpu.memory_space<vmem>>, vector<1x64x64xf32>
    %107 = vector.shape_cast %106 : vector<1x64x64xf32> to vector<64x64xf32>
    %cst_101 = arith.constant dense<0.000000e+00> : vector<64x32xf32>
    %108 = tpu.matmul %107, %81, %cst_101 {dimension_numbers = #tpu.dot_dimension_numbers<[1], [0], [0], [1], [0, 0, 1, 1], [], []>} : vector<64x64xf32>, vector<64x32xf32>, vector<64x32xf32> -> vector<64x32xf32>
    %c3_102 = arith.constant 3 : index
    %c0_103 = arith.constant 0 : index
    %c0_104 = arith.constant 0 : index
    %109 = vector.load %arg12[%c3_102, %c0_103, %c0_104] : memref<9x32x32xf32, #tpu.memory_space<vmem>>, vector<1x32x32xf32>
    %110 = vector.shape_cast %109 : vector<1x32x32xf32> to vector<32x32xf32>
    %cst_105 = arith.constant dense<0.000000e+00> : vector<64x32xf32>
    %111 = tpu.matmul %108, %110, %cst_105 {dimension_numbers = #tpu.dot_dimension_numbers<[1], [0], [0], [1], [0, 0, 1, 1], [], []>} : vector<64x32xf32>, vector<32x32xf32>, vector<64x32xf32> -> vector<64x32xf32>
    %112 = arith.addf %105, %111 : vector<64x32xf32>
    %c5 = arith.constant 5 : index
    %c0_106 = arith.constant 0 : index
    %c0_107 = arith.constant 0 : index
    %113 = vector.load %arg11[%c5, %c0_106, %c0_107] : memref<9x64x64xf32, #tpu.memory_space<vmem>>, vector<1x64x64xf32>
    %114 = vector.shape_cast %113 : vector<1x64x64xf32> to vector<64x64xf32>
    %cst_108 = arith.constant dense<0.000000e+00> : vector<64x32xf32>
    %115 = tpu.matmul %114, %81, %cst_108 {dimension_numbers = #tpu.dot_dimension_numbers<[1], [0], [0], [1], [0, 0, 1, 1], [], []>} : vector<64x64xf32>, vector<64x32xf32>, vector<64x32xf32> -> vector<64x32xf32>
    %c5_109 = arith.constant 5 : index
    %c0_110 = arith.constant 0 : index
    %c0_111 = arith.constant 0 : index
    %116 = vector.load %arg12[%c5_109, %c0_110, %c0_111] : memref<9x32x32xf32, #tpu.memory_space<vmem>>, vector<1x32x32xf32>
    %117 = vector.shape_cast %116 : vector<1x32x32xf32> to vector<32x32xf32>
    %cst_112 = arith.constant dense<0.000000e+00> : vector<64x32xf32>
    %118 = tpu.matmul %115, %117, %cst_112 {dimension_numbers = #tpu.dot_dimension_numbers<[1], [0], [0], [1], [0, 0, 1, 1], [], []>} : vector<64x32xf32>, vector<32x32xf32>, vector<64x32xf32> -> vector<64x32xf32>
    %119 = arith.addf %112, %118 : vector<64x32xf32>
    %c6 = arith.constant 6 : index
    %c0_113 = arith.constant 0 : index
    %c0_114 = arith.constant 0 : index
    %120 = vector.load %arg11[%c6, %c0_113, %c0_114] : memref<9x64x64xf32, #tpu.memory_space<vmem>>, vector<1x64x64xf32>
    %121 = vector.shape_cast %120 : vector<1x64x64xf32> to vector<64x64xf32>
    %cst_115 = arith.constant dense<0.000000e+00> : vector<64x32xf32>
    %122 = tpu.matmul %121, %81, %cst_115 {dimension_numbers = #tpu.dot_dimension_numbers<[1], [0], [0], [1], [0, 0, 1, 1], [], []>} : vector<64x64xf32>, vector<64x32xf32>, vector<64x32xf32> -> vector<64x32xf32>
    %c6_116 = arith.constant 6 : index
    %c0_117 = arith.constant 0 : index
    %c0_118 = arith.constant 0 : index
    %123 = vector.load %arg12[%c6_116, %c0_117, %c0_118] : memref<9x32x32xf32, #tpu.memory_space<vmem>>, vector<1x32x32xf32>
    %124 = vector.shape_cast %123 : vector<1x32x32xf32> to vector<32x32xf32>
    %cst_119 = arith.constant dense<0.000000e+00> : vector<64x32xf32>
    %125 = tpu.matmul %122, %124, %cst_119 {dimension_numbers = #tpu.dot_dimension_numbers<[1], [0], [0], [1], [0, 0, 1, 1], [], []>} : vector<64x32xf32>, vector<32x32xf32>, vector<64x32xf32> -> vector<64x32xf32>
    %126 = arith.addf %119, %125 : vector<64x32xf32>
    %c7 = arith.constant 7 : index
    %c0_120 = arith.constant 0 : index
    %c0_121 = arith.constant 0 : index
    %127 = vector.load %arg11[%c7, %c0_120, %c0_121] : memref<9x64x64xf32, #tpu.memory_space<vmem>>, vector<1x64x64xf32>
    %128 = vector.shape_cast %127 : vector<1x64x64xf32> to vector<64x64xf32>
    %cst_122 = arith.constant dense<0.000000e+00> : vector<64x32xf32>
    %129 = tpu.matmul %128, %81, %cst_122 {dimension_numbers = #tpu.dot_dimension_numbers<[1], [0], [0], [1], [0, 0, 1, 1], [], []>} : vector<64x64xf32>, vector<64x32xf32>, vector<64x32xf32> -> vector<64x32xf32>
    %c7_123 = arith.constant 7 : index
    %c0_124 = arith.constant 0 : index
    %c0_125 = arith.constant 0 : index
    %130 = vector.load %arg12[%c7_123, %c0_124, %c0_125] : memref<9x32x32xf32, #tpu.memory_space<vmem>>, vector<1x32x32xf32>
    %131 = vector.shape_cast %130 : vector<1x32x32xf32> to vector<32x32xf32>
    %cst_126 = arith.constant dense<0.000000e+00> : vector<64x32xf32>
    %132 = tpu.matmul %129, %131, %cst_126 {dimension_numbers = #tpu.dot_dimension_numbers<[1], [0], [0], [1], [0, 0, 1, 1], [], []>} : vector<64x32xf32>, vector<32x32xf32>, vector<64x32xf32> -> vector<64x32xf32>
    %133 = arith.addf %126, %132 : vector<64x32xf32>
    %c8 = arith.constant 8 : index
    %c0_127 = arith.constant 0 : index
    %c0_128 = arith.constant 0 : index
    %134 = vector.load %arg11[%c8, %c0_127, %c0_128] : memref<9x64x64xf32, #tpu.memory_space<vmem>>, vector<1x64x64xf32>
    %135 = vector.shape_cast %134 : vector<1x64x64xf32> to vector<64x64xf32>
    %cst_129 = arith.constant dense<0.000000e+00> : vector<64x32xf32>
    %136 = tpu.matmul %135, %81, %cst_129 {dimension_numbers = #tpu.dot_dimension_numbers<[1], [0], [0], [1], [0, 0, 1, 1], [], []>} : vector<64x64xf32>, vector<64x32xf32>, vector<64x32xf32> -> vector<64x32xf32>
    %c8_130 = arith.constant 8 : index
    %c0_131 = arith.constant 0 : index
    %c0_132 = arith.constant 0 : index
    %137 = vector.load %arg12[%c8_130, %c0_131, %c0_132] : memref<9x32x32xf32, #tpu.memory_space<vmem>>, vector<1x32x32xf32>
    %138 = vector.shape_cast %137 : vector<1x32x32xf32> to vector<32x32xf32>
    %cst_133 = arith.constant dense<0.000000e+00> : vector<64x32xf32>
    %139 = tpu.matmul %136, %138, %cst_133 {dimension_numbers = #tpu.dot_dimension_numbers<[1], [0], [0], [1], [0, 0, 1, 1], [], []>} : vector<64x32xf32>, vector<32x32xf32>, vector<64x32xf32> -> vector<64x32xf32>
    %140 = arith.addf %133, %139 : vector<64x32xf32>
    %c0_134 = arith.constant 0 : index
    %c0_135 = arith.constant 0 : index
    %141 = vector.load %arg13[%c0_134, %c0_135] : memref<1x32xf32, #tpu.memory_space<vmem>>, vector<1x32xf32>
    %142 = vector.broadcast %141 : vector<1x32xf32> to vector<64x32xf32>
    %143 = arith.addf %140, %142 : vector<64x32xf32>
    %cst_136 = arith.constant 0.000000e+00 : f32
    %144 = vector.broadcast %cst_136 : f32 to vector<64x32xf32>
    %145 = arith.maximumf %143, %144 : vector<64x32xf32>
    %c0_137 = arith.constant 0 : index
    %c0_138 = arith.constant 0 : index
    %146 = vector.load %arg14[%c0_137, %c0_138] : memref<32x5xf32, #tpu.memory_space<vmem>>, vector<32x5xf32>
    %cst_139 = arith.constant dense<0.000000e+00> : vector<64x5xf32>
    %147 = tpu.matmul %145, %146, %cst_139 {dimension_numbers = #tpu.dot_dimension_numbers<[1], [0], [0], [1], [0, 0, 1, 1], [], []>} : vector<64x32xf32>, vector<32x5xf32>, vector<64x5xf32> -> vector<64x5xf32>
    %c0_140 = arith.constant 0 : index
    %c0_141 = arith.constant 0 : index
    %148 = vector.load %arg15[%c0_140, %c0_141] : memref<1x5xf32, #tpu.memory_space<vmem>>, vector<1x5xf32>
    %149 = vector.broadcast %148 : vector<1x5xf32> to vector<64x5xf32>
    %150 = arith.addf %147, %149 : vector<64x5xf32>
    %c0_142 = arith.constant 0 : index
    %c0_143 = arith.constant 0 : index
    %151 = vector.load %arg16[%c0_142, %c0_143] : memref<64x1024xf32, #tpu.memory_space<vmem>>, vector<64x1024xf32>
    %cst_144 = arith.constant dense<0.000000e+00> : vector<5x1024xf32>
    %152 = tpu.matmul %150, %151, %cst_144 {dimension_numbers = #tpu.dot_dimension_numbers<[0], [0], [1], [1], [0, 1, 1, 1], [], []>} : vector<64x5xf32>, vector<64x1024xf32>, vector<5x1024xf32> -> vector<5x1024xf32>
    %c0_145 = arith.constant 0 : index
    %c0_146 = arith.constant 0 : index
    %c0_147 = arith.constant 0 : index
    %153 = vector.load %arg17[%c0_145, %c0_146, %c0_147] : memref<2x5x1024xf32, #tpu.memory_space<vmem>>, vector<1x5x1024xf32>
    %154 = vector.shape_cast %153 : vector<1x5x1024xf32> to vector<5x1024xf32>
    %155 = vector.shape_cast %152 : vector<5x1024xf32> to vector<1x5x1024xf32>
    tpu.vector_store %arg17[%c0_145, %c0_146, %c0_147], %155 {strides = array<i32>} : memref<2x5x1024xf32, #tpu.memory_space<vmem>>, vector<1x5x1024xf32>,
    %156 = vector.extract_strided_slice %80 {offsets = [64, 0], sizes = [64, 32], strides = [1, 1]} : vector<128x32xf32> to vector<64x32xf32>
    %c4_148 = arith.constant 4 : index
    %c0_149 = arith.constant 0 : index
    %c0_150 = arith.constant 0 : index
    %157 = vector.load %arg12[%c4_148, %c0_149, %c0_150] : memref<9x32x32xf32, #tpu.memory_space<vmem>>, vector<1x32x32xf32>
    %158 = vector.shape_cast %157 : vector<1x32x32xf32> to vector<32x32xf32>
    %cst_151 = arith.constant dense<0.000000e+00> : vector<64x32xf32>
    %159 = tpu.matmul %156, %158, %cst_151 {dimension_numbers = #tpu.dot_dimension_numbers<[1], [0], [0], [1], [0, 0, 1, 1], [], []>} : vector<64x32xf32>, vector<32x32xf32>, vector<64x32xf32> -> vector<64x32xf32>
    %c0_152 = arith.constant 0 : index
    %c0_153 = arith.constant 0 : index
    %c0_154 = arith.constant 0 : index
    %160 = vector.load %arg11[%c0_152, %c0_153, %c0_154] : memref<9x64x64xf32, #tpu.memory_space<vmem>>, vector<1x64x64xf32>
    %161 = vector.shape_cast %160 : vector<1x64x64xf32> to vector<64x64xf32>
    %cst_155 = arith.constant dense<0.000000e+00> : vector<64x32xf32>
    %162 = tpu.matmul %161, %156, %cst_155 {dimension_numbers = #tpu.dot_dimension_numbers<[1], [0], [0], [1], [0, 0, 1, 1], [], []>} : vector<64x64xf32>, vector<64x32xf32>, vector<64x32xf32> -> vector<64x32xf32>
    %c0_156 = arith.constant 0 : index
    %c0_157 = arith.constant 0 : index
    %c0_158 = arith.constant 0 : index
    %163 = vector.load %arg12[%c0_156, %c0_157, %c0_158] : memref<9x32x32xf32, #tpu.memory_space<vmem>>, vector<1x32x32xf32>
    %164 = vector.shape_cast %163 : vector<1x32x32xf32> to vector<32x32xf32>
    %cst_159 = arith.constant dense<0.000000e+00> : vector<64x32xf32>
    %165 = tpu.matmul %162, %164, %cst_159 {dimension_numbers = #tpu.dot_dimension_numbers<[1], [0], [0], [1], [0, 0, 1, 1], [], []>} : vector<64x32xf32>, vector<32x32xf32>, vector<64x32xf32> -> vector<64x32xf32>
    %166 = arith.addf %159, %165 : vector<64x32xf32>
    %c1_160 = arith.constant 1 : index
    %c0_161 = arith.constant 0 : index
    %c0_162 = arith.constant 0 : index
    %167 = vector.load %arg11[%c1_160, %c0_161, %c0_162] : memref<9x64x64xf32, #tpu.memory_space<vmem>>, vector<1x64x64xf32>
    %168 = vector.shape_cast %167 : vector<1x64x64xf32> to vector<64x64xf32>
    %cst_163 = arith.constant dense<0.000000e+00> : vector<64x32xf32>
    %169 = tpu.matmul %168, %156, %cst_163 {dimension_numbers = #tpu.dot_dimension_numbers<[1], [0], [0], [1], [0, 0, 1, 1], [], []>} : vector<64x64xf32>, vector<64x32xf32>, vector<64x32xf32> -> vector<64x32xf32>
    %c1_164 = arith.constant 1 : index
    %c0_165 = arith.constant 0 : index
    %c0_166 = arith.constant 0 : index
    %170 = vector.load %arg12[%c1_164, %c0_165, %c0_166] : memref<9x32x32xf32, #tpu.memory_space<vmem>>, vector<1x32x32xf32>
    %171 = vector.shape_cast %170 : vector<1x32x32xf32> to vector<32x32xf32>
    %cst_167 = arith.constant dense<0.000000e+00> : vector<64x32xf32>
    %172 = tpu.matmul %169, %171, %cst_167 {dimension_numbers = #tpu.dot_dimension_numbers<[1], [0], [0], [1], [0, 0, 1, 1], [], []>} : vector<64x32xf32>, vector<32x32xf32>, vector<64x32xf32> -> vector<64x32xf32>
    %173 = arith.addf %166, %172 : vector<64x32xf32>
    %c2_168 = arith.constant 2 : index
    %c0_169 = arith.constant 0 : index
    %c0_170 = arith.constant 0 : index
    %174 = vector.load %arg11[%c2_168, %c0_169, %c0_170] : memref<9x64x64xf32, #tpu.memory_space<vmem>>, vector<1x64x64xf32>
    %175 = vector.shape_cast %174 : vector<1x64x64xf32> to vector<64x64xf32>
    %cst_171 = arith.constant dense<0.000000e+00> : vector<64x32xf32>
    %176 = tpu.matmul %175, %156, %cst_171 {dimension_numbers = #tpu.dot_dimension_numbers<[1], [0], [0], [1], [0, 0, 1, 1], [], []>} : vector<64x64xf32>, vector<64x32xf32>, vector<64x32xf32> -> vector<64x32xf32>
    %c2_172 = arith.constant 2 : index
    %c0_173 = arith.constant 0 : index
    %c0_174 = arith.constant 0 : index
    %177 = vector.load %arg12[%c2_172, %c0_173, %c0_174] : memref<9x32x32xf32, #tpu.memory_space<vmem>>, vector<1x32x32xf32>
    %178 = vector.shape_cast %177 : vector<1x32x32xf32> to vector<32x32xf32>
    %cst_175 = arith.constant dense<0.000000e+00> : vector<64x32xf32>
    %179 = tpu.matmul %176, %178, %cst_175 {dimension_numbers = #tpu.dot_dimension_numbers<[1], [0], [0], [1], [0, 0, 1, 1], [], []>} : vector<64x32xf32>, vector<32x32xf32>, vector<64x32xf32> -> vector<64x32xf32>
    %180 = arith.addf %173, %179 : vector<64x32xf32>
    %c3_176 = arith.constant 3 : index
    %c0_177 = arith.constant 0 : index
    %c0_178 = arith.constant 0 : index
    %181 = vector.load %arg11[%c3_176, %c0_177, %c0_178] : memref<9x64x64xf32, #tpu.memory_space<vmem>>, vector<1x64x64xf32>
    %182 = vector.shape_cast %181 : vector<1x64x64xf32> to vector<64x64xf32>
    %cst_179 = arith.constant dense<0.000000e+00> : vector<64x32xf32>
    %183 = tpu.matmul %182, %156, %cst_179 {dimension_numbers = #tpu.dot_dimension_numbers<[1], [0], [0], [1], [0, 0, 1, 1], [], []>} : vector<64x64xf32>, vector<64x32xf32>, vector<64x32xf32> -> vector<64x32xf32>
    %c3_180 = arith.constant 3 : index
    %c0_181 = arith.constant 0 : index
    %c0_182 = arith.constant 0 : index
    %184 = vector.load %arg12[%c3_180, %c0_181, %c0_182] : memref<9x32x32xf32, #tpu.memory_space<vmem>>, vector<1x32x32xf32>
    %185 = vector.shape_cast %184 : vector<1x32x32xf32> to vector<32x32xf32>
    %cst_183 = arith.constant dense<0.000000e+00> : vector<64x32xf32>
    %186 = tpu.matmul %183, %185, %cst_183 {dimension_numbers = #tpu.dot_dimension_numbers<[1], [0], [0], [1], [0, 0, 1, 1], [], []>} : vector<64x32xf32>, vector<32x32xf32>, vector<64x32xf32> -> vector<64x32xf32>
    %187 = arith.addf %180, %186 : vector<64x32xf32>
    %c5_184 = arith.constant 5 : index
    %c0_185 = arith.constant 0 : index
    %c0_186 = arith.constant 0 : index
    %188 = vector.load %arg11[%c5_184, %c0_185, %c0_186] : memref<9x64x64xf32, #tpu.memory_space<vmem>>, vector<1x64x64xf32>
    %189 = vector.shape_cast %188 : vector<1x64x64xf32> to vector<64x64xf32>
    %cst_187 = arith.constant dense<0.000000e+00> : vector<64x32xf32>
    %190 = tpu.matmul %189, %156, %cst_187 {dimension_numbers = #tpu.dot_dimension_numbers<[1], [0], [0], [1], [0, 0, 1, 1], [], []>} : vector<64x64xf32>, vector<64x32xf32>, vector<64x32xf32> -> vector<64x32xf32>
    %c5_188 = arith.constant 5 : index
    %c0_189 = arith.constant 0 : index
    %c0_190 = arith.constant 0 : index
    %191 = vector.load %arg12[%c5_188, %c0_189, %c0_190] : memref<9x32x32xf32, #tpu.memory_space<vmem>>, vector<1x32x32xf32>
    %192 = vector.shape_cast %191 : vector<1x32x32xf32> to vector<32x32xf32>
    %cst_191 = arith.constant dense<0.000000e+00> : vector<64x32xf32>
    %193 = tpu.matmul %190, %192, %cst_191 {dimension_numbers = #tpu.dot_dimension_numbers<[1], [0], [0], [1], [0, 0, 1, 1], [], []>} : vector<64x32xf32>, vector<32x32xf32>, vector<64x32xf32> -> vector<64x32xf32>
    %194 = arith.addf %187, %193 : vector<64x32xf32>
    %c6_192 = arith.constant 6 : index
    %c0_193 = arith.constant 0 : index
    %c0_194 = arith.constant 0 : index
    %195 = vector.load %arg11[%c6_192, %c0_193, %c0_194] : memref<9x64x64xf32, #tpu.memory_space<vmem>>, vector<1x64x64xf32>
    %196 = vector.shape_cast %195 : vector<1x64x64xf32> to vector<64x64xf32>
    %cst_195 = arith.constant dense<0.000000e+00> : vector<64x32xf32>
    %197 = tpu.matmul %196, %156, %cst_195 {dimension_numbers = #tpu.dot_dimension_numbers<[1], [0], [0], [1], [0, 0, 1, 1], [], []>} : vector<64x64xf32>, vector<64x32xf32>, vector<64x32xf32> -> vector<64x32xf32>
    %c6_196 = arith.constant 6 : index
    %c0_197 = arith.constant 0 : index
    %c0_198 = arith.constant 0 : index
    %198 = vector.load %arg12[%c6_196, %c0_197, %c0_198] : memref<9x32x32xf32, #tpu.memory_space<vmem>>, vector<1x32x32xf32>
    %199 = vector.shape_cast %198 : vector<1x32x32xf32> to vector<32x32xf32>
    %cst_199 = arith.constant dense<0.000000e+00> : vector<64x32xf32>
    %200 = tpu.matmul %197, %199, %cst_199 {dimension_numbers = #tpu.dot_dimension_numbers<[1], [0], [0], [1], [0, 0, 1, 1], [], []>} : vector<64x32xf32>, vector<32x32xf32>, vector<64x32xf32> -> vector<64x32xf32>
    %201 = arith.addf %194, %200 : vector<64x32xf32>
    %c7_200 = arith.constant 7 : index
    %c0_201 = arith.constant 0 : index
    %c0_202 = arith.constant 0 : index
    %202 = vector.load %arg11[%c7_200, %c0_201, %c0_202] : memref<9x64x64xf32, #tpu.memory_space<vmem>>, vector<1x64x64xf32>
    %203 = vector.shape_cast %202 : vector<1x64x64xf32> to vector<64x64xf32>
    %cst_203 = arith.constant dense<0.000000e+00> : vector<64x32xf32>
    %204 = tpu.matmul %203, %156, %cst_203 {dimension_numbers = #tpu.dot_dimension_numbers<[1], [0], [0], [1], [0, 0, 1, 1], [], []>} : vector<64x64xf32>, vector<64x32xf32>, vector<64x32xf32> -> vector<64x32xf32>
    %c7_204 = arith.constant 7 : index
    %c0_205 = arith.constant 0 : index
    %c0_206 = arith.constant 0 : index
    %205 = vector.load %arg12[%c7_204, %c0_205, %c0_206] : memref<9x32x32xf32, #tpu.memory_space<vmem>>, vector<1x32x32xf32>
    %206 = vector.shape_cast %205 : vector<1x32x32xf32> to vector<32x32xf32>
    %cst_207 = arith.constant dense<0.000000e+00> : vector<64x32xf32>
    %207 = tpu.matmul %204, %206, %cst_207 {dimension_numbers = #tpu.dot_dimension_numbers<[1], [0], [0], [1], [0, 0, 1, 1], [], []>} : vector<64x32xf32>, vector<32x32xf32>, vector<64x32xf32> -> vector<64x32xf32>
    %208 = arith.addf %201, %207 : vector<64x32xf32>
    %c8_208 = arith.constant 8 : index
    %c0_209 = arith.constant 0 : index
    %c0_210 = arith.constant 0 : index
    %209 = vector.load %arg11[%c8_208, %c0_209, %c0_210] : memref<9x64x64xf32, #tpu.memory_space<vmem>>, vector<1x64x64xf32>
    %210 = vector.shape_cast %209 : vector<1x64x64xf32> to vector<64x64xf32>
    %cst_211 = arith.constant dense<0.000000e+00> : vector<64x32xf32>
    %211 = tpu.matmul %210, %156, %cst_211 {dimension_numbers = #tpu.dot_dimension_numbers<[1], [0], [0], [1], [0, 0, 1, 1], [], []>} : vector<64x64xf32>, vector<64x32xf32>, vector<64x32xf32> -> vector<64x32xf32>
    %c8_212 = arith.constant 8 : index
    %c0_213 = arith.constant 0 : index
    %c0_214 = arith.constant 0 : index
    %212 = vector.load %arg12[%c8_212, %c0_213, %c0_214] : memref<9x32x32xf32, #tpu.memory_space<vmem>>, vector<1x32x32xf32>
    %213 = vector.shape_cast %212 : vector<1x32x32xf32> to vector<32x32xf32>
    %cst_215 = arith.constant dense<0.000000e+00> : vector<64x32xf32>
    %214 = tpu.matmul %211, %213, %cst_215 {dimension_numbers = #tpu.dot_dimension_numbers<[1], [0], [0], [1], [0, 0, 1, 1], [], []>} : vector<64x32xf32>, vector<32x32xf32>, vector<64x32xf32> -> vector<64x32xf32>
    %215 = arith.addf %208, %214 : vector<64x32xf32>
    %c0_216 = arith.constant 0 : index
    %c0_217 = arith.constant 0 : index
    %216 = vector.load %arg13[%c0_216, %c0_217] : memref<1x32xf32, #tpu.memory_space<vmem>>, vector<1x32xf32>
    %217 = vector.broadcast %216 : vector<1x32xf32> to vector<64x32xf32>
    %218 = arith.addf %215, %217 : vector<64x32xf32>
    %cst_218 = arith.constant 0.000000e+00 : f32
    %219 = vector.broadcast %cst_218 : f32 to vector<64x32xf32>
    %220 = arith.maximumf %218, %219 : vector<64x32xf32>
    %c0_219 = arith.constant 0 : index
    %c0_220 = arith.constant 0 : index
    %221 = vector.load %arg14[%c0_219, %c0_220] : memref<32x5xf32, #tpu.memory_space<vmem>>, vector<32x5xf32>
    %cst_221 = arith.constant dense<0.000000e+00> : vector<64x5xf32>
    %222 = tpu.matmul %220, %221, %cst_221 {dimension_numbers = #tpu.dot_dimension_numbers<[1], [0], [0], [1], [0, 0, 1, 1], [], []>} : vector<64x32xf32>, vector<32x5xf32>, vector<64x5xf32> -> vector<64x5xf32>
    %c0_222 = arith.constant 0 : index
    %c0_223 = arith.constant 0 : index
    %223 = vector.load %arg15[%c0_222, %c0_223] : memref<1x5xf32, #tpu.memory_space<vmem>>, vector<1x5xf32>
    %224 = vector.broadcast %223 : vector<1x5xf32> to vector<64x5xf32>
    %225 = arith.addf %222, %224 : vector<64x5xf32>
    %c0_224 = arith.constant 0 : index
    %c0_225 = arith.constant 0 : index
    %226 = vector.load %arg16[%c0_224, %c0_225] : memref<64x1024xf32, #tpu.memory_space<vmem>>, vector<64x1024xf32>
    %cst_226 = arith.constant dense<0.000000e+00> : vector<5x1024xf32>
    %227 = tpu.matmul %225, %226, %cst_226 {dimension_numbers = #tpu.dot_dimension_numbers<[0], [0], [1], [1], [0, 1, 1, 1], [], []>} : vector<64x5xf32>, vector<64x1024xf32>, vector<5x1024xf32> -> vector<5x1024xf32>
    %c1_227 = arith.constant 1 : index
    %c0_228 = arith.constant 0 : index
    %c0_229 = arith.constant 0 : index
    %228 = vector.load %arg17[%c1_227, %c0_228, %c0_229] : memref<2x5x1024xf32, #tpu.memory_space<vmem>>, vector<1x5x1024xf32>
    %229 = vector.shape_cast %228 : vector<1x5x1024xf32> to vector<5x1024xf32>
    %230 = vector.shape_cast %227 : vector<5x1024xf32> to vector<1x5x1024xf32>
    tpu.vector_store %arg17[%c1_227, %c0_228, %c0_229], %230 {strides = array<i32>} : memref<2x5x1024xf32, #tpu.memory_space<vmem>>, vector<1x5x1024xf32>,
    return
  }
}

</mosaic_0001>

<bundles_post_ra>
// kernel: deeplab_forward.1
= control target key start
LH: loop header
LB: loop body
LE: loop exit
PB: predicated region body
PF: predicated region fallthrough
CT: control target
= control target key end

     0   :  { %vm85_vm0 = vcmask 392192   ;;  %vm306_vm1 = vcmask 261120   ;;  %vm695_vm2 = vcmask 130048   ;;  %vm10953_vm3 = vmmov 0   ;;  %s13717_s1 = inlined_call_operand.vmem [shape: f32[48,32], index: 1, kind: input, shape index: {}]   ;;  %s13718_s0 = inlined_call_operand.vmem [shape: f32[128,48], index: 0, kind: input, shape index: {}]   ;;  %s13719_s3 = inlined_call_operand.vmem [shape: f32[4,32,16], index: 3, kind: input, shape index: {}]   ;;  %s13720_s2 = inlined_call_operand.vmem [shape: f32[1,32], index: 2, kind: input, shape index: {}]   ;;  %s13721_s9 = inlined_call_operand.vmem [shape: f32[5,16,32], index: 9, kind: input, shape index: {}]   ;;  %s13722_s4 = inlined_call_operand.vmem [shape: f32[4,1,16], index: 4, kind: input, shape index: {}]   ;;  %s13723_s5 = inlined_call_operand.vmem [shape: f32[2,128], index: 5, kind: input, shape index: {}]   ;;  %s13724_s7 = inlined_call_operand.vmem [shape: f32[32,16], index: 7, kind: input, shape index: {}]   ;;  %s13725_s6 = inlined_call_operand.vmem [shape: f32[128,2], index: 6, kind: input, shape index: {}]   ;;  %s13726_s8 = inlined_call_operand.vmem [shape: f32[1,16], index: 8, kind: input, shape index: {}]   ;;  %s13727_s12 = inlined_call_operand.vmem [shape: f32[9,32,32], index: 12, kind: input, shape index: {}]   ;;  %s13728_s11 = inlined_call_operand.vmem [shape: f32[9,64,64], index: 11, kind: input, shape index: {}]   ;;  %s13729_s10 = inlined_call_operand.vmem [shape: f32[1,32], index: 10, kind: input, shape index: {}]   ;;  %s13730_s14 = inlined_call_operand.vmem [shape: f32[32,5], index: 14, kind: input, shape index: {}]   ;;  %s13731_s13 = inlined_call_operand.vmem [shape: f32[1,32], index: 13, kind: input, shape index: {}]   ;;  %s13732_s16 = inlined_call_operand.vmem [shape: f32[64,1024], index: 16, kind: input, shape index: {}]   ;;  %s13733_s15 = inlined_call_operand.vmem [shape: f32[1,5], index: 15, kind: input, shape index: {}]   ;;  %s13734_s17 = inlined_call_operand.vmem [shape: f32[2,5,1024], index: 17, kind: output, shape index: {}]  }
   0x1   :  { %13739 = sst [smem:[#allocation27_spill]] %s13717_s1  ;;  %v298_v22 = vld [vmem:[%s13719_s3 + $0x18] sm:$0xff]  ;;  %v297_v23 = vld [vmem:[%s13719_s3 + $0x10] sm:$0xff]  ;;  %v296_v24 = vld [vmem:[%s13719_s3 + $0x8] sm:$0xff]  ;;  %vm2026_vm4 = vcmask 15360   ;;  %vm2075_vm5 = vcmask 1041408  }
   0x2   :  { %13740 = sst [smem:[#allocation28_spill]] %s13718_s0  ;;  %9757 = vmatprep.subr.mxu1 %v298_v22  ;;  %v295_v25 = vld [vmem:[%s13719_s3] sm:$0xff]  ;;  %v8339_v26 = vld [vmem:[%s13719_s3 + $0x38] sm:$0xff]  ;;  %v8338_v38 = vld [vmem:[%s13719_s3 + $0x30] sm:$0xff]  ;;  %vm2488_vm6 = vcmask 523264  }
   0x3   :  { %s13741_s26 = sld [smem:[#allocation27_spill]]  ;;  %9758 = vmatpush3.msra.mxu1 %v298_v22  ;;  %v11144_v27 = vld [vmem:[%s13720_s2] ss:$0 sm:$0xff]  ;;  %v8337_v41 = vld [vmem:[%s13719_s3 + $0x28] sm:$0xff] }
   0x4   :  { %s13742_s19 = sld [smem:[#allocation28_spill]]  ;;  %9759 = vmatprep.subr.mxu1 %v297_v23  ;;  %v8336_v46 = vld [vmem:[%s13719_s3 + $0x20] sm:$0xff] }
   0x5   :  { %9760 = vmatpush3.msra.mxu1 %v297_v23 }
   0x6   :  { %9761 = vmatprep.subr.mxu1 %v296_v24 }
   0x7   :  { %9762 = vmatpush3.msra.mxu1 %v296_v24 }
   0x8   :  { %9763 = vmatprep.subr.mxu1 %v295_v25 }
   0x9   :  { %v77_v0 = vld [vmem:[%s13741_s26 + $0x28] sm:$0xff]  ;;  %v76_v1 = vld [vmem:[%s13741_s26 + $0x20] sm:$0xff]  ;;  %v75_v2 = vld [vmem:[%s13741_s26 + $0x18] sm:$0xff]  ;;  %9764 = vmatpush3.msra.mxu1 %v295_v25 }
   0xa   :  { %9721 = vmatprep.subr.mxu0 %v77_v0  ;;  %v56_v3 = vld [vmem:[%s13742_s19] sm:$0xff]  ;;  %v74_v4 = vld [vmem:[%s13741_s26 + $0x10] sm:$0xff]  ;;  %v73_v5 = vld [vmem:[%s13741_s26 + $0x8] sm:$0xff]  ;;  %9789 = vmatprep.subr.mxu1 %v8339_v26 }
   0xb   :  { %9722 = vmatpush3.msra.mxu0 %v77_v0  ;;  %9733 = vmatprep.mubr.msk.f32.mxu0 %vm85_vm0, %v56_v3  ;;  %v72_v6 = vld [vmem:[%s13741_s26] sm:$0xff]  ;;  %v57_v7 = vld [vmem:[%s13742_s19 + $0x8] sm:$0xff]  ;;  %v58_v8 = vld [vmem:[%s13742_s19 + $0x10] sm:$0xff] }
   0xc   :  { %9723 = vmatprep.subr.mxu0 %v76_v1  ;;  %v59_v9 = vld [vmem:[%s13742_s19 + $0x18] sm:$0xff]  ;;  %v60_v10 = vld [vmem:[%s13742_s19 + $0x20] sm:$0xff]  ;;  %v61_v11 = vld [vmem:[%s13742_s19 + $0x28] sm:$0xff] }
   0xd   :  { %9724 = vmatpush3.msra.mxu0 %v76_v1  ;;  %v62_v12 = vld [vmem:[%s13742_s19 + $0x30] sm:$0xff]  ;;  %v63_v13 = vld [vmem:[%s13742_s19 + $0x38] sm:$0xff]  ;;  %v64_v14 = vld [vmem:[%s13742_s19 + $0x40] sm:$0xff] }
   0xe   :  { %9725 = vmatprep.subr.mxu0 %v75_v2  ;;  %v65_v15 = vld [vmem:[%s13742_s19 + $0x48] sm:$0xff]  ;;  %v66_v16 = vld [vmem:[%s13742_s19 + $0x50] sm:$0xff]  ;;  %v67_v17 = vld [vmem:[%s13742_s19 + $0x58] sm:$0xff] }
   0xf   :  { %9726 = vmatpush3.msra.mxu0 %v75_v2  ;;  %v68_v18 = vld [vmem:[%s13742_s19 + $0x60] sm:$0xff]  ;;  %v69_v19 = vld [vmem:[%s13742_s19 + $0x68] sm:$0xff]  ;;  %v70_v20 = vld [vmem:[%s13742_s19 + $0x70] sm:$0xff] }
  0x10   :  { %9727 = vmatprep.subr.mxu0 %v74_v4  ;;  %v71_v21 = vld [vmem:[%s13742_s19 + $0x78] sm:$0xff] }
  0x11   :  { %9728 = vmatpush3.msra.mxu0 %v74_v4 }
  0x12   :  { %9729 = vmatprep.subr.mxu0 %v73_v5 }
  0x13   :  { %9730 = vmatpush3.msra.mxu0 %v73_v5 }
  0x14   :  { %9731 = vmatprep.subr.mxu0 %v72_v6 }
  0x15   :  { %9732 = vmatpush3.msra.mxu0 %v72_v6 }
  0x16   :  { %9734 = vmatmul.mubr.msk.f32.vlgmr.msra.gmra.mxu0 %vm85_vm0, %v57_v7 }
  0x17   :  { %9736 = vmatprep.mubr.msk.f32.mxu0 %vm85_vm0, %v58_v8 }
  0x1a   :  { %9737 = vmatmul.mubr.msk.f32.gmra.mxu0 %vm85_vm0, %v59_v9 }
  0x1b   :  { %9739 = vmatprep.mubr.msk.f32.mxu0 %vm85_vm0, %v60_v10 }
  0x1e   :  { %9740 = vmatmul.mubr.msk.f32.gmra.mxu0 %vm85_vm0, %v61_v11 }
  0x1f   :  { %9742 = vmatprep.mubr.msk.f32.mxu0 %vm85_vm0, %v62_v12 }
  0x22   :  { %9743 = vmatmul.mubr.msk.f32.gmra.mxu0 %vm85_vm0, %v63_v13 }
  0x23   :  { %9745 = vmatprep.mubr.msk.f32.mxu0 %vm85_vm0, %v64_v14 }
  0x26   :  { %9746 = vmatmul.mubr.msk.f32.gmra.mxu0 %vm85_vm0, %v65_v15  ;;  %v8359_v15 = vld [vmem:[%s13721_s9 + $0x18] sm:$0xff] }
  0x27   :  { %9748 = vmatprep.mubr.msk.f32.mxu0 %vm85_vm0, %v66_v16  ;;  %9821 = vmatprep.subr.mxu0 %v8359_v15  ;;  %v8358_v16 = vld [vmem:[%s13721_s9 + $0x10] sm:$0xff] }
  0x28   :  { %9822 = vmatpush3.msra.mxu0 %v8359_v15 }
  0x29   :  { %9823 = vmatprep.subr.mxu0 %v8358_v16 }
  0x2a   :  { %9749 = vmatmul.mubr.msk.f32.gmra.mxu0 %vm85_vm0, %v67_v17  ;;  %v8395_v17 = vld [vmem:[%s13719_s3 + $0x58] sm:$0xff] }
  0x2b   :  { %9751 = vmatprep.mubr.msk.f32.mxu0 %vm85_vm0, %v68_v18  ;;  %9824 = vmatpush3.msra.mxu0 %v8358_v16  ;;  %v11279_v18 = vld [vmem:[%s13721_s9 + $0x8] sm:$0xff] }
  0x2c   :  { %9877 = vmatprep.subr.mxu0 %v8395_v17 }
  0x2e   :  { %9752 = vmatmul.mubr.msk.f32.gmra.mxu0 %vm85_vm0, %v69_v19 }
  0x2f   :  { %9754 = vmatprep.mubr.msk.f32.mxu0 %vm85_vm0, %v70_v20 }
  0x32   :  { %9755 = vmatmul.mubr.msk.f32.gmra.mxu0 %vm85_vm0, %v71_v21 }
  0xd6   :  { %v9735_v28 = vpop.f32.mrf.mxu0 }
  0xd7   :  { %v206_v29 = vadd.f32 %v9735_v28, %v11144_v27 }
  0xd8   :  { %v200_v30 = vpop.f32.mrf.mxu0 }
  0xd9   :  { %v201_v31 = vadd.f32 %v11144_v27, %v200_v30  ;;  %v11150_v34 = vmax.f32 %v206_v29, 0.0 }
  0xda   :  { %v9738_v32 = vpop.f32.mrf.mxu0 }
  0xdb   :  { %v11148_v33 = vmax.f32 %v201_v31, 0.0  ;;  %v216_v35 = vadd.f32 %v9738_v32, %v11144_v27 }
  0xdc   :  { %v210_v36 = vpop.f32.mrf.mxu0 }
  0xdd   :  { %v211_v37 = vadd.f32 %v11144_v27, %v210_v36  ;;  %9765 = vmatprep.mubr.msk.f32.mxu1 %vm306_vm1, %v11148_v33  ;;  %v11166_v42 = vmax.f32 %v216_v35, 0.0 }
  0xde   :  { %v9741_v39 = vpop.f32.mrf.mxu0  ;;  %9766 = vmatmul.mubr.msk.f32.vlgmr.msra.gmra.mxu1 %vm306_vm1, %v11150_v34 }
  0xdf   :  { %v11161_v40 = vmax.f32 %v211_v37, 0.0  ;;  %9790 = vmatpush3.msra.mxu1 %v8339_v26  ;;  %v226_v43 = vadd.f32 %v9741_v39, %v11144_v27  ;;  %v11317_v37 = vld [vmem:[%s13722_s4 + $0x1] ss:$0 sm:$0xff] }
  0xe0   :  { %v220_v44 = vpop.f32.mrf.mxu0  ;;  %9791 = vmatprep.subr.mxu1 %v8338_v38 }
  0xe1   :  { %v221_v45 = vadd.f32 %v11144_v27, %v220_v44  ;;  %9768 = vmatprep.mubr.msk.f32.mxu1 %vm306_vm1, %v11161_v40  ;;  %9792 = vmatpush3.msra.mxu1 %v8338_v38  ;;  %v11179_v49 = vmax.f32 %v226_v43, 0.0 }
  0xe2   :  { %v9744_v47 = vpop.f32.mrf.mxu0  ;;  %9769 = vmatmul.mubr.msk.f32.gmra.mxu1 %vm306_vm1, %v11166_v42  ;;  %9793 = vmatprep.subr.mxu1 %v8337_v41 }
  0xe3   :  { %v11177_v48 = vmax.f32 %v221_v45, 0.0  ;;  %9794 = vmatpush3.msra.mxu1 %v8337_v41  ;;  %v236_v50 = vadd.f32 %v9744_v47, %v11144_v27 }
  0xe4   :  { %v230_v51 = vpop.f32.mrf.mxu0  ;;  %9795 = vmatprep.subr.mxu1 %v8336_v46 }
  0xe5   :  { %v231_v52 = vadd.f32 %v11144_v27, %v230_v51  ;;  %9771 = vmatprep.mubr.msk.f32.mxu1 %vm306_vm1, %v11177_v48  ;;  %9796 = vmatpush3.msra.mxu1 %v8336_v46  ;;  %v11189_v55 = vmax.f32 %v236_v50, 0.0 }
  0xe6   :  { %v9747_v53 = vpop.f32.mrf.mxu0  ;;  %9772 = vmatmul.mubr.msk.f32.gmra.mxu1 %vm306_vm1, %v11179_v49  ;;  %10945 = vmatprep.subr.mxu1 %v8359_v15 }
  0xe7   :  { %v11187_v54 = vmax.f32 %v231_v52, 0.0  ;;  %v246_v56 = vadd.f32 %v9747_v53, %v11144_v27  ;;  %v8394_v52 = vld [vmem:[%s13719_s3 + $0x50] sm:$0xff] }
  0xe8   :  { %v240_v57 = vpop.f32.mrf.mxu0 }
  0xe9   :  { %v241_v58 = vadd.f32 %v11144_v27, %v240_v57  ;;  %9774 = vmatprep.mubr.msk.f32.mxu1 %vm306_vm1, %v11187_v54  ;;  %v11199_v61 = vmax.f32 %v246_v56, 0.0  ;;  %v8393_v57 = vld [vmem:[%s13719_s3 + $0x48] sm:$0xff] }
  0xea   :  { %v9750_v59 = vpop.f32.mrf.mxu0  ;;  %9775 = vmatmul.mubr.msk.f32.gmra.mxu1 %vm306_vm1, %v11189_v55 }
  0xeb   :  { %v11197_v60 = vmax.f32 %v241_v58, 0.0  ;;  %v256_v62 = vadd.f32 %v9750_v59, %v11144_v27 }
  0xec   :  { %v250_v63 = vpop.f32.mrf.mxu0 }
  0xed   :  { %v251_v0 = vadd.f32 %v11144_v27, %v250_v63  ;;  %9777 = vmatprep.mubr.msk.f32.mxu1 %vm306_vm1, %v11197_v60  ;;  %v11209_v3 = vmax.f32 %v256_v62, 0.0 }
  0xee   :  { %v9753_v1 = vpop.f32.mrf.mxu0  ;;  %9778 = vmatmul.mubr.msk.f32.gmra.mxu1 %vm306_vm1, %v11199_v61 }
  0xef   :  { %v11207_v2 = vmax.f32 %v251_v0, 0.0  ;;  %v266_v4 = vadd.f32 %v9753_v1, %v11144_v27  ;;  %v8392_v0 = vld [vmem:[%s13719_s3 + $0x40] sm:$0xff] }
  0xf0   :  { %v260_v5 = vpop.f32.mrf.mxu0 }
  0xf1   :  { %v261_v6 = vadd.f32 %v11144_v27, %v260_v5  ;;  %9780 = vmatprep.mubr.msk.f32.mxu1 %vm306_vm1, %v11207_v2  ;;  %v11219_v9 = vmax.f32 %v266_v4, 0.0  ;;  %v8435_v5 = vld [vmem:[%s13719_s3 + $0x78] sm:$0xff] }
  0xf2   :  { %v9756_v7 = vpop.f32.mrf.mxu0  ;;  %9781 = vmatmul.mubr.msk.f32.gmra.mxu1 %vm306_vm1, %v11209_v3 }
  0xf3   :  { %v11217_v8 = vmax.f32 %v261_v6, 0.0  ;;  %v276_v10 = vadd.f32 %v9756_v7, %v11144_v27 }
  0xf4   :  { %v270_v11 = vpop.f32.mrf.mxu0 }
  0xf5   :  { %v271_v12 = vadd.f32 %v11144_v27, %v270_v11  ;;  %9783 = vmatprep.mubr.msk.f32.mxu1 %vm306_vm1, %v11217_v8  ;;  %v11229_v14 = vmax.f32 %v276_v10, 0.0 }
  0xf6   :  { %9784 = vmatmul.mubr.msk.f32.gmra.mxu1 %vm306_vm1, %v11219_v9 }
  0xf7   :  { %v11227_v13 = vmax.f32 %v271_v12, 0.0 }
  0xf9   :  { %9786 = vmatprep.mubr.msk.f32.mxu1 %vm306_vm1, %v11227_v13 }
  0xfa   :  { %9787 = vmatmul.mubr.msk.f32.gmra.mxu1 %vm306_vm1, %v11229_v14 }
  0xfb   :  { %9797 = vmatprep.mubr.msk.f32.mxu1 %vm306_vm1, %v11148_v33 }
  0xfe   :  { %9798 = vmatmul.mubr.msk.f32.vlgmr.msra.gmra.mxu1 %vm306_vm1, %v11150_v34 }
  0xff   :  { %9800 = vmatprep.mubr.msk.f32.mxu1 %vm306_vm1, %v11161_v40  ;;  %10947 = vmatpush3.msra.mxu1 %v8359_v15 }
 0x100   :  { %10946 = vmatprep.subr.mxu1 %v8358_v16 }
 0x101   :  { %10948 = vmatpush3.msra.mxu1 %v8358_v16 }
 0x102   :  { %9801 = vmatmul.mubr.msk.f32.gmra.mxu1 %vm306_vm1, %v11166_v42  ;;  %9849 = vmatprep.subr.mxu1 %v11279_v18 }
 0x103   :  { %9803 = vmatprep.mubr.msk.f32.mxu1 %vm306_vm1, %v11177_v48 }
 0x106   :  { %9804 = vmatmul.mubr.msk.f32.gmra.mxu1 %vm306_vm1, %v11179_v49 }
 0x107   :  { %9806 = vmatprep.mubr.msk.f32.mxu1 %vm306_vm1, %v11187_v54 }
 0x10a   :  { %9807 = vmatmul.mubr.msk.f32.gmra.mxu1 %vm306_vm1, %v11189_v55 }
 0x10b   :  { %9809 = vmatprep.mubr.msk.f32.mxu1 %vm306_vm1, %v11197_v60 }
 0x10e   :  { %9810 = vmatmul.mubr.msk.f32.gmra.mxu1 %vm306_vm1, %v11199_v61 }
 0x10f   :  { %9812 = vmatprep.mubr.msk.f32.mxu1 %vm306_vm1, %v11207_v2 }
 0x112   :  { %9813 = vmatmul.mubr.msk.f32.gmra.mxu1 %vm306_vm1, %v11209_v3 }
 0x113   :  { %9815 = vmatprep.mubr.msk.f32.mxu1 %vm306_vm1, %v11217_v8 }
 0x116   :  { %9816 = vmatmul.mubr.msk.f32.gmra.mxu1 %vm306_vm1, %v11219_v9 }
 0x117   :  { %9818 = vmatprep.mubr.msk.f32.mxu1 %vm306_vm1, %v11227_v13 }
 0x11a   :  { %9819 = vmatmul.mubr.msk.f32.gmra.mxu1 %vm306_vm1, %v11229_v14 }
 0x19e   :  { %v11282_v19 = vpop.f32.mrf.mxu1 }
 0x1a0   :  { %v11284_v20 = vpop.f32.mrf.mxu1 }
 0x1a2   :  { %v11286_v21 = vpop.f32.mrf.mxu1 }
 0x1a4   :  { %v11288_v22 = vpop.f32.mrf.mxu1 }
 0x1a6   :  { %v11290_v23 = vpop.f32.mrf.mxu1 }
 0x1a8   :  { %v11292_v24 = vpop.f32.mrf.mxu1 }
 0x1aa   :  { %v11294_v25 = vpop.f32.mrf.mxu1 }
 0x1ac   :  { %v11296_v26 = vpop.f32.mrf.mxu1 }
 0x1ae   :  { %v11298_v27 = vpop.f32.mrf.mxu1 }
 0x1b0   :  { %v11300_v28 = vpop.f32.mrf.mxu1 }
 0x1b2   :  { %v11302_v29 = vpop.f32.mrf.mxu1 }
 0x1b4   :  { %v11304_v30 = vpop.f32.mrf.mxu1 }
 0x1b6   :  { %v11306_v31 = vpop.f32.mrf.mxu1 }
 0x1b8   :  { %v11308_v32 = vpop.f32.mrf.mxu1 }
 0x1ba   :  { %v11310_v35 = vpop.f32.mrf.mxu1 }
 0x1bc   :  { %v11312_v36 = vpop.f32.mrf.mxu1 }
 0x1be   :  { %v9799_v38 = vpop.f32.mrf.mxu1 }
 0x1bf   :  { %v603_v39 = vadd.f32 %v9799_v38, %v11317_v37 }
 0x1c0   :  { %v597_v41 = vpop.f32.mrf.mxu1 }
 0x1c1   :  { %v598_v43 = vadd.f32 %v11317_v37, %v597_v41  ;;  %v677_v46 = vmax.f32 %v603_v39, 0.0 }
 0x1c2   :  { %v9802_v44 = vpop.f32.mrf.mxu1 }
 0x1c3   :  { %v676_v45 = vmax.f32 %v598_v43, 0.0  ;;  %v613_v47 = vadd.f32 %v9802_v44, %v11317_v37 }
 0x1c4   :  { %v607_v50 = vpop.f32.mrf.mxu1 }
 0x1c5   :  { %v608_v51 = vadd.f32 %v11317_v37, %v607_v50  ;;  %9825 = vmatprep.mubr.msk.f32.mxu0 %vm695_vm2, %v676_v45  ;;  %v679_v58 = vmax.f32 %v613_v47, 0.0 }
 0x1c6   :  { %v9805_v53 = vpop.f32.mrf.mxu1  ;;  %9826 = vmatmul.mubr.msk.f32.vlgmr.msra.gmra.mxu0 %vm695_vm2, %v677_v46 }
 0x1c7   :  { %v678_v56 = vmax.f32 %v608_v51, 0.0  ;;  %9878 = vmatpush3.msra.mxu0 %v8395_v17  ;;  %v623_v59 = vadd.f32 %v9805_v53, %v11317_v37 }
 0x1c8   :  { %v617_v62 = vpop.f32.mrf.mxu1  ;;  %9879 = vmatprep.subr.mxu0 %v8394_v52 }
 0x1c9   :  { %v618_v63 = vadd.f32 %v11317_v37, %v617_v62  ;;  %9828 = vmatprep.mubr.msk.f32.mxu0 %vm695_vm2, %v678_v56  ;;  %9880 = vmatpush3.msra.mxu0 %v8394_v52  ;;  %v681_v6 = vmax.f32 %v623_v59, 0.0  ;;  %v11360_v62 = vld [vmem:[%s13722_s4] ss:$0 sm:$0xff] }
 0x1ca   :  { %v9808_v1 = vpop.f32.mrf.mxu1  ;;  %9829 = vmatmul.mubr.msk.f32.gmra.mxu0 %vm695_vm2, %v679_v58  ;;  %9881 = vmatprep.subr.mxu0 %v8393_v57 }
 0x1cb   :  { %v680_v4 = vmax.f32 %v618_v63, 0.0  ;;  %9882 = vmatpush3.msra.mxu0 %v8393_v57  ;;  %v633_v7 = vadd.f32 %v9808_v1, %v11317_v37 }
 0x1cc   :  { %v627_v10 = vpop.f32.mrf.mxu1  ;;  %9883 = vmatprep.subr.mxu0 %v8392_v0 }
 0x1cd   :  { %v628_v11 = vadd.f32 %v11317_v37, %v627_v10  ;;  %9831 = vmatprep.mubr.msk.f32.mxu0 %vm695_vm2, %v680_v4  ;;  %9884 = vmatpush3.msra.mxu0 %v8392_v0  ;;  %v683_v16 = vmax.f32 %v633_v7, 0.0  ;;  %v422_v4 = vadd.f32 %v11360_v62, %v11284_v20  ;;  %v427_v10 = vadd.f32 %v11282_v19, %v11360_v62  ;;  %v516_v20 = vld [vmem:[%s13721_s9] sm:$0xff] }
 0x1ce   :  { %v9811_v12 = vpop.f32.mrf.mxu1  ;;  %9832 = vmatmul.mubr.msk.f32.gmra.mxu0 %vm695_vm2, %v681_v6  ;;  %9937 = vmatprep.subr.mxu0 %v8435_v5 }
 0x1cf   :  { %v682_v15 = vmax.f32 %v628_v11, 0.0  ;;  %v643_v17 = vadd.f32 %v9811_v12, %v11317_v37  ;;  %v500_v12 = vmax.f32 %v422_v4, 0.0  ;;  %v501_v19 = vmax.f32 %v427_v10, 0.0 }
 0x1d0   :  { %v637_v38 = vpop.f32.mrf.mxu1 }
 0x1d1   :  { %v638_v39 = vadd.f32 %v11317_v37, %v637_v38  ;;  %9834 = vmatprep.mubr.msk.f32.mxu0 %vm695_vm2, %v682_v15  ;;  %v685_v44 = vmax.f32 %v643_v17, 0.0  ;;  %v432_v15 = vadd.f32 %v11360_v62, %v11288_v22  ;;  %v452_v17 = vadd.f32 %v11360_v62, %v11296_v26  ;;  %v8433_v38 = vld [vmem:[%s13719_s3 + $0x68] sm:$0xff] }
 0x1d2   :  { %v9814_v41 = vpop.f32.mrf.mxu1  ;;  %9835 = vmatmul.mubr.msk.f32.gmra.mxu0 %vm695_vm2, %v683_v16  ;;  %v442_v16 = vadd.f32 %v11360_v62, %v11292_v24  ;;  %v447_v24 = vadd.f32 %v11290_v23, %v11360_v62 }
 0x1d3   :  { %v684_v43 = vmax.f32 %v638_v39, 0.0  ;;  %v653_v45 = vadd.f32 %v9814_v41, %v11317_v37  ;;  %v502_v22 = vmax.f32 %v432_v15, 0.0  ;;  %v457_v39 = vadd.f32 %v11294_v25, %v11360_v62 }
 0x1d4   :  { %v647_v46 = vpop.f32.mrf.mxu1  ;;  %v505_v23 = vmax.f32 %v447_v24, 0.0  ;;  %v506_v26 = vmax.f32 %v452_v17, 0.0  ;;  %v462_v41 = vadd.f32 %v11360_v62, %v11300_v28  ;;  %v8454_v24 = vld [vmem:[%s13721_s9 + $0x30] sm:$0xff] }
 0x1d5   :  { %v648_v47 = vadd.f32 %v11317_v37, %v647_v46  ;;  %9837 = vmatprep.mubr.msk.f32.mxu0 %vm695_vm2, %v684_v43  ;;  %v687_v52 = vmax.f32 %v653_v45, 0.0  ;;  %v8432_v43 = vld [vmem:[%s13719_s3 + $0x60] sm:$0xff]  ;;  %v507_v25 = vmax.f32 %v457_v39, 0.0  ;;  %v472_v45 = vadd.f32 %v11360_v62, %v11304_v30 }
 0x1d6   :  { %v9817_v50 = vpop.f32.mrf.mxu1  ;;  %9838 = vmatmul.mubr.msk.f32.gmra.mxu0 %vm695_vm2, %v685_v44  ;;  %v467_v44 = vadd.f32 %v11298_v27, %v11360_v62  ;;  %v508_v28 = vmax.f32 %v462_v41, 0.0  ;;  %v477_v27 = vadd.f32 %v11302_v29, %v11360_v62  ;;  %v482_v30 = vadd.f32 %v11360_v62, %v11308_v32 }
 0x1d7   :  { %v686_v51 = vmax.f32 %v648_v47, 0.0  ;;  %v663_v53 = vadd.f32 %v9817_v50, %v11317_v37  ;;  %v13737_v47 = vmov 0.0   ;;  %v510_v50 = vmax.f32 %v472_v45, 0.0 }
 0x1d8   :  { %v657_v56 = vpop.f32.mrf.mxu1  ;;  %v509_v46 = vmax.f32 %v467_v44, 0.0  ;;  %v487_v29 = vadd.f32 %v11306_v31, %v11360_v62 }
 0x1d9   :  { %v658_v57 = vadd.f32 %v11317_v37, %v657_v56  ;;  %9840 = vmatprep.mubr.msk.f32.mxu0 %vm695_vm2, %v686_v51  ;;  %v689_v63 = vmax.f32 %v663_v53, 0.0  ;;  %v511_v51 = vmax.f32 %v477_v27, 0.0  ;;  %v492_v53 = vadd.f32 %v11360_v62, %v11312_v36 }
 0x1da   :  { %v9820_v58 = vpop.f32.mrf.mxu1  ;;  %9841 = vmatmul.mubr.msk.f32.gmra.mxu0 %vm695_vm2, %v687_v52  ;;  %v512_v52 = vmax.f32 %v482_v30, 0.0  ;;  %v513_v32 = vmax.f32 %v487_v29, 0.0  ;;  %v497_v56 = vadd.f32 %v11310_v35, %v11360_v62 }
 0x1db   :  { %v688_v59 = vmax.f32 %v658_v57, 0.0  ;;  %v673_v0 = vadd.f32 %v9820_v58, %v11317_v37  ;;  %v514_v57 = vmax.f32 %v492_v53, 0.0 }
 0x1dc   :  { %v667_v1 = vpop.f32.mrf.mxu1  ;;  %v515_v31 = vmax.f32 %v497_v56, 0.0 }
 0x1dd   :  { %v668_v6 = vadd.f32 %v11317_v37, %v667_v1  ;;  %9843 = vmatprep.mubr.msk.f32.mxu0 %vm695_vm2, %v688_v59  ;;  %v691_v11 = vmax.f32 %v673_v0, 0.0  ;;  %v437_v37 = vadd.f32 %v11286_v21, %v11360_v62  ;;  %v11578_v0 = vld [vmem:[%s13722_s4 + $0x2] ss:$0 sm:$0xff] }
 0x1de   :  { %9844 = vmatmul.mubr.msk.f32.gmra.mxu0 %vm695_vm2, %v689_v63 }
 0x1df   :  { %v690_v7 = vmax.f32 %v668_v6, 0.0  ;;  %9885 = vmatprep.mubr.msk.f32.mxu0 %vm306_vm1, %v11148_v33  ;;  %v503_v21 = vmax.f32 %v437_v37, 0.0 }
 0x1e1   :  { %9846 = vmatprep.mubr.msk.f32.mxu1 %vm695_vm2, %v690_v7 }
 0x1e2   :  { %9847 = vmatmul.mubr.msk.f32.vlgmr.msra.gmra.mxu1 %vm695_vm2, %v691_v11  ;;  %9886 = vmatmul.mubr.msk.f32.vlgmr.msra.gmra.mxu0 %vm306_vm1, %v11150_v34 }
 0x1e3   :  { %9850 = vmatpush3.msra.mxu1 %v11279_v18  ;;  %9853 = vmatprep.mubr.msk.f32.mxu1 %vm695_vm2, %v500_v12  ;;  %v8434_v18 = vld [vmem:[%s13719_s3 + $0x70] sm:$0xff] }
 0x1e4   :  { %9888 = vmatprep.mubr.msk.f32.mxu0 %vm306_vm1, %v11161_v40  ;;  %9851 = vmatprep.subr.mxu1 %v516_v20 }
 0x1e5   :  { %9852 = vmatpush3.msra.mxu1 %v516_v20  ;;  %9938 = vmatpush3.msra.mxu0 %v8435_v5  ;;  %v504_v5 = vmax.f32 %v442_v16, 0.0 }
 0x1e6   :  { %9854 = vmatmul.mubr.msk.f32.vlgmr.msra.gmra.mxu1 %vm695_vm2, %v501_v19  ;;  %9889 = vmatmul.mubr.msk.f32.gmra.mxu0 %vm306_vm1, %v11166_v42 }
 0x1e7   :  { %9856 = vmatprep.mubr.msk.f32.mxu1 %vm695_vm2, %v502_v22  ;;  %9891 = vmatprep.mubr.msk.f32.mxu0 %vm306_vm1, %v11177_v48 }
 0x1e8   :  { %9939 = vmatprep.subr.mxu0 %v8434_v18 }
 0x1e9   :  { %9940 = vmatpush3.msra.mxu0 %v8434_v18 }
 0x1ea   :  { %9857 = vmatmul.mubr.msk.f32.gmra.mxu1 %vm695_vm2, %v503_v21  ;;  %9892 = vmatmul.mubr.msk.f32.gmra.mxu0 %vm306_vm1, %v11179_v49 }
 0x1eb   :  { %9859 = vmatprep.mubr.msk.f32.mxu1 %vm695_vm2, %v504_v5  ;;  %9894 = vmatprep.mubr.msk.f32.mxu0 %vm306_vm1, %v11187_v54 }
 0x1ec   :  { %9941 = vmatprep.subr.mxu0 %v8433_v38 }
 0x1ed   :  { %9942 = vmatpush3.msra.mxu0 %v8433_v38 }
 0x1ee   :  { %9860 = vmatmul.mubr.msk.f32.gmra.mxu1 %vm695_vm2, %v505_v23  ;;  %9895 = vmatmul.mubr.msk.f32.gmra.mxu0 %vm306_vm1, %v11189_v55 }
 0x1ef   :  { %9862 = vmatprep.mubr.msk.f32.mxu1 %vm695_vm2, %v506_v26  ;;  %9897 = vmatprep.mubr.msk.f32.mxu0 %vm306_vm1, %v11197_v60 }
 0x1f0   :  { %9943 = vmatprep.subr.mxu0 %v8432_v43 }
 0x1f1   :  { %9944 = vmatpush3.msra.mxu0 %v8432_v43 }
 0x1f2   :  { %9863 = vmatmul.mubr.msk.f32.gmra.mxu1 %vm695_vm2, %v507_v25  ;;  %9898 = vmatmul.mubr.msk.f32.gmra.mxu0 %vm306_vm1, %v11199_v61 }
 0x1f3   :  { %9865 = vmatprep.mubr.msk.f32.mxu1 %vm695_vm2, %v508_v28  ;;  %9900 = vmatprep.mubr.msk.f32.mxu0 %vm306_vm1, %v11207_v2 }
 0x1f4   :  { %9997 = vmatprep.subr.mxu0 %v13737_v47 }
 0x1f6   :  { %9866 = vmatmul.mubr.msk.f32.gmra.mxu1 %vm695_vm2, %v509_v46  ;;  %9901 = vmatmul.mubr.msk.f32.gmra.mxu0 %vm306_vm1, %v11209_v3 }
 0x1f7   :  { %9868 = vmatprep.mubr.msk.f32.mxu1 %vm695_vm2, %v510_v50  ;;  %9903 = vmatprep.mubr.msk.f32.mxu0 %vm306_vm1, %v11217_v8 }
 0x1fa   :  { %9869 = vmatmul.mubr.msk.f32.gmra.mxu1 %vm695_vm2, %v511_v51  ;;  %9904 = vmatmul.mubr.msk.f32.gmra.mxu0 %vm306_vm1, %v11219_v9 }
 0x1fb   :  { %9871 = vmatprep.mubr.msk.f32.mxu1 %vm695_vm2, %v512_v52  ;;  %9906 = vmatprep.mubr.msk.f32.mxu0 %vm306_vm1, %v11227_v13 }
 0x1fe   :  { %9872 = vmatmul.mubr.msk.f32.gmra.mxu1 %vm695_vm2, %v513_v32  ;;  %9907 = vmatmul.mubr.msk.f32.gmra.mxu0 %vm306_vm1, %v11229_v14 }
 0x1ff   :  { %9874 = vmatprep.mubr.msk.f32.mxu1 %vm695_vm2, %v514_v57  ;;  %9945 = vmatprep.mubr.msk.f32.mxu0 %vm306_vm1, %v11148_v33 }
 0x202   :  { %9875 = vmatmul.mubr.msk.f32.gmra.mxu1 %vm695_vm2, %v515_v31  ;;  %9946 = vmatmul.mubr.msk.f32.vlgmr.msra.gmra.mxu0 %vm306_vm1, %v11150_v34 }
 0x203   :  { %9998 = vmatpush3.msra.mxu0 %v11229_v14  ;;  %9948 = vmatprep.mubr.msk.f32.mxu0 %vm306_vm1, %v11161_v40 }
 0x204   :  { %9999 = vmatprep.subr.mxu0 %v13737_v47 }
 0x205   :  { %10000 = vmatpush3.msra.mxu0 %v11227_v13 }
 0x206   :  { %10001 = vmatprep.subr.mxu0 %v13737_v47  ;;  %9949 = vmatmul.mubr.msk.f32.gmra.mxu0 %vm306_vm1, %v11166_v42 }
 0x207   :  { %10002 = vmatpush3.msra.mxu0 %v11219_v9  ;;  %9951 = vmatprep.mubr.msk.f32.mxu0 %vm306_vm1, %v11177_v48 }
 0x208   :  { %10003 = vmatprep.subr.mxu0 %v13737_v47 }
 0x209   :  { %10004 = vmatpush3.msra.mxu0 %v11217_v8 }
 0x20a   :  { %10005 = vmatprep.subr.mxu0 %v13737_v47  ;;  %9952 = vmatmul.mubr.msk.f32.gmra.mxu0 %vm306_vm1, %v11179_v49 }
 0x20b   :  { %10006 = vmatpush3.msra.mxu0 %v11209_v3  ;;  %9954 = vmatprep.mubr.msk.f32.mxu0 %vm306_vm1, %v11187_v54 }
 0x20c   :  { %10007 = vmatprep.subr.mxu0 %v13737_v47 }
 0x20d   :  { %10008 = vmatpush3.msra.mxu0 %v11207_v2 }
 0x20e   :  { %10009 = vmatprep.subr.mxu0 %v13737_v47  ;;  %9955 = vmatmul.mubr.msk.f32.gmra.mxu0 %vm306_vm1, %v11189_v55 }
 0x20f   :  { %10010 = vmatpush3.msra.mxu0 %v11199_v61  ;;  %9957 = vmatprep.mubr.msk.f32.mxu0 %vm306_vm1, %v11197_v60 }
 0x210   :  { %10011 = vmatprep.subr.mxu0 %v13737_v47 }
 0x211   :  { %10012 = vmatpush3.msra.mxu0 %v11197_v60 }
 0x212   :  { %10013 = vmatprep.subr.mxu0 %v13737_v47  ;;  %9958 = vmatmul.mubr.msk.f32.gmra.mxu0 %vm306_vm1, %v11199_v61 }
 0x213   :  { %10014 = vmatpush3.msra.mxu0 %v11189_v55  ;;  %9960 = vmatprep.mubr.msk.f32.mxu0 %vm306_vm1, %v11207_v2  ;;  %v1925_v55 = vld [vmem:[%s13724_s7] sm:$0xff] }
 0x214   :  { %10015 = vmatprep.subr.mxu0 %v13737_v47 }
 0x215   :  { %10016 = vmatpush3.msra.mxu0 %v11187_v54  ;;  %v1926_v54 = vld [vmem:[%s13724_s7 + $0x8] sm:$0xff] }
 0x216   :  { %10017 = vmatprep.subr.mxu0 %v13737_v47  ;;  %9961 = vmatmul.mubr.msk.f32.gmra.mxu0 %vm306_vm1, %v11209_v3 }
 0x217   :  { %10018 = vmatpush3.msra.mxu0 %v11179_v49  ;;  %9963 = vmatprep.mubr.msk.f32.mxu0 %vm306_vm1, %v11217_v8  ;;  %v1927_v49 = vld [vmem:[%s13724_s7 + $0x10] sm:$0xff] }
 0x218   :  { %10019 = vmatprep.subr.mxu0 %v13737_v47 }
 0x219   :  { %10020 = vmatpush3.msra.mxu0 %v11177_v48  ;;  %v1928_v48 = vld [vmem:[%s13724_s7 + $0x18] sm:$0xff] }
 0x21a   :  { %10021 = vmatprep.subr.mxu0 %v13737_v47  ;;  %9964 = vmatmul.mubr.msk.f32.gmra.mxu0 %vm306_vm1, %v11219_v9 }
 0x21b   :  { %10022 = vmatpush3.msra.mxu0 %v11166_v42  ;;  %9966 = vmatprep.mubr.msk.f32.mxu0 %vm306_vm1, %v11227_v13  ;;  %v1854_v42 = vld [vmem:[%s13723_s5] sm:$0x3] }
 0x21c   :  { %10023 = vmatprep.subr.mxu0 %v13737_v47 }
 0x21d   :  { %10024 = vmatpush3.msra.mxu0 %v11161_v40  ;;  %v8414_v40 = vld [vmem:[%s13721_s9 + $0x20] sm:$0xff] }
 0x21e   :  { %10025 = vmatprep.subr.mxu0 %v13737_v47  ;;  %9967 = vmatmul.mubr.msk.f32.gmra.mxu0 %vm306_vm1, %v11229_v14 }
 0x21f   :  { %10026 = vmatpush3.msra.mxu0 %v11150_v34  ;;  %10029 = vmatprep.mubr.msk.f32.mxu0 %vm10953_vm3, %v13737_v47  ;;  %v8415_v34 = vld [vmem:[%s13721_s9 + $0x28] sm:$0xff] }
 0x220   :  { %10027 = vmatprep.subr.mxu0 %v13737_v47  ;;  %9909 = vmatprep.subr.mxu1 %v8415_v34 }
 0x221   :  { %10028 = vmatpush3.msra.mxu0 %v11148_v33  ;;  %9910 = vmatpush3.msra.mxu1 %v8415_v34  ;;  %v8455_v33 = vld [vmem:[%s13721_s9 + $0x38] sm:$0xff] }
 0x222   :  { %10030 = vmatmul.mubr.f32.vlgmr.msra.gmra.mxu0 %v1854_v42  ;;  %10032 = vmatprep.subr.mxu0 %v13737_v47 }
 0x223   :  { %10040 = vmatprep.mubr.msk.f32.mxu0 %vm10953_vm3, %v13737_v47  ;;  %9911 = vmatprep.subr.mxu1 %v8414_v40 }
 0x224   :  { %9912 = vmatpush3.msra.mxu1 %v8414_v40  ;;  %10033 = vmatpush3.msra.mxu0 %v1928_v48 }
 0x225   :  { %9969 = vmatprep.subr.mxu1 %v8455_v33  ;;  %10034 = vmatprep.subr.mxu0 %v13737_v47 }
 0x226   :  { %10035 = vmatpush3.msra.mxu0 %v1927_v49 }
 0x227   :  { %10036 = vmatprep.subr.mxu0 %v13737_v47 }
 0x228   :  { %10037 = vmatpush3.msra.mxu0 %v1926_v54 }
 0x229   :  { %10038 = vmatprep.subr.mxu0 %v13737_v47 }
 0x22a   :  { %10039 = vmatpush3.msra.mxu0 %v1925_v55 }
 0x286   :  { %v9827_v60 = vpop.f32.mrf.mxu0 }
 0x288   :  { %v11555_v61 = vpop.f32.mrf.mxu0 }
 0x28a   :  { %v9830_v2 = vpop.f32.mrf.mxu0 }
 0x28c   :  { %v11557_v3 = vpop.f32.mrf.mxu0 }
 0x28e   :  { %v9833_v8 = vpop.f32.mrf.mxu0 }
 0x290   :  { %v11559_v9 = vpop.f32.mrf.mxu0 }
 0x292   :  { %v9836_v13 = vpop.f32.mrf.mxu0 }
 0x294   :  { %v11561_v14 = vpop.f32.mrf.mxu0 }
 0x296   :  { %v11563_v35 = vpop.f32.mrf.mxu0 }
 0x298   :  { %v11565_v36 = vpop.f32.mrf.mxu0 }
 0x299   :  { %13743 = vst [vmem:[#allocation2_spill] sm:$0xff] %v11565_v36 }
 0x29a   :  { %v11567_v58 = vpop.f32.mrf.mxu0 }
 0x29c   :  { %v11569_v59 = vpop.f32.mrf.mxu0 }
 0x29d   :  { %13744 = vst [vmem:[#allocation3_spill] sm:$0xff] %v11569_v59 }
 0x29e   :  { %v11571_v62 = vpop.f32.mrf.mxu0 }
 0x2a0   :  { %v11573_v63 = vpop.f32.mrf.mxu0 }
 0x2a1   :  { %13745 = vst [vmem:[#allocation4_spill] sm:$0xff] %v11573_v63 }
 0x2a2   :  { %v11580_v1 = vpop.f32.mrf.mxu1  ;;  %v9887_v4 = vpop.f32.mrf.mxu0 }
 0x2a3   :  { %v1167_v6 = vadd.f32 %v9887_v4, %v11578_v0 }
 0x2a4   :  { %v11583_v7 = vpop.f32.mrf.mxu1  ;;  %v1161_v10 = vpop.f32.mrf.mxu0 }
 0x2a5   :  { %13746 = vst [vmem:[#allocation5_spill] sm:$0xff] %v11583_v7  ;;  %v1162_v11 = vadd.f32 %v11578_v0, %v1161_v10  ;;  %v1241_v37 = vmax.f32 %v1167_v6, 0.0 }
 0x2a6   :  { %v9855_v12 = vpop.f32.mrf.mxu1  ;;  %v9890_v15 = vpop.f32.mrf.mxu0 }
 0x2a7   :  { %v1240_v20 = vmax.f32 %v1162_v11, 0.0  ;;  %v11586_v19 = vadd.f32 %v9855_v12, %v9827_v60  ;;  %v1177_v22 = vadd.f32 %v9890_v15, %v11578_v0 }
 0x2a8   :  { %v11589_v16 = vpop.f32.mrf.mxu1  ;;  %v1171_v18 = vpop.f32.mrf.mxu0 }
 0x2a9   :  { %v1172_v21 = vadd.f32 %v11578_v0, %v1171_v18  ;;  %9913 = vmatprep.mubr.msk.f32.mxu1 %vm695_vm2, %v1240_v20  ;;  %v1243_v39 = vmax.f32 %v1177_v22, 0.0 }
 0x2aa   :  { %v9858_v5 = vpop.f32.mrf.mxu1  ;;  %v9893_v17 = vpop.f32.mrf.mxu0  ;;  %9914 = vmatmul.mubr.msk.f32.vlgmr.msra.gmra.mxu1 %vm695_vm2, %v1241_v37 }
 0x2ab   :  { %v1242_v38 = vmax.f32 %v1172_v21, 0.0  ;;  %v11597_v23 = vadd.f32 %v9858_v5, %v9830_v2  ;;  %9970 = vmatpush3.msra.mxu1 %v8455_v33  ;;  %v1187_v26 = vadd.f32 %v9893_v17, %v11578_v0 }
 0x2ac   :  { %v11600_v41 = vpop.f32.mrf.mxu1  ;;  %v1181_v43 = vpop.f32.mrf.mxu0  ;;  %9971 = vmatprep.subr.mxu1 %v8454_v24 }
 0x2ad   :  { %v1182_v25 = vadd.f32 %v11578_v0, %v1181_v43  ;;  %9916 = vmatprep.mubr.msk.f32.mxu1 %vm695_vm2, %v1242_v38  ;;  %9972 = vmatpush3.msra.mxu1 %v8454_v24  ;;  %v1245_v27 = vmax.f32 %v1187_v26, 0.0  ;;  %v11650_v26 = vld [vmem:[%s13722_s4 + $0x3] ss:$0 sm:$0xff] }
 0x2ae   :  { %v9861_v44 = vpop.f32.mrf.mxu1  ;;  %v9896_v28 = vpop.f32.mrf.mxu0  ;;  %9917 = vmatmul.mubr.msk.f32.gmra.mxu1 %vm695_vm2, %v1243_v39 }
 0x2af   :  { %v1244_v45 = vmax.f32 %v1182_v25, 0.0  ;;  %v11605_v46 = vadd.f32 %v9861_v44, %v9833_v8  ;;  %v1197_v50 = vadd.f32 %v9896_v28, %v11578_v0 }
 0x2b0   :  { %v11608_v30 = vpop.f32.mrf.mxu1  ;;  %v1191_v51 = vpop.f32.mrf.mxu0 }
 0x2b1   :  { %v1192_v29 = vadd.f32 %v11578_v0, %v1191_v51  ;;  %9919 = vmatprep.mubr.msk.f32.mxu1 %vm695_vm2, %v1244_v45  ;;  %v1247_v57 = vmax.f32 %v1197_v50, 0.0 }
 0x2b2   :  { %v9864_v52 = vpop.f32.mrf.mxu1  ;;  %v9899_v53 = vpop.f32.mrf.mxu0  ;;  %9920 = vmatmul.mubr.msk.f32.gmra.mxu1 %vm695_vm2, %v1245_v27 }
 0x2b3   :  { %v1246_v32 = vmax.f32 %v1192_v29, 0.0  ;;  %v11613_v56 = vadd.f32 %v9864_v52, %v9836_v13  ;;  %v1207_v31 = vadd.f32 %v9899_v53, %v11578_v0 }
 0x2b4   :  { %v11616_v42 = vpop.f32.mrf.mxu1  ;;  %v1201_v34 = vpop.f32.mrf.mxu0 }
 0x2b5   :  { %v1202_v40 = vadd.f32 %v11578_v0, %v1201_v34  ;;  %9922 = vmatprep.mubr.msk.f32.mxu1 %vm695_vm2, %v1246_v32  ;;  %v1249_v55 = vmax.f32 %v1207_v31, 0.0 }
 0x2b6   :  { %v9867_v33 = vpop.f32.mrf.mxu1  ;;  %v9902_v48 = vpop.f32.mrf.mxu0  ;;  %9923 = vmatmul.mubr.msk.f32.gmra.mxu1 %vm695_vm2, %v1247_v57 }
 0x2b7   :  { %v1248_v49 = vmax.f32 %v1202_v40, 0.0  ;;  %v11622_v54 = vadd.f32 %v9867_v33, %v11563_v35  ;;  %v1217_v60 = vadd.f32 %v9902_v48, %v11578_v0 }
 0x2b8   :  { %v11625_v2 = vpop.f32.mrf.mxu1  ;;  %v1211_v8 = vpop.f32.mrf.mxu0 }
 0x2b9   :  { %13747 = vst [vmem:[#allocation6_spill] sm:$0xff] %v11625_v2  ;;  %v1212_v13 = vadd.f32 %v11578_v0, %v1211_v8  ;;  %9925 = vmatprep.mubr.msk.f32.mxu1 %vm695_vm2, %v1248_v49  ;;  %v1251_v35 = vmax.f32 %v1217_v60, 0.0 }
 0x2ba   :  { %v9870_v4 = vpop.f32.mrf.mxu1  ;;  %v9905_v6 = vpop.f32.mrf.mxu0  ;;  %9926 = vmatmul.mubr.msk.f32.gmra.mxu1 %vm695_vm2, %v1249_v55 }
 0x2bb   :  { %v1250_v10 = vmax.f32 %v1212_v13, 0.0  ;;  %v11631_v11 = vadd.f32 %v9870_v4, %v11567_v58  ;;  %v1227_v12 = vadd.f32 %v9905_v6, %v11578_v0 }
 0x2bc   :  { %v11634_v15 = vpop.f32.mrf.mxu1  ;;  %v1221_v20 = vpop.f32.mrf.mxu0 }
 0x2bd   :  { %13748 = vst [vmem:[#allocation7_spill] sm:$0xff] %v11634_v15  ;;  %v1222_v37 = vadd.f32 %v11578_v0, %v1221_v20  ;;  %9928 = vmatprep.mubr.msk.f32.mxu1 %vm695_vm2, %v1250_v10  ;;  %v1253_v58 = vmax.f32 %v1227_v12, 0.0 }
 0x2be   :  { %v9873_v22 = vpop.f32.mrf.mxu1  ;;  %v9908_v18 = vpop.f32.mrf.mxu0  ;;  %9929 = vmatmul.mubr.msk.f32.gmra.mxu1 %vm695_vm2, %v1251_v35 }
 0x2bf   :  { %v1252_v21 = vmax.f32 %v1222_v37, 0.0  ;;  %v11640_v24 = vadd.f32 %v9873_v22, %v11571_v62  ;;  %v1237_v5 = vadd.f32 %v9908_v18, %v11578_v0 }
 0x2c0   :  { %v11643_v17 = vpop.f32.mrf.mxu1  ;;  %v1231_v38 = vpop.f32.mrf.mxu0 }
 0x2c1   :  { %13749 = vst [vmem:[#allocation8_spill] sm:$0xff] %v11643_v17  ;;  %v1232_v39 = vadd.f32 %v11578_v0, %v1231_v38  ;;  %9931 = vmatprep.mubr.msk.f32.mxu1 %vm695_vm2, %v1252_v21  ;;  %v1255_v28 = vmax.f32 %v1237_v5, 0.0 }
 0x2c2   :  { %v9876_v43 = vpop.f32.mrf.mxu1  ;;  %9932 = vmatmul.mubr.msk.f32.gmra.mxu1 %vm695_vm2, %v1253_v58  ;;  %v9947_v62 = vpop.f32.mrf.mxu0 }
 0x2c3   :  { %v1254_v25 = vmax.f32 %v1232_v39, 0.0  ;;  %v11654_v44 = vadd.f32 %v9876_v43, %v11580_v1  ;;  %v1553_v45 = vadd.f32 %v9947_v62, %v11650_v26 }
 0x2c4   :  { %v1547_v27 = vpop.f32.mrf.mxu0 }
 0x2c5   :  { %v1548_v0 = vadd.f32 %v11650_v26, %v1547_v27  ;;  %9934 = vmatprep.mubr.msk.f32.mxu1 %vm695_vm2, %v1254_v25  ;;  %v1627_v29 = vmax.f32 %v1553_v45, 0.0 }
 0x2c6   :  { %9935 = vmatmul.mubr.msk.f32.gmra.mxu1 %vm695_vm2, %v1255_v28  ;;  %v9950_v50 = vpop.f32.mrf.mxu0 }
 0x2c7   :  { %v1626_v51 = vmax.f32 %v1548_v0, 0.0  ;;  %v1563_v52 = vadd.f32 %v9950_v50, %v11650_v26 }
 0x2c8   :  { %v1557_v53 = vpop.f32.mrf.mxu0 }
 0x2c9   :  { %v1558_v32 = vadd.f32 %v11650_v26, %v1557_v53  ;;  %9973 = vmatprep.mubr.msk.f32.mxu1 %vm695_vm2, %v1626_v51  ;;  %v1629_v31 = vmax.f32 %v1563_v52, 0.0 }
 0x2ca   :  { %v9953_v1 = vpop.f32.mrf.mxu0  ;;  %9974 = vmatmul.mubr.msk.f32.vlgmr.msra.gmra.mxu1 %vm695_vm2, %v1627_v29 }
 0x2cb   :  { %v1628_v57 = vmax.f32 %v1558_v32, 0.0  ;;  %v1573_v34 = vadd.f32 %v9953_v1, %v11650_v26 }
 0x2cc   :  { %v1567_v40 = vpop.f32.mrf.mxu0 }
 0x2cd   :  { %v1568_v33 = vadd.f32 %v11650_v26, %v1567_v40  ;;  %9976 = vmatprep.mubr.msk.f32.mxu1 %vm695_vm2, %v1628_v57  ;;  %v1631_v55 = vmax.f32 %v1573_v34, 0.0  ;;  %v2010_v57 = vld [vmem:[%s13725_s6] sm:$0xff] }
 0x2ce   :  { %v9956_v48 = vpop.f32.mrf.mxu0  ;;  %9977 = vmatmul.mubr.msk.f32.gmra.mxu1 %vm695_vm2, %v1629_v31  ;;  %v11698_v31 = vpop.f32.mrf.mxu1 }
 0x2cf   :  { %v1630_v49 = vmax.f32 %v1568_v33, 0.0  ;;  %v1583_v60 = vadd.f32 %v9956_v48, %v11650_v26  ;;  %13750 = vst [vmem:[#allocation9_spill] sm:$0xff] %v11698_v31 }
 0x2d0   :  { %v1577_v8 = vpop.f32.mrf.mxu0 }
 0x2d1   :  { %v1578_v13 = vadd.f32 %v11650_v26, %v1577_v8  ;;  %9979 = vmatprep.mubr.msk.f32.mxu1 %vm695_vm2, %v1630_v49  ;;  %v1633_v10 = vmax.f32 %v1583_v60, 0.0 }
 0x2d2   :  { %v9959_v4 = vpop.f32.mrf.mxu0  ;;  %9980 = vmatmul.mubr.msk.f32.gmra.mxu1 %vm695_vm2, %v1631_v55 }
 0x2d3   :  { %v1632_v6 = vmax.f32 %v1578_v13, 0.0  ;;  %v1593_v35 = vadd.f32 %v9959_v4, %v11650_v26 }
 0x2d4   :  { %v1587_v12 = vpop.f32.mrf.mxu0 }
 0x2d5   :  { %v1588_v20 = vadd.f32 %v11650_v26, %v1587_v12  ;;  %9982 = vmatprep.mubr.msk.f32.mxu1 %vm695_vm2, %v1632_v6  ;;  %v1635_v18 = vmax.f32 %v1593_v35, 0.0 }
 0x2d6   :  { %v9962_v37 = vpop.f32.mrf.mxu0  ;;  %9983 = vmatmul.mubr.msk.f32.gmra.mxu1 %vm695_vm2, %v1633_v10 }
 0x2d7   :  { %v1634_v22 = vmax.f32 %v1588_v20, 0.0  ;;  %v1603_v21 = vadd.f32 %v9962_v37, %v11650_v26 }
 0x2d8   :  { %v1597_v58 = vpop.f32.mrf.mxu0 }
 0x2d9   :  { %v1598_v5 = vadd.f32 %v11650_v26, %v1597_v58  ;;  %9985 = vmatprep.mubr.msk.f32.mxu1 %vm695_vm2, %v1634_v22  ;;  %v1637_v43 = vmax.f32 %v1603_v21, 0.0 }
 0x2da   :  { %v9965_v38 = vpop.f32.mrf.mxu0  ;;  %9986 = vmatmul.mubr.msk.f32.gmra.mxu1 %vm695_vm2, %v1635_v18 }
 0x2db   :  { %v1636_v39 = vmax.f32 %v1598_v5, 0.0  ;;  %v1613_v62 = vadd.f32 %v9965_v38, %v11650_v26 }
 0x2dc   :  { %v1607_v25 = vpop.f32.mrf.mxu0 }
 0x2dd   :  { %v1608_v28 = vadd.f32 %v11650_v26, %v1607_v25  ;;  %9988 = vmatprep.mubr.msk.f32.mxu1 %vm695_vm2, %v1636_v39  ;;  %v1639_v0 = vmax.f32 %v1613_v62, 0.0 }
 0x2de   :  { %v9968_v45 = vpop.f32.mrf.mxu0  ;;  %9989 = vmatmul.mubr.msk.f32.gmra.mxu1 %vm695_vm2, %v1637_v43 }
 0x2df   :  { %v1638_v27 = vmax.f32 %v1608_v28, 0.0  ;;  %v1623_v50 = vadd.f32 %v9968_v45, %v11650_v26 }
 0x2e0   :  { %v1617_v51 = vpop.f32.mrf.mxu0 }
 0x2e1   :  { %v1618_v29 = vadd.f32 %v11650_v26, %v1617_v51  ;;  %9991 = vmatprep.mubr.msk.f32.mxu1 %vm695_vm2, %v1638_v27  ;;  %v1641_v32 = vmax.f32 %v1623_v50, 0.0  ;;  %v8492_v26 = vld [vmem:[%s13721_s9 + $0x48] sm:$0xff]  ;;  %v8472_v50 = vld [vmem:[%s13726_s8] ss:$0 sm:$0xff] }
 0x2e2   :  { %9992 = vmatmul.mubr.msk.f32.gmra.mxu1 %vm695_vm2, %v1639_v0  ;;  %v1921_v52 = vpop.f32.mrf.mxu0  ;;  %10069 = vmatprep.subr.mxu1 %v8492_v26 }
 0x2e3   :  { %v1640_v53 = vmax.f32 %v1618_v29, 0.0  ;;  %10041 = vmatmul.mubr.msk.f32.vlgmr.msra.gmra.mxu0 %vm306_vm1, %v1921_v52  ;;  %10070 = vmatpush3.msra.mxu1 %v8492_v26 }
 0x2e4   :  { %v10031_v1 = vpop.f32.mrf.mxu0  ;;  %10045 = vmatprep.mubr.msk.f32.mxu0 %vm2026_vm4, %v2010_v57 }
 0x2e5   :  { %9994 = vmatprep.mubr.msk.f32.mxu1 %vm695_vm2, %v1640_v53 }
 0x2e6   :  { %9995 = vmatmul.mubr.msk.f32.gmra.mxu1 %vm695_vm2, %v1641_v32 }
 0x36a   :  { %v11700_v34 = vpop.f32.mrf.mxu1 }
 0x36c   :  { %v11702_v40 = vpop.f32.mrf.mxu1 }
 0x36e   :  { %v11704_v33 = vpop.f32.mrf.mxu1 }
 0x370   :  { %v11706_v48 = vpop.f32.mrf.mxu1 }
 0x372   :  { %v11708_v49 = vpop.f32.mrf.mxu1 }
 0x374   :  { %v11710_v55 = vpop.f32.mrf.mxu1 }
 0x376   :  { %v11712_v60 = vpop.f32.mrf.mxu1 }
 0x378   :  { %v11714_v8 = vpop.f32.mrf.mxu1 }
 0x37a   :  { %v9927_v13 = vpop.f32.mrf.mxu1 }
 0x37b   :  { %v1461_v4 = vadd.f32 %v9927_v13, %v11622_v54 }
 0x37c   :  { %v11717_v6 = vpop.f32.mrf.mxu1 }
 0x37d   :  { %13751 = vst [vmem:[#allocation10_spill] sm:$0xff] %v11717_v6 }
 0x37e   :  { %v9930_v10 = vpop.f32.mrf.mxu1 }
 0x37f   :  { %v1463_v35 = vadd.f32 %v9930_v10, %v11631_v11  ;;  %v2012_v10 = vld [vmem:[%s13725_s6 + $0x10] sm:$0xff] }
 0x380   :  { %v11720_v12 = vpop.f32.mrf.mxu1 }
 0x381   :  { %13752 = vst [vmem:[#allocation11_spill] sm:$0xff] %v11720_v12 }
 0x382   :  { %v9933_v20 = vpop.f32.mrf.mxu1 }
 0x383   :  { %v1465_v37 = vadd.f32 %v9933_v20, %v11640_v24  ;;  %v2014_v20 = vld [vmem:[%s13725_s6 + $0x20] sm:$0xff] }
 0x384   :  { %v11723_v22 = vpop.f32.mrf.mxu1 }
 0x385   :  { %13753 = vst [vmem:[#allocation12_spill] sm:$0xff] %v11723_v22 }
 0x386   :  { %v9936_v18 = vpop.f32.mrf.mxu1 }
 0x387   :  { %v1467_v21 = vadd.f32 %v9936_v18, %v11654_v44  ;;  %v2016_v18 = vld [vmem:[%s13725_s6 + $0x30] sm:$0xff] }
 0x388   :  { %v11726_v58 = vpop.f32.mrf.mxu1 }
 0x389   :  { %13754 = vst [vmem:[#allocation13_spill] sm:$0xff] %v11726_v58 }
 0x38a   :  { %v11728_v5 = vpop.f32.mrf.mxu1 }
 0x38c   :  { %v11730_v54 = vpop.f32.mrf.mxu1 }
 0x38e   :  { %v11732_v38 = vpop.f32.mrf.mxu1 }
 0x390   :  { %v11734_v39 = vpop.f32.mrf.mxu1 }
 0x392   :  { %v11736_v11 = vpop.f32.mrf.mxu1 }
 0x394   :  { %v11738_v43 = vpop.f32.mrf.mxu1 }
 0x396   :  { %v11740_v24 = vpop.f32.mrf.mxu1 }
 0x398   :  { %v11742_v62 = vpop.f32.mrf.mxu1 }
 0x39a   :  { %v9987_v25 = vpop.f32.mrf.mxu1 }
 0x39b   :  { %v11744_v44 = vadd.f32 %v9987_v25, %v1461_v4  ;;  %v2011_v4 = vld [vmem:[%s13725_s6 + $0x8] sm:$0xff]  ;;  %v2018_v25 = vld [vmem:[%s13725_s6 + $0x40] sm:$0xff] }
 0x39c   :  { %v11746_v28 = vpop.f32.mrf.mxu1 }
 0x39d   :  { %13755 = vst [vmem:[#allocation14_spill] sm:$0xff] %v11746_v28 }
 0x39e   :  { %v9990_v45 = vpop.f32.mrf.mxu1 }
 0x39f   :  { %v11748_v27 = vadd.f32 %v9990_v45, %v1463_v35  ;;  %v2013_v35 = vld [vmem:[%s13725_s6 + $0x18] sm:$0xff]  ;;  %v2019_v45 = vld [vmem:[%s13725_s6 + $0x48] sm:$0xff] }
 0x3a0   :  { %v11750_v0 = vpop.f32.mrf.mxu1 }
 0x3a1   :  { %13756 = vst [vmem:[#allocation15_spill] sm:$0xff] %v11750_v0 }
 0x3a2   :  { %v9993_v51 = vpop.f32.mrf.mxu1 }
 0x3a3   :  { %v11755_v29 = vadd.f32 %v9993_v51, %v1465_v37  ;;  %v2005_v52 = vpop.f32.mrf.mxu0  ;;  %v2015_v37 = vld [vmem:[%s13725_s6 + $0x28] sm:$0xff]  ;;  %v2021_v51 = vld [vmem:[%s13725_s6 + $0x58] sm:$0xff] }
 0x3a4   :  { %v2006_v53 = vadd.f32 %v8472_v50, %v2005_v52  ;;  %v11757_v32 = vpop.f32.mrf.mxu1  ;;  %v2020_v50 = vld [vmem:[%s13725_s6 + $0x50] sm:$0xff]  ;;  %v2022_v52 = vld [vmem:[%s13725_s6 + $0x60] sm:$0xff] }
 0x3a5   :  { %13757 = vst [vmem:[#allocation16_spill] sm:$0xff] %v11757_v32  ;;  %v10042_v1 = vpop.f32.mrf.mxu0 }
 0x3a6   :  { %v2009_v57 = vmax.f32 %v2006_v53, 0.0  ;;  %v9996_v26 = vpop.f32.mrf.mxu1  ;;  %v2023_v53 = vld [vmem:[%s13725_s6 + $0x68] sm:$0xff]  ;;  %v2024_v1 = vld [vmem:[%s13725_s6 + $0x70] sm:$0xff] }
 0x3a7   :  { %v11759_v13 = vadd.f32 %v9996_v26, %v1467_v21  ;;  %v2017_v21 = vld [vmem:[%s13725_s6 + $0x38] sm:$0xff]  ;;  %v8491_v26 = vld [vmem:[%s13721_s9 + $0x40] sm:$0xff] }
 0x3a8   :  { %10043 = vmatprep.subr.msk.mxu0 %vm2075_vm5, %v2009_v57  ;;  %10071 = vmatprep.subr.mxu1 %v8491_v26 }
 0x3a9   :  { %10044 = vmatpush3.msk.msra.mxu0 %vm2075_vm5, %v2009_v57  ;;  %v2025_v57 = vld [vmem:[%s13725_s6 + $0x78] sm:$0xff]  ;;  %10072 = vmatpush3.msra.mxu1 %v8491_v26 }
 0x3aa   :  { %10046 = vmatmul.mubr.msk.f32.vlgmr.msra.gmra.mxu0 %vm2026_vm4, %v2011_v4 }
 0x3ab   :  { %10048 = vmatprep.mubr.msk.f32.mxu0 %vm2026_vm4, %v2012_v10 }
 0x3ae   :  { %10049 = vmatmul.mubr.msk.f32.gmra.mxu0 %vm2026_vm4, %v2013_v35 }
 0x3af   :  { %10051 = vmatprep.mubr.msk.f32.mxu0 %vm2026_vm4, %v2014_v20 }
 0x3b2   :  { %10052 = vmatmul.mubr.msk.f32.gmra.mxu0 %vm2026_vm4, %v2015_v37 }
 0x3b3   :  { %10054 = vmatprep.mubr.msk.f32.mxu0 %vm2026_vm4, %v2016_v18 }
 0x3b6   :  { %10055 = vmatmul.mubr.msk.f32.gmra.mxu0 %vm2026_vm4, %v2017_v21 }
 0x3b7   :  { %10057 = vmatprep.mubr.msk.f32.mxu0 %vm2026_vm4, %v2018_v25 }
 0x3ba   :  { %10058 = vmatmul.mubr.msk.f32.gmra.mxu0 %vm2026_vm4, %v2019_v45 }
 0x3bb   :  { %10060 = vmatprep.mubr.msk.f32.mxu0 %vm2026_vm4, %v2020_v50 }
 0x3be   :  { %10061 = vmatmul.mubr.msk.f32.gmra.mxu0 %vm2026_vm4, %v2021_v51 }
 0x3bf   :  { %10063 = vmatprep.mubr.msk.f32.mxu0 %vm2026_vm4, %v2022_v52 }
 0x3c2   :  { %10064 = vmatmul.mubr.msk.f32.gmra.mxu0 %vm2026_vm4, %v2023_v53 }
 0x3c3   :  { %10066 = vmatprep.mubr.msk.f32.mxu0 %vm2026_vm4, %v2024_v1 }
 0x3c6   :  { %10067 = vmatmul.mubr.msk.f32.gmra.mxu0 %vm2026_vm4, %v2025_v57 }
 0x46a   :  { %v10047_v4 = vpop.f32.mrf.mxu0 }
 0x46c   :  { %v2145_v10 = vpop.f32.mrf.mxu0 }
 0x46d   :  { %10073 = vmatprep.mubr.msk.f32.mxu1 %vm695_vm2, %v2145_v10  ;;  %v8512_v10 = vld [vmem:[%s13727_s12 + $0x90] sm:$0xff] }
 0x46e   :  { %v10050_v35 = vpop.f32.mrf.mxu0  ;;  %10074 = vmatmul.mubr.msk.f32.vlgmr.msra.gmra.mxu1 %vm695_vm2, %v10047_v4  ;;  %v8513_v4 = vld [vmem:[%s13727_s12 + $0x98] sm:$0xff] }
 0x46f   :  { %10145 = vmatprep.subr.mxu1 %v8513_v4 }
 0x470   :  { %v2155_v20 = vpop.f32.mrf.mxu0  ;;  %10146 = vmatpush3.msra.mxu1 %v8513_v4 }
 0x471   :  { %10076 = vmatprep.mubr.msk.f32.mxu1 %vm695_vm2, %v2155_v20  ;;  %10147 = vmatprep.subr.mxu1 %v8512_v10  ;;  %v8510_v20 = vld [vmem:[%s13727_s12 + $0x80] sm:$0xff] }
 0x472   :  { %v10053_v37 = vpop.f32.mrf.mxu0  ;;  %10077 = vmatmul.mubr.msk.f32.gmra.mxu1 %vm695_vm2, %v10050_v35  ;;  %v8511_v35 = vld [vmem:[%s13727_s12 + $0x88] sm:$0xff] }
 0x473   :  { %10148 = vmatpush3.msra.mxu1 %v8512_v10 }
 0x474   :  { %v2165_v18 = vpop.f32.mrf.mxu0  ;;  %10149 = vmatprep.subr.mxu1 %v8511_v35 }
 0x475   :  { %10079 = vmatprep.mubr.msk.f32.mxu1 %vm695_vm2, %v2165_v18  ;;  %10150 = vmatpush3.msra.mxu1 %v8511_v35  ;;  %v1004_v18 = vadd.f32 %v11589_v16, %v11555_v61  ;;  %v11872_v61 = vld [vmem:[%s13729_s10] ss:$0 sm:$0xff] }
 0x476   :  { %v10056_v21 = vpop.f32.mrf.mxu0  ;;  %10080 = vmatmul.mubr.msk.f32.gmra.mxu1 %vm695_vm2, %v10053_v37  ;;  %10151 = vmatprep.subr.mxu1 %v8510_v20  ;;  %v2480_v37 = vld [vmem:[%s13728_s11] sm:$0xff] }
 0x477   :  { %10152 = vmatpush3.msra.mxu1 %v8510_v20  ;;  %10113 = vmatprep.mubr.msk.f32.mxu0 %vm2488_vm6, %v2480_v37 }
 0x478   :  { %v2175_v25 = vpop.f32.mrf.mxu0 }
 0x479   :  { %10082 = vmatprep.mubr.msk.f32.mxu1 %vm695_vm2, %v2175_v25  ;;  %v11860_v25 = vpop.f32.mrf.mxu1 }
 0x47a   :  { %v10059_v45 = vpop.f32.mrf.mxu0  ;;  %10083 = vmatmul.mubr.msk.f32.gmra.mxu1 %vm695_vm2, %v10056_v21  ;;  %v1453_v21 = vadd.f32 %v11700_v34, %v11586_v19  ;;  %13758 = vst [vmem:[#allocation17_spill] sm:$0xff] %v11860_v25 }
 0x47c   :  { %v2185_v50 = vpop.f32.mrf.mxu0 }
 0x47d   :  { %10085 = vmatprep.mubr.msk.f32.mxu1 %vm695_vm2, %v2185_v50  ;;  %v1839_v50 = vadd.f32 %v11728_v5, %v1453_v21 }
 0x47e   :  { %v10062_v51 = vpop.f32.mrf.mxu0  ;;  %10086 = vmatmul.mubr.msk.f32.gmra.mxu1 %vm695_vm2, %v10059_v45  ;;  %v1452_v45 = vadd.f32 %v11702_v40, %v1004_v18 }
 0x480   :  { %v2195_v52 = vpop.f32.mrf.mxu0 }
 0x481   :  { %10088 = vmatprep.mubr.msk.f32.mxu1 %vm695_vm2, %v2195_v52  ;;  %v1014_v52 = vadd.f32 %v11600_v41, %v11557_v3  ;;  %v1024_v3 = vadd.f32 %v11608_v30, %v11559_v9  ;;  %v1034_v9 = vadd.f32 %v11616_v42, %v11561_v14 }
 0x482   :  { %v10065_v53 = vpop.f32.mrf.mxu0  ;;  %10089 = vmatmul.mubr.msk.f32.gmra.mxu1 %vm695_vm2, %v10062_v51 }
 0x483   :  { %v1454_v16 = vadd.f32 %v11706_v48, %v1014_v52  ;;  %v1456_v48 = vadd.f32 %v11710_v55, %v1024_v3  ;;  %v1458_v14 = vadd.f32 %v11714_v8, %v1034_v9  ;;  %v2483_v9 = vld [vmem:[%s13728_s11 + $0x18] sm:$0xff] }
 0x484   :  { %v2205_v1 = vpop.f32.mrf.mxu0 }
 0x485   :  { %10091 = vmatprep.mubr.msk.f32.mxu1 %vm695_vm2, %v2205_v1  ;;  %v1838_v1 = vadd.f32 %v11730_v54, %v1452_v45  ;;  %v1840_v5 = vadd.f32 %v11734_v39, %v1454_v16  ;;  %v1459_v39 = vadd.f32 %v11712_v60, %v11613_v56  ;;  %v1842_v20 = vadd.f32 %v11738_v43, %v1456_v48 }
 0x486   :  { %v10068_v57 = vpop.f32.mrf.mxu0  ;;  %10092 = vmatmul.mubr.msk.f32.gmra.mxu1 %vm695_vm2, %v10065_v53  ;;  %v1455_v53 = vadd.f32 %v11704_v33, %v11597_v23  ;;  %v1457_v33 = vadd.f32 %v11708_v49, %v11605_v46  ;;  %v1844_v45 = vadd.f32 %v11742_v62, %v1458_v14 }
 0x487   :  { %v1845_v42 = vadd.f32 %v11740_v24, %v1459_v39  ;;  %v2618_v39 = vld [vmem:[%s13727_s12] sm:$0xff] }
 0x488   :  { %v2215_v26 = vpop.f32.mrf.mxu0  ;;  %v1841_v34 = vadd.f32 %v11732_v38, %v1455_v53  ;;  %v1843_v38 = vadd.f32 %v11736_v11, %v1457_v33 }
 0x489   :  { %10094 = vmatprep.mubr.msk.f32.mxu1 %vm695_vm2, %v2215_v26 }
 0x48a   :  { %10095 = vmatmul.mubr.msk.f32.gmra.mxu1 %vm695_vm2, %v10068_v57 }
 0x52e   :  { %v10075_v51 = vpop.f32.mrf.mxu1 }
 0x52f   :  { %v2421_v57 = vadd.f32 %v10075_v51, %v1839_v50 }
 0x530   :  { %v2341_v19 = vpop.f32.mrf.mxu1 }
 0x531   :  { %v2420_v40 = vadd.f32 %v2341_v19, %v1838_v1  ;;  %v2444_v41 = vadd.f32 %v11872_v61, %v2421_v57 }
 0x532   :  { %v10078_v23 = vpop.f32.mrf.mxu1 }
 0x533   :  { %v2443_v54 = vadd.f32 %v11872_v61, %v2420_v40  ;;  %v2423_v26 = vadd.f32 %v10078_v23, %v1841_v34  ;;  %v11889_v30 = vmax.f32 %v2444_v41, 0.0 }
 0x534   :  { %v2351_v4 = vpop.f32.mrf.mxu1 }
 0x535   :  { %v11885_v10 = vmax.f32 %v2443_v54, 0.0  ;;  %v2422_v35 = vadd.f32 %v2351_v4, %v1840_v5  ;;  %v2446_v46 = vadd.f32 %v11872_v61, %v2423_v26 }
 0x536   :  { %v10081_v49 = vpop.f32.mrf.mxu1 }
 0x537   :  { %v2445_v55 = vadd.f32 %v11872_v61, %v2422_v35  ;;  %v2425_v37 = vadd.f32 %v10081_v49, %v1843_v38  ;;  %10153 = vmatprep.mubr.msk.f32.mxu1 %vm306_vm1, %v11885_v10  ;;  %v11904_v56 = vmax.f32 %v2446_v46, 0.0  ;;  %v2481_v38 = vld [vmem:[%s13728_s11 + $0x8] sm:$0xff]  ;;  %v2621_v35 = vld [vmem:[%s13727_s12 + $0x18] sm:$0xff]  ;;  %v2484_v49 = vld [vmem:[%s13728_s11 + $0x20] sm:$0xff] }
 0x538   :  { %v2361_v11 = vpop.f32.mrf.mxu1  ;;  %10154 = vmatmul.mubr.msk.f32.vlgmr.msra.gmra.mxu1 %vm306_vm1, %v11889_v30  ;;  %v2619_v46 = vld [vmem:[%s13727_s12 + $0x8] sm:$0xff] }
 0x539   :  { %v11902_v18 = vmax.f32 %v2445_v55, 0.0  ;;  %v2424_v21 = vadd.f32 %v2361_v11, %v1842_v20  ;;  %v2448_v60 = vadd.f32 %v11872_v61, %v2425_v37  ;;  %v2485_v20 = vld [vmem:[%s13728_s11 + $0x28] sm:$0xff]  ;;  %v2486_v55 = vld [vmem:[%s13728_s11 + $0x30] sm:$0xff]  ;;  %v2487_v37 = vld [vmem:[%s13728_s11 + $0x38] sm:$0xff] }
 0x53a   :  { %v10084_v43 = vpop.f32.mrf.mxu1 }
 0x53b   :  { %v2447_v50 = vadd.f32 %v11872_v61, %v2424_v21  ;;  %v2427_v51 = vadd.f32 %v10084_v43, %v1845_v42  ;;  %10156 = vmatprep.mubr.msk.f32.mxu1 %vm306_vm1, %v11902_v18  ;;  %v11916_v1 = vmax.f32 %v2448_v60, 0.0 }
 0x53c   :  { %v2371_v52 = vpop.f32.mrf.mxu1  ;;  %10157 = vmatmul.mubr.msk.f32.gmra.mxu1 %vm306_vm1, %v11904_v56 }
 0x53d   :  { %v11913_v8 = vmax.f32 %v2447_v50, 0.0  ;;  %v2450_v24 = vadd.f32 %v11872_v61, %v2427_v51  ;;  %v2426_v53 = vadd.f32 %v2371_v52, %v1844_v45  ;;  %v8538_v51 = vld [vmem:[%s13728_s11 + $0x40] sm:$0xff]  ;;  %v8539_v52 = vld [vmem:[%s13728_s11 + $0x48] sm:$0xff] }
 0x53e   :  { %v10087_v57 = vpop.f32.mrf.mxu1 }
 0x53f   :  { %v11918_v19 = vmax.f32 %v2450_v24, 0.0  ;;  %v2449_v62 = vadd.f32 %v11872_v61, %v2426_v53  ;;  %v2429_v16 = vadd.f32 %v10087_v57, %v11744_v44  ;;  %10159 = vmatprep.mubr.msk.f32.mxu1 %vm306_vm1, %v11913_v8  ;;  %v8540_v24 = vld [vmem:[%s13728_s11 + $0x50] sm:$0xff]  ;;  %v8541_v53 = vld [vmem:[%s13728_s11 + $0x58] sm:$0xff]  ;;  %v8542_v57 = vld [vmem:[%s13728_s11 + $0x60] sm:$0xff] }
 0x540   :  { %v11924_v34 = vpop.f32.mrf.mxu1  ;;  %10160 = vmatmul.mubr.msk.f32.gmra.mxu1 %vm306_vm1, %v11916_v1 }
 0x541   :  { %13759 = vst [vmem:[#allocation18_spill] sm:$0xff] %v11924_v34  ;;  %v11928_v40 = vmax.f32 %v2449_v62, 0.0  ;;  %v11931_v3 = vadd.f32 %v11872_v61, %v2429_v16  ;;  %10097 = vmatprep.subr.mxu0 %v11918_v19  ;;  %v8543_v62 = vld [vmem:[%s13728_s11 + $0x68] sm:$0xff]  ;;  %v8544_v16 = vld [vmem:[%s13728_s11 + $0x70] sm:$0xff] }
 0x542   :  { %v10090_v41 = vpop.f32.mrf.mxu1  ;;  %10098 = vmatpush3.msra.mxu0 %v11918_v19 }
 0x543   :  { %13760 = vst [vmem:[#allocation19_spill] sm:$0xff] %v11931_v3  ;;  %v2431_v44 = vadd.f32 %v10090_v41, %v11748_v27  ;;  %10099 = vmatprep.subr.mxu0 %v11928_v40  ;;  %10162 = vmatprep.mubr.msk.f32.mxu1 %vm306_vm1, %v11928_v40  ;;  %v8545_v41 = vld [vmem:[%s13728_s11 + $0x78] sm:$0xff] }
 0x544   :  { %v11939_v23 = vpop.f32.mrf.mxu1  ;;  %10100 = vmatpush3.msra.mxu0 %v11928_v40  ;;  %10163 = vmatmul.mubr.msk.f32.gmra.mxu1 %vm306_vm1, %v11918_v19 }
 0x545   :  { %13761 = vst [vmem:[#allocation20_spill] sm:$0xff] %v11939_v23  ;;  %v11945_v33 = vadd.f32 %v11872_v61, %v2431_v44  ;;  %10101 = vmatprep.subr.mxu0 %v11916_v1  ;;  %v8566_v44 = vld [vmem:[%s13728_s11 + $0x80] sm:$0xff] }
 0x546   :  { %v10093_v5 = vpop.f32.mrf.mxu1  ;;  %10102 = vmatpush3.msra.mxu0 %v11916_v1 }
 0x547   :  { %13762 = vst [vmem:[#allocation21_spill] sm:$0xff] %v11945_v33  ;;  %v2433_v27 = vadd.f32 %v10093_v5, %v11755_v29  ;;  %10103 = vmatprep.subr.mxu0 %v11913_v8  ;;  %v8567_v5 = vld [vmem:[%s13728_s11 + $0x88] sm:$0xff] }
 0x548   :  { %v11951_v54 = vpop.f32.mrf.mxu1  ;;  %10104 = vmatpush3.msra.mxu0 %v11913_v8 }
 0x549   :  { %13763 = vst [vmem:[#allocation22_spill] sm:$0xff] %v11951_v54  ;;  %v11955_v26 = vadd.f32 %v11872_v61, %v2433_v27  ;;  %10105 = vmatprep.subr.mxu0 %v11904_v56  ;;  %v8568_v27 = vld [vmem:[%s13728_s11 + $0x90] sm:$0xff] }
 0x54a   :  { %v10096_v4 = vpop.f32.mrf.mxu1  ;;  %10106 = vmatpush3.msra.mxu0 %v11904_v56 }
 0x54b   :  { %13764 = vst [vmem:[#allocation23_spill] sm:$0xff] %v11955_v26  ;;  %v2435_v48 = vadd.f32 %v10096_v4, %v11759_v13  ;;  %10107 = vmatprep.subr.mxu0 %v11902_v18  ;;  %v2482_v13 = vld [vmem:[%s13728_s11 + $0x10] sm:$0xff]  ;;  %v8569_v4 = vld [vmem:[%s13728_s11 + $0x98] sm:$0xff] }
 0x54c   :  { %10108 = vmatpush3.msra.mxu0 %v11902_v18 }
 0x54d   :  { %v11963_v29 = vadd.f32 %v11872_v61, %v2435_v48  ;;  %10109 = vmatprep.subr.mxu0 %v11889_v30  ;;  %v2620_v61 = vld [vmem:[%s13727_s12 + $0x10] sm:$0xff]  ;;  %v8570_v48 = vld [vmem:[%s13728_s11 + $0xa0] sm:$0xff] }
 0x54e   :  { %10110 = vmatpush3.msra.mxu0 %v11889_v30 }
 0x54f   :  { %13765 = vst [vmem:[#allocation24_spill] sm:$0xff] %v11963_v29  ;;  %10111 = vmatprep.subr.mxu0 %v11885_v10 }
 0x550   :  { %10112 = vmatpush3.msra.mxu0 %v11885_v10 }
 0x551   :  { %10114 = vmatmul.mubr.msk.f32.vlgmr.msra.gmra.mxu0 %vm2488_vm6, %v2481_v38  ;;  %10125 = vmatprep.subr.mxu0 %v2621_v35  ;;  %v8571_v38 = vld [vmem:[%s13728_s11 + $0xa8] sm:$0xff] }
 0x552   :  { %10126 = vmatpush3.msra.mxu0 %v2621_v35  ;;  %10116 = vmatprep.mubr.msk.f32.mxu0 %vm2488_vm6, %v2482_v13  ;;  %v8572_v35 = vld [vmem:[%s13728_s11 + $0xb0] sm:$0xff]  ;;  %v8573_v13 = vld [vmem:[%s13728_s11 + $0xb8] sm:$0xff] }
 0x553   :  { %10127 = vmatprep.subr.mxu0 %v2620_v61 }
 0x554   :  { %10128 = vmatpush3.msra.mxu0 %v2620_v61  ;;  %v8594_v61 = vld [vmem:[%s13728_s11 + $0xc0] sm:$0xff] }
 0x555   :  { %10117 = vmatmul.mubr.msk.f32.gmra.mxu0 %vm2488_vm6, %v2483_v9  ;;  %10129 = vmatprep.subr.mxu0 %v2619_v46  ;;  %v8595_v9 = vld [vmem:[%s13728_s11 + $0xc8] sm:$0xff] }
 0x556   :  { %10130 = vmatpush3.msra.mxu0 %v2619_v46  ;;  %10119 = vmatprep.mubr.msk.f32.mxu0 %vm2488_vm6, %v2484_v49  ;;  %v8596_v46 = vld [vmem:[%s13728_s11 + $0xd0] sm:$0xff]  ;;  %v8597_v49 = vld [vmem:[%s13728_s11 + $0xd8] sm:$0xff] }
 0x557   :  { %10131 = vmatprep.subr.mxu0 %v2618_v39 }
 0x558   :  { %10132 = vmatpush3.msra.mxu0 %v2618_v39  ;;  %v8598_v39 = vld [vmem:[%s13728_s11 + $0xe0] sm:$0xff] }
 0x559   :  { %10120 = vmatmul.mubr.msk.f32.gmra.mxu0 %vm2488_vm6, %v2485_v20  ;;  %10165 = vmatprep.subr.mxu0 %v11918_v19  ;;  %v8599_v20 = vld [vmem:[%s13728_s11 + $0xe8] sm:$0xff] }
 0x55a   :  { %10122 = vmatprep.mubr.msk.f32.mxu0 %vm2488_vm6, %v2486_v55  ;;  %v8600_v55 = vld [vmem:[%s13728_s11 + $0xf0] sm:$0xff] }
 0x55d   :  { %10123 = vmatmul.mubr.msk.f32.gmra.mxu0 %vm2488_vm6, %v2487_v37  ;;  %v8601_v37 = vld [vmem:[%s13728_s11 + $0xf8] sm:$0xff] }
 0x611   :  { %v10115_v11 = vpop.f32.mrf.mxu0 }
 0x613   :  { %v2579_v14 = vpop.f32.mrf.mxu0 }
 0x614   :  { %10133 = vmatprep.mubr.msk.f32.mxu0 %vm306_vm1, %v2579_v14  ;;  %v8623_v14 = vld [vmem:[%s13728_s11 + $0x148] sm:$0xff] }
 0x615   :  { %v10118_v42 = vpop.f32.mrf.mxu0  ;;  %10134 = vmatmul.mubr.msk.f32.vlgmr.msra.gmra.mxu0 %vm306_vm1, %v10115_v11  ;;  %v8622_v11 = vld [vmem:[%s13728_s11 + $0x140] sm:$0xff] }
 0x616   :  { %10166 = vmatpush3.msra.mxu0 %v11918_v19 }
 0x617   :  { %10167 = vmatprep.subr.mxu0 %v11928_v40  ;;  %v2589_v21 = vpop.f32.mrf.mxu0 }
 0x618   :  { %10168 = vmatpush3.msra.mxu0 %v11928_v40  ;;  %10136 = vmatprep.mubr.msk.f32.mxu0 %vm306_vm1, %v2589_v21  ;;  %v8625_v21 = vld [vmem:[%s13728_s11 + $0x158] sm:$0xff] }
 0x619   :  { %10169 = vmatprep.subr.mxu0 %v11916_v1  ;;  %v10121_v60 = vpop.f32.mrf.mxu0  ;;  %10137 = vmatmul.mubr.msk.f32.gmra.mxu0 %vm306_vm1, %v10118_v42  ;;  %v8624_v42 = vld [vmem:[%s13728_s11 + $0x150] sm:$0xff] }
 0x61a   :  { %10170 = vmatpush3.msra.mxu0 %v11916_v1 }
 0x61b   :  { %10171 = vmatprep.subr.mxu0 %v11913_v8  ;;  %v2599_v43 = vpop.f32.mrf.mxu0 }
 0x61c   :  { %10172 = vmatpush3.msra.mxu0 %v11913_v8  ;;  %10139 = vmatprep.mubr.msk.f32.mxu0 %vm306_vm1, %v2599_v43  ;;  %v8627_v43 = vld [vmem:[%s13728_s11 + $0x168] sm:$0xff] }
 0x61d   :  { %10173 = vmatprep.subr.mxu0 %v11904_v56  ;;  %v10124_v45 = vpop.f32.mrf.mxu0  ;;  %10140 = vmatmul.mubr.msk.f32.gmra.mxu0 %vm306_vm1, %v10121_v60  ;;  %v8626_v60 = vld [vmem:[%s13728_s11 + $0x160] sm:$0xff] }
 0x61e   :  { %10174 = vmatpush3.msra.mxu0 %v11904_v56 }
 0x61f   :  { %10175 = vmatprep.subr.mxu0 %v11902_v18  ;;  %v2609_v50 = vpop.f32.mrf.mxu0 }
 0x620   :  { %10176 = vmatpush3.msra.mxu0 %v11902_v18  ;;  %10142 = vmatprep.mubr.msk.f32.mxu0 %vm306_vm1, %v2609_v50  ;;  %v8629_v50 = vld [vmem:[%s13728_s11 + $0x178] sm:$0xff] }
 0x621   :  { %10177 = vmatprep.subr.mxu0 %v11889_v30  ;;  %10143 = vmatmul.mubr.msk.f32.gmra.mxu0 %vm306_vm1, %v10124_v45  ;;  %v8628_v45 = vld [vmem:[%s13728_s11 + $0x170] sm:$0xff] }
 0x622   :  { %10178 = vmatpush3.msra.mxu0 %v11889_v30  ;;  %10181 = vmatprep.mubr.msk.f32.mxu0 %vm2488_vm6, %v8538_v51  ;;  %v8650_v51 = vld [vmem:[%s13728_s11 + $0x180] sm:$0xff] }
 0x623   :  { %10179 = vmatprep.subr.mxu0 %v11885_v10 }
 0x624   :  { %10180 = vmatpush3.msra.mxu0 %v11885_v10 }
 0x625   :  { %10213 = vmatprep.subr.mxu0 %v11918_v19  ;;  %10182 = vmatmul.mubr.msk.f32.vlgmr.msra.gmra.mxu0 %vm2488_vm6, %v8539_v52  ;;  %v8557_v52 = vld [vmem:[%s13727_s12 + $0x38] sm:$0xff] }
 0x626   :  { %10214 = vmatpush3.msra.mxu0 %v11918_v19  ;;  %10184 = vmatprep.mubr.msk.f32.mxu0 %vm2488_vm6, %v8540_v24  ;;  %v8651_v24 = vld [vmem:[%s13728_s11 + $0x188] sm:$0xff] }
 0x627   :  { %10215 = vmatprep.subr.mxu0 %v11928_v40  ;;  %10193 = vmatprep.subr.mxu1 %v8557_v52 }
 0x628   :  { %10216 = vmatpush3.msra.mxu0 %v11928_v40  ;;  %10194 = vmatpush3.msra.mxu1 %v8557_v52  ;;  %v8583_v52 = vld [vmem:[%s13727_s12 + $0x48] sm:$0xff] }
 0x629   :  { %10217 = vmatprep.subr.mxu0 %v11916_v1  ;;  %10185 = vmatmul.mubr.msk.f32.gmra.mxu0 %vm2488_vm6, %v8541_v53  ;;  %v8652_v53 = vld [vmem:[%s13728_s11 + $0x190] sm:$0xff] }
 0x62a   :  { %10218 = vmatpush3.msra.mxu0 %v11916_v1  ;;  %10187 = vmatprep.mubr.msk.f32.mxu0 %vm2488_vm6, %v8542_v57  ;;  %v8556_v57 = vld [vmem:[%s13727_s12 + $0x30] sm:$0xff] }
 0x62b   :  { %10219 = vmatprep.subr.mxu0 %v11913_v8  ;;  %10195 = vmatprep.subr.mxu1 %v8556_v57 }
 0x62c   :  { %10220 = vmatpush3.msra.mxu0 %v11913_v8  ;;  %10196 = vmatpush3.msra.mxu1 %v8556_v57 }
 0x62d   :  { %10221 = vmatprep.subr.mxu0 %v11904_v56  ;;  %10188 = vmatmul.mubr.msk.f32.gmra.mxu0 %vm2488_vm6, %v8543_v62  ;;  %v8653_v62 = vld [vmem:[%s13728_s11 + $0x198] sm:$0xff] }
 0x62e   :  { %10222 = vmatpush3.msra.mxu0 %v11904_v56  ;;  %10190 = vmatprep.mubr.msk.f32.mxu0 %vm2488_vm6, %v8544_v16  ;;  %v8654_v16 = vld [vmem:[%s13728_s11 + $0x1a0] sm:$0xff] }
 0x62f   :  { %10223 = vmatprep.subr.mxu0 %v11902_v18 }
 0x630   :  { %10224 = vmatpush3.msra.mxu0 %v11902_v18 }
 0x631   :  { %10225 = vmatprep.subr.mxu0 %v11889_v30  ;;  %10191 = vmatmul.mubr.msk.f32.gmra.mxu0 %vm2488_vm6, %v8545_v41  ;;  %v8555_v41 = vld [vmem:[%s13727_s12 + $0x28] sm:$0xff] }
 0x632   :  { %10226 = vmatpush3.msra.mxu0 %v11889_v30  ;;  %10229 = vmatprep.mubr.msk.f32.mxu0 %vm2488_vm6, %v8566_v44  ;;  %v8655_v44 = vld [vmem:[%s13728_s11 + $0x1a8] sm:$0xff] }
 0x633   :  { %10227 = vmatprep.subr.mxu0 %v11885_v10  ;;  %10197 = vmatprep.subr.mxu1 %v8555_v41 }
 0x634   :  { %10228 = vmatpush3.msra.mxu0 %v11885_v10  ;;  %10198 = vmatpush3.msra.mxu1 %v8555_v41 }
 0x635   :  { %10261 = vmatprep.subr.mxu0 %v11918_v19  ;;  %10230 = vmatmul.mubr.msk.f32.vlgmr.msra.gmra.mxu0 %vm2488_vm6, %v8567_v5  ;;  %v8656_v5 = vld [vmem:[%s13728_s11 + $0x1b0] sm:$0xff] }
 0x636   :  { %10262 = vmatpush3.msra.mxu0 %v11918_v19  ;;  %10232 = vmatprep.mubr.msk.f32.mxu0 %vm2488_vm6, %v8568_v27  ;;  %v8554_v27 = vld [vmem:[%s13727_s12 + $0x20] sm:$0xff] }
 0x637   :  { %10263 = vmatprep.subr.mxu0 %v11928_v40  ;;  %10199 = vmatprep.subr.mxu1 %v8554_v27 }
 0x638   :  { %10264 = vmatpush3.msra.mxu0 %v11928_v40  ;;  %10200 = vmatpush3.msra.mxu1 %v8554_v27 }
 0x639   :  { %10265 = vmatprep.subr.mxu0 %v11916_v1  ;;  %10233 = vmatmul.mubr.msk.f32.gmra.mxu0 %vm2488_vm6, %v8569_v4  ;;  %v8657_v4 = vld [vmem:[%s13728_s11 + $0x1b8] sm:$0xff] }
 0x63a   :  { %10266 = vmatpush3.msra.mxu0 %v11916_v1  ;;  %10235 = vmatprep.mubr.msk.f32.mxu0 %vm2488_vm6, %v8570_v48  ;;  %v8678_v48 = vld [vmem:[%s13728_s11 + $0x1c0] sm:$0xff] }
 0x63b   :  { %10267 = vmatprep.subr.mxu0 %v11913_v8 }
 0x63c   :  { %10268 = vmatpush3.msra.mxu0 %v11913_v8 }
 0x63d   :  { %10269 = vmatprep.subr.mxu0 %v11904_v56  ;;  %10236 = vmatmul.mubr.msk.f32.gmra.mxu0 %vm2488_vm6, %v8571_v38  ;;  %v12288_v38 = vld [vmem:[%s13727_s12 + $0x58] sm:$0xff] }
 0x63e   :  { %10270 = vmatpush3.msra.mxu0 %v11904_v56  ;;  %10238 = vmatprep.mubr.msk.f32.mxu0 %vm2488_vm6, %v8572_v35  ;;  %v8679_v35 = vld [vmem:[%s13728_s11 + $0x1c8] sm:$0xff] }
 0x63f   :  { %10271 = vmatprep.subr.mxu0 %v11902_v18  ;;  %10241 = vmatprep.subr.mxu1 %v12288_v38 }
 0x640   :  { %10272 = vmatpush3.msra.mxu0 %v11902_v18 }
 0x641   :  { %10273 = vmatprep.subr.mxu0 %v11889_v30  ;;  %10239 = vmatmul.mubr.msk.f32.gmra.mxu0 %vm2488_vm6, %v8573_v13  ;;  %v8680_v13 = vld [vmem:[%s13728_s11 + $0x1d0] sm:$0xff] }
 0x642   :  { %10274 = vmatpush3.msra.mxu0 %v11889_v30  ;;  %10277 = vmatprep.mubr.msk.f32.mxu0 %vm2488_vm6, %v8594_v61  ;;  %v8681_v61 = vld [vmem:[%s13728_s11 + $0x1d8] sm:$0xff] }
 0x643   :  { %10275 = vmatprep.subr.mxu0 %v11885_v10 }
 0x644   :  { %10276 = vmatpush3.msra.mxu0 %v11885_v10 }
 0x645   :  { %10309 = vmatprep.subr.mxu0 %v11918_v19  ;;  %10278 = vmatmul.mubr.msk.f32.vlgmr.msra.gmra.mxu0 %vm2488_vm6, %v8595_v9  ;;  %v8682_v9 = vld [vmem:[%s13728_s11 + $0x1e0] sm:$0xff] }
 0x646   :  { %10310 = vmatpush3.msra.mxu0 %v11918_v19  ;;  %10280 = vmatprep.mubr.msk.f32.mxu0 %vm2488_vm6, %v8596_v46  ;;  %v8684_v46 = vld [vmem:[%s13728_s11 + $0x1f0] sm:$0xff] }
 0x647   :  { %10311 = vmatprep.subr.mxu0 %v11928_v40 }
 0x648   :  { %10312 = vmatpush3.msra.mxu0 %v11928_v40 }
 0x649   :  { %10313 = vmatprep.subr.mxu0 %v11916_v1  ;;  %10281 = vmatmul.mubr.msk.f32.gmra.mxu0 %vm2488_vm6, %v8597_v49  ;;  %v8712_v49 = vld [vmem:[%s13728_s11 + $0x230] sm:$0xff] }
 0x64a   :  { %10314 = vmatpush3.msra.mxu0 %v11916_v1  ;;  %10283 = vmatprep.mubr.msk.f32.mxu0 %vm2488_vm6, %v8598_v39  ;;  %v8713_v39 = vld [vmem:[%s13728_s11 + $0x238] sm:$0xff] }
 0x64b   :  { %10315 = vmatprep.subr.mxu0 %v11913_v8 }
 0x64c   :  { %10316 = vmatpush3.msra.mxu0 %v11913_v8 }
 0x64d   :  { %10317 = vmatprep.subr.mxu0 %v11904_v56  ;;  %10284 = vmatmul.mubr.msk.f32.gmra.mxu0 %vm2488_vm6, %v8599_v20 }
 0x64e   :  { %10318 = vmatpush3.msra.mxu0 %v11904_v56  ;;  %10286 = vmatprep.mubr.msk.f32.mxu0 %vm2488_vm6, %v8600_v55 }
 0x64f   :  { %10319 = vmatprep.subr.mxu0 %v11902_v18 }
 0x650   :  { %10320 = vmatpush3.msra.mxu0 %v11902_v18 }
 0x651   :  { %10321 = vmatprep.subr.mxu0 %v11889_v30  ;;  %10287 = vmatmul.mubr.msk.f32.gmra.mxu0 %vm2488_vm6, %v8601_v37 }
 0x652   :  { %10322 = vmatpush3.msra.mxu0 %v11889_v30  ;;  %10325 = vmatprep.mubr.msk.f32.mxu0 %vm2488_vm6, %v8622_v11 }
 0x653   :  { %10323 = vmatprep.subr.mxu0 %v11885_v10 }
 0x654   :  { %10324 = vmatpush3.msra.mxu0 %v11885_v10 }
 0x655   :  { %10357 = vmatprep.subr.mxu0 %v11918_v19  ;;  %10326 = vmatmul.mubr.msk.f32.vlgmr.msra.gmra.mxu0 %vm2488_vm6, %v8623_v14 }
 0x656   :  { %10358 = vmatpush3.msra.mxu0 %v11918_v19  ;;  %10328 = vmatprep.mubr.msk.f32.mxu0 %vm2488_vm6, %v8624_v42 }
 0x657   :  { %10359 = vmatprep.subr.mxu0 %v11928_v40 }
 0x658   :  { %10360 = vmatpush3.msra.mxu0 %v11928_v40 }
 0x659   :  { %10361 = vmatprep.subr.mxu0 %v11916_v1  ;;  %10329 = vmatmul.mubr.msk.f32.gmra.mxu0 %vm2488_vm6, %v8625_v21 }
 0x65a   :  { %10362 = vmatpush3.msra.mxu0 %v11916_v1  ;;  %10331 = vmatprep.mubr.msk.f32.mxu0 %vm2488_vm6, %v8626_v60 }
 0x65b   :  { %10363 = vmatprep.subr.mxu0 %v11913_v8 }
 0x65c   :  { %10364 = vmatpush3.msra.mxu0 %v11913_v8 }
 0x65d   :  { %10365 = vmatprep.subr.mxu0 %v11904_v56  ;;  %10332 = vmatmul.mubr.msk.f32.gmra.mxu0 %vm2488_vm6, %v8627_v43 }
 0x65e   :  { %10366 = vmatpush3.msra.mxu0 %v11904_v56  ;;  %10334 = vmatprep.mubr.msk.f32.mxu0 %vm2488_vm6, %v8628_v45 }
 0x65f   :  { %10367 = vmatprep.subr.mxu0 %v11902_v18 }
 0x660   :  { %10368 = vmatpush3.msra.mxu0 %v11902_v18 }
 0x661   :  { %10369 = vmatprep.subr.mxu0 %v11889_v30  ;;  %10335 = vmatmul.mubr.msk.f32.gmra.mxu0 %vm2488_vm6, %v8629_v50  ;;  %v8584_v50 = vld [vmem:[%s13727_s12 + $0x50] sm:$0xff] }
 0x662   :  { %10370 = vmatpush3.msra.mxu0 %v11889_v30  ;;  %10373 = vmatprep.mubr.msk.f32.mxu0 %vm2488_vm6, %v8650_v51 }
 0x663   :  { %10371 = vmatprep.subr.mxu0 %v11885_v10 }
 0x664   :  { %10372 = vmatpush3.msra.mxu0 %v11885_v10 }
 0x665   :  { %10405 = vmatprep.subr.mxu0 %v11918_v19  ;;  %10374 = vmatmul.mubr.msk.f32.vlgmr.msra.gmra.mxu0 %vm2488_vm6, %v8651_v24 }
 0x666   :  { %10406 = vmatpush3.msra.mxu0 %v11918_v19  ;;  %10376 = vmatprep.mubr.msk.f32.mxu0 %vm2488_vm6, %v8652_v53  ;;  %v8582_v53 = vld [vmem:[%s13727_s12 + $0x40] sm:$0xff] }
 0x667   :  { %10407 = vmatprep.subr.mxu0 %v11928_v40 }
 0x668   :  { %10408 = vmatpush3.msra.mxu0 %v11928_v40 }
 0x669   :  { %10409 = vmatprep.subr.mxu0 %v11916_v1  ;;  %10377 = vmatmul.mubr.msk.f32.gmra.mxu0 %vm2488_vm6, %v8653_v62  ;;  %v8613_v62 = vld [vmem:[%s13727_s12 + $0x78] sm:$0xff] }
 0x66a   :  { %10410 = vmatpush3.msra.mxu0 %v11916_v1  ;;  %10379 = vmatprep.mubr.msk.f32.mxu0 %vm2488_vm6, %v8654_v16 }
 0x66b   :  { %10411 = vmatprep.subr.mxu0 %v11913_v8 }
 0x66c   :  { %10412 = vmatpush3.msra.mxu0 %v11913_v8 }
 0x66d   :  { %10413 = vmatprep.subr.mxu0 %v11904_v56  ;;  %10380 = vmatmul.mubr.msk.f32.gmra.mxu0 %vm2488_vm6, %v8655_v44 }
 0x66e   :  { %10414 = vmatpush3.msra.mxu0 %v11904_v56  ;;  %10382 = vmatprep.mubr.msk.f32.mxu0 %vm2488_vm6, %v8656_v5 }
 0x66f   :  { %10415 = vmatprep.subr.mxu0 %v11902_v18 }
 0x670   :  { %10416 = vmatpush3.msra.mxu0 %v11902_v18 }
 0x671   :  { %10417 = vmatprep.subr.mxu0 %v11889_v30  ;;  %10383 = vmatmul.mubr.msk.f32.gmra.mxu0 %vm2488_vm6, %v8657_v4  ;;  %v8612_v4 = vld [vmem:[%s13727_s12 + $0x70] sm:$0xff] }
 0x672   :  { %10418 = vmatpush3.msra.mxu0 %v11889_v30  ;;  %10421 = vmatprep.mubr.msk.f32.mxu0 %vm2488_vm6, %v8678_v48 }
 0x673   :  { %10419 = vmatprep.subr.mxu0 %v11885_v10 }
 0x674   :  { %10420 = vmatpush3.msra.mxu0 %v11885_v10 }
 0x675   :  { %10453 = vmatprep.subr.mxu0 %v11918_v19  ;;  %10422 = vmatmul.mubr.msk.f32.vlgmr.msra.gmra.mxu0 %vm2488_vm6, %v8679_v35 }
 0x676   :  { %10454 = vmatpush3.msra.mxu0 %v11918_v19  ;;  %10424 = vmatprep.mubr.msk.f32.mxu0 %vm2488_vm6, %v8680_v13  ;;  %v8683_v19 = vld [vmem:[%s13728_s11 + $0x1e8] sm:$0xff]  ;;  %v8610_v13 = vld [vmem:[%s13727_s12 + $0x60] sm:$0xff] }
 0x677   :  { %10455 = vmatprep.subr.mxu0 %v11928_v40 }
 0x678   :  { %10456 = vmatpush3.msra.mxu0 %v11928_v40  ;;  %v8706_v40 = vld [vmem:[%s13728_s11 + $0x200] sm:$0xff] }
 0x679   :  { %10457 = vmatprep.subr.mxu0 %v11916_v1  ;;  %10425 = vmatmul.mubr.msk.f32.gmra.mxu0 %vm2488_vm6, %v8681_v61 }
 0x67a   :  { %10458 = vmatpush3.msra.mxu0 %v11916_v1  ;;  %10427 = vmatprep.mubr.msk.f32.mxu0 %vm2488_vm6, %v8682_v9  ;;  %v8685_v1 = vld [vmem:[%s13728_s11 + $0x1f8] sm:$0xff] }
 0x67b   :  { %10459 = vmatprep.subr.mxu0 %v11913_v8  ;;  %v8641_v9 = vld [vmem:[%s13727_s12 + $0xb8] sm:$0xff] }
 0x67c   :  { %10460 = vmatpush3.msra.mxu0 %v11913_v8  ;;  %v8708_v8 = vld [vmem:[%s13728_s11 + $0x210] sm:$0xff] }
 0x67d   :  { %10461 = vmatprep.subr.mxu0 %v11904_v56  ;;  %10428 = vmatmul.mubr.msk.f32.gmra.mxu0 %vm2488_vm6, %v8683_v19 }
 0x67e   :  { %10462 = vmatpush3.msra.mxu0 %v11904_v56  ;;  %10430 = vmatprep.mubr.msk.f32.mxu0 %vm2488_vm6, %v8684_v46  ;;  %v8707_v56 = vld [vmem:[%s13728_s11 + $0x208] sm:$0xff] }
 0x67f   :  { %10463 = vmatprep.subr.mxu0 %v11902_v18 }
 0x680   :  { %10464 = vmatpush3.msra.mxu0 %v11902_v18  ;;  %v8710_v18 = vld [vmem:[%s13728_s11 + $0x220] sm:$0xff] }
 0x681   :  { %10465 = vmatprep.subr.mxu0 %v11889_v30  ;;  %10431 = vmatmul.mubr.msk.f32.gmra.mxu0 %vm2488_vm6, %v8685_v1 }
 0x682   :  { %10466 = vmatpush3.msra.mxu0 %v11889_v30  ;;  %10469 = vmatprep.mubr.msk.f32.mxu0 %vm2488_vm6, %v8706_v40  ;;  %v8709_v30 = vld [vmem:[%s13728_s11 + $0x218] sm:$0xff] }
 0x683   :  { %10467 = vmatprep.subr.mxu0 %v11885_v10 }
 0x684   :  { %10468 = vmatpush3.msra.mxu0 %v11885_v10  ;;  %v8711_v10 = vld [vmem:[%s13728_s11 + $0x228] sm:$0xff] }
 0x685   :  { %10470 = vmatmul.mubr.msk.f32.vlgmr.msra.gmra.mxu0 %vm2488_vm6, %v8707_v56 }
 0x686   :  { %10472 = vmatprep.mubr.msk.f32.mxu0 %vm2488_vm6, %v8708_v8  ;;  %v8640_v8 = vld [vmem:[%s13727_s12 + $0xb0] sm:$0xff] }
 0x689   :  { %10473 = vmatmul.mubr.msk.f32.gmra.mxu0 %vm2488_vm6, %v8709_v30 }
 0x68a   :  { %10475 = vmatprep.mubr.msk.f32.mxu0 %vm2488_vm6, %v8710_v18  ;;  %v8639_v18 = vld [vmem:[%s13727_s12 + $0xa8] sm:$0xff] }
 0x68d   :  { %10476 = vmatmul.mubr.msk.f32.gmra.mxu0 %vm2488_vm6, %v8711_v10 }
 0x68e   :  { %10478 = vmatprep.mubr.msk.f32.mxu0 %vm2488_vm6, %v8712_v49  ;;  %v8638_v49 = vld [vmem:[%s13727_s12 + $0xa0] sm:$0xff] }
 0x691   :  { %10479 = vmatmul.mubr.msk.f32.gmra.mxu0 %vm2488_vm6, %v8713_v39 }
 0x6d5   :  { %v12371_v20 = vpop.f32.mrf.mxu0 }
 0x6d7   :  { %v12373_v55 = vpop.f32.mrf.mxu0 }
 0x6d9   :  { %v12375_v37 = vpop.f32.mrf.mxu0 }
 0x6db   :  { %v12377_v11 = vpop.f32.mrf.mxu0 }
 0x6dd   :  { %v12379_v14 = vpop.f32.mrf.mxu0 }
 0x6df   :  { %v12381_v42 = vpop.f32.mrf.mxu0 }
 0x6e1   :  { %v12383_v21 = vpop.f32.mrf.mxu0 }
 0x6e3   :  { %v12385_v60 = vpop.f32.mrf.mxu0 }
 0x6e5   :  { %v10183_v43 = vpop.f32.mrf.mxu0 }
 0x6e7   :  { %v2979_v45 = vpop.f32.mrf.mxu0 }
 0x6e8   :  { %10201 = vmatprep.mubr.msk.f32.mxu1 %vm306_vm1, %v2979_v45 }
 0x6e9   :  { %v10186_v51 = vpop.f32.mrf.mxu0  ;;  %10202 = vmatmul.mubr.msk.f32.vlgmr.msra.gmra.mxu1 %vm306_vm1, %v10183_v43  ;;  %v8669_v43 = vld [vmem:[%s13727_s12 + $0xd8] sm:$0xff] }
 0x6ea   :  { %10242 = vmatpush3.msra.mxu1 %v12288_v38  ;;  %v8611_v38 = vld [vmem:[%s13727_s12 + $0x68] sm:$0xff] }
 0x6eb   :  { %v2989_v24 = vpop.f32.mrf.mxu0  ;;  %10243 = vmatprep.subr.mxu1 %v8584_v50 }
 0x6ec   :  { %10204 = vmatprep.mubr.msk.f32.mxu1 %vm306_vm1, %v2989_v24  ;;  %10244 = vmatpush3.msra.mxu1 %v8584_v50 }
 0x6ed   :  { %v10189_v57 = vpop.f32.mrf.mxu0  ;;  %10205 = vmatmul.mubr.msk.f32.gmra.mxu1 %vm306_vm1, %v10186_v51  ;;  %10245 = vmatprep.subr.mxu1 %v8583_v52 }
 0x6ee   :  { %10246 = vmatpush3.msra.mxu1 %v8583_v52 }
 0x6ef   :  { %v2999_v16 = vpop.f32.mrf.mxu0  ;;  %10247 = vmatprep.subr.mxu1 %v8582_v53 }
 0x6f0   :  { %10207 = vmatprep.mubr.msk.f32.mxu1 %vm306_vm1, %v2999_v16  ;;  %10248 = vmatpush3.msra.mxu1 %v8582_v53  ;;  %v8668_v53 = vld [vmem:[%s13727_s12 + $0xd0] sm:$0xff] }
 0x6f1   :  { %v10192_v41 = vpop.f32.mrf.mxu0  ;;  %10208 = vmatmul.mubr.msk.f32.gmra.mxu1 %vm306_vm1, %v10189_v57  ;;  %10289 = vmatprep.subr.mxu1 %v8613_v62 }
 0x6f3   :  { %v3009_v44 = vpop.f32.mrf.mxu0 }
 0x6f4   :  { %10210 = vmatprep.mubr.msk.f32.mxu1 %vm306_vm1, %v3009_v44 }
 0x6f5   :  { %10211 = vmatmul.mubr.msk.f32.gmra.mxu1 %vm306_vm1, %v10192_v41  ;;  %v10231_v5 = vpop.f32.mrf.mxu0  ;;  %v8666_v41 = vld [vmem:[%s13727_s12 + $0xc0] sm:$0xff] }
 0x6f7   :  { %v3259_v27 = vpop.f32.mrf.mxu0 }
 0x6f8   :  { %10249 = vmatprep.mubr.msk.f32.mxu1 %vm306_vm1, %v3259_v27 }
 0x6f9   :  { %v10234_v48 = vpop.f32.mrf.mxu0  ;;  %10250 = vmatmul.mubr.msk.f32.vlgmr.msra.gmra.mxu1 %vm306_vm1, %v10231_v5  ;;  %v8697_v5 = vld [vmem:[%s13727_s12 + $0xf8] sm:$0xff] }
 0x6fa   :  { %10290 = vmatpush3.msra.mxu1 %v8613_v62  ;;  %v8667_v62 = vld [vmem:[%s13727_s12 + $0xc8] sm:$0xff] }
 0x6fb   :  { %v3269_v35 = vpop.f32.mrf.mxu0  ;;  %10291 = vmatprep.subr.mxu1 %v8612_v4 }
 0x6fc   :  { %10252 = vmatprep.mubr.msk.f32.mxu1 %vm306_vm1, %v3269_v35  ;;  %10292 = vmatpush3.msra.mxu1 %v8612_v4 }
 0x6fd   :  { %v10237_v61 = vpop.f32.mrf.mxu0  ;;  %10253 = vmatmul.mubr.msk.f32.gmra.mxu1 %vm306_vm1, %v10234_v48  ;;  %10293 = vmatprep.subr.mxu1 %v8611_v38 }
 0x6fe   :  { %10294 = vmatpush3.msra.mxu1 %v8611_v38 }
 0x6ff   :  { %v3279_v19 = vpop.f32.mrf.mxu0  ;;  %10295 = vmatprep.subr.mxu1 %v8610_v13 }
 0x700   :  { %10255 = vmatprep.mubr.msk.f32.mxu1 %vm306_vm1, %v3279_v19  ;;  %10296 = vmatpush3.msra.mxu1 %v8610_v13  ;;  %v8696_v13 = vld [vmem:[%s13727_s12 + $0xf0] sm:$0xff] }
 0x701   :  { %v10240_v46 = vpop.f32.mrf.mxu0  ;;  %10256 = vmatmul.mubr.msk.f32.gmra.mxu1 %vm306_vm1, %v10237_v61  ;;  %10337 = vmatprep.subr.mxu1 %v8641_v9 }
 0x703   :  { %v3289_v1 = vpop.f32.mrf.mxu0 }
 0x704   :  { %10258 = vmatprep.mubr.msk.f32.mxu1 %vm306_vm1, %v3289_v1 }
 0x705   :  { %10259 = vmatmul.mubr.msk.f32.gmra.mxu1 %vm306_vm1, %v10240_v46  ;;  %v10279_v40 = vpop.f32.mrf.mxu0  ;;  %v8694_v46 = vld [vmem:[%s13727_s12 + $0xe0] sm:$0xff] }
 0x707   :  { %v3539_v56 = vpop.f32.mrf.mxu0 }
 0x708   :  { %10297 = vmatprep.mubr.msk.f32.mxu1 %vm306_vm1, %v3539_v56 }
 0x709   :  { %v10282_v30 = vpop.f32.mrf.mxu0  ;;  %10298 = vmatmul.mubr.msk.f32.vlgmr.msra.gmra.mxu1 %vm306_vm1, %v10279_v40  ;;  %v8725_v40 = vld [vmem:[%s13727_s12 + $0x118] sm:$0xff] }
 0x70a   :  { %10338 = vmatpush3.msra.mxu1 %v8641_v9  ;;  %v8695_v9 = vld [vmem:[%s13727_s12 + $0xe8] sm:$0xff] }
 0x70b   :  { %v3549_v10 = vpop.f32.mrf.mxu0  ;;  %10339 = vmatprep.subr.mxu1 %v8640_v8 }
 0x70c   :  { %10300 = vmatprep.mubr.msk.f32.mxu1 %vm306_vm1, %v3549_v10  ;;  %10340 = vmatpush3.msra.mxu1 %v8640_v8 }
 0x70d   :  { %v10285_v39 = vpop.f32.mrf.mxu0  ;;  %10301 = vmatmul.mubr.msk.f32.gmra.mxu1 %vm306_vm1, %v10282_v30  ;;  %10341 = vmatprep.subr.mxu1 %v8639_v18 }
 0x70e   :  { %10342 = vmatpush3.msra.mxu1 %v8639_v18 }
 0x70f   :  { %v3559_v45 = vpop.f32.mrf.mxu0  ;;  %10343 = vmatprep.subr.mxu1 %v8638_v49 }
 0x710   :  { %10303 = vmatprep.mubr.msk.f32.mxu1 %vm306_vm1, %v3559_v45  ;;  %10344 = vmatpush3.msra.mxu1 %v8638_v49  ;;  %v8724_v49 = vld [vmem:[%s13727_s12 + $0x110] sm:$0xff] }
 0x711   :  { %v10288_v50 = vpop.f32.mrf.mxu0  ;;  %10304 = vmatmul.mubr.msk.f32.gmra.mxu1 %vm306_vm1, %v10285_v39  ;;  %10385 = vmatprep.subr.mxu1 %v8669_v43 }
 0x713   :  { %v3569_v51 = vpop.f32.mrf.mxu0 }
 0x714   :  { %10306 = vmatprep.mubr.msk.f32.mxu1 %vm306_vm1, %v3569_v51 }
 0x715   :  { %10307 = vmatmul.mubr.msk.f32.gmra.mxu1 %vm306_vm1, %v10288_v50  ;;  %v10327_v52 = vpop.f32.mrf.mxu0  ;;  %v8722_v50 = vld [vmem:[%s13727_s12 + $0x100] sm:$0xff] }
 0x717   :  { %v3819_v24 = vpop.f32.mrf.mxu0 }
 0x718   :  { %10345 = vmatprep.mubr.msk.f32.mxu1 %vm306_vm1, %v3819_v24 }
 0x719   :  { %v10330_v57 = vpop.f32.mrf.mxu0  ;;  %10346 = vmatmul.mubr.msk.f32.vlgmr.msra.gmra.mxu1 %vm306_vm1, %v10327_v52 }
 0x71a   :  { %10386 = vmatpush3.msra.mxu1 %v8669_v43  ;;  %v8723_v43 = vld [vmem:[%s13727_s12 + $0x108] sm:$0xff] }
 0x71b   :  { %v3829_v16 = vpop.f32.mrf.mxu0  ;;  %10387 = vmatprep.subr.mxu1 %v8668_v53 }
 0x71c   :  { %10348 = vmatprep.mubr.msk.f32.mxu1 %vm306_vm1, %v3829_v16  ;;  %10388 = vmatpush3.msra.mxu1 %v8668_v53 }
 0x71d   :  { %v10333_v44 = vpop.f32.mrf.mxu0  ;;  %10349 = vmatmul.mubr.msk.f32.gmra.mxu1 %vm306_vm1, %v10330_v57  ;;  %10389 = vmatprep.subr.mxu1 %v8667_v62 }
 0x71e   :  { %10390 = vmatpush3.msra.mxu1 %v8667_v62 }
 0x71f   :  { %v3839_v27 = vpop.f32.mrf.mxu0  ;;  %10391 = vmatprep.subr.mxu1 %v8666_v41 }
 0x720   :  { %10351 = vmatprep.mubr.msk.f32.mxu1 %vm306_vm1, %v3839_v27  ;;  %10392 = vmatpush3.msra.mxu1 %v8666_v41 }
 0x721   :  { %v10336_v4 = vpop.f32.mrf.mxu0  ;;  %10352 = vmatmul.mubr.msk.f32.gmra.mxu1 %vm306_vm1, %v10333_v44  ;;  %10433 = vmatprep.subr.mxu1 %v8697_v5 }
 0x723   :  { %v3849_v48 = vpop.f32.mrf.mxu0 }
 0x724   :  { %10354 = vmatprep.mubr.msk.f32.mxu1 %vm306_vm1, %v3849_v48  ;;  %v12514_v48 = vpop.f32.mrf.mxu1 }
 0x725   :  { %10355 = vmatmul.mubr.msk.f32.gmra.mxu1 %vm306_vm1, %v10336_v4  ;;  %v10375_v38 = vpop.f32.mrf.mxu0  ;;  %13766 = vst [vmem:[#allocation25_spill] sm:$0xff] %v12514_v48 }
 0x727   :  { %v4099_v35 = vpop.f32.mrf.mxu0 }
 0x728   :  { %10393 = vmatprep.mubr.msk.f32.mxu1 %vm306_vm1, %v4099_v35  ;;  %v4866_v35 = vld [vmem:[%s13730_s14 + $0x18] sm:$0xff] }
 0x729   :  { %v10378_v61 = vpop.f32.mrf.mxu0  ;;  %10394 = vmatmul.mubr.msk.f32.vlgmr.msra.gmra.mxu1 %vm306_vm1, %v10375_v38  ;;  %v10155_v38 = vpop.f32.mrf.mxu1  ;;  %10501 = vmatprep.subr.mxu0 %v4866_v35 }
 0x72a   :  { %10434 = vmatpush3.msra.mxu1 %v8697_v5  ;;  %10502 = vmatpush3.msra.mxu0 %v4866_v35 }
 0x72b   :  { %v4109_v19 = vpop.f32.mrf.mxu0  ;;  %10435 = vmatprep.subr.mxu1 %v8696_v13 }
 0x72c   :  { %10396 = vmatprep.mubr.msk.f32.mxu1 %vm306_vm1, %v4109_v19  ;;  %10436 = vmatpush3.msra.mxu1 %v8696_v13  ;;  %v4865_v13 = vld [vmem:[%s13730_s14 + $0x10] sm:$0xff]  ;;  %v4863_v19 = vld [vmem:[%s13730_s14] sm:$0xff] }
 0x72d   :  { %v10381_v1 = vpop.f32.mrf.mxu0  ;;  %10397 = vmatmul.mubr.msk.f32.gmra.mxu1 %vm306_vm1, %v10378_v61  ;;  %10437 = vmatprep.subr.mxu1 %v8695_v9  ;;  %v12522_v61 = vpop.f32.mrf.mxu1 }
 0x72e   :  { %10438 = vmatpush3.msra.mxu1 %v8695_v9  ;;  %10503 = vmatprep.subr.mxu0 %v4865_v13  ;;  %v4864_v9 = vld [vmem:[%s13730_s14 + $0x8] sm:$0xff]  ;;  %v2842_v29 = vadd.f32 %v12522_v61, %v12373_v55 }
 0x72f   :  { %v4119_v56 = vpop.f32.mrf.mxu0  ;;  %10439 = vmatprep.subr.mxu1 %v8694_v46  ;;  %10504 = vmatpush3.msra.mxu0 %v4865_v13 }
 0x730   :  { %10399 = vmatprep.mubr.msk.f32.mxu1 %vm306_vm1, %v4119_v56  ;;  %10440 = vmatpush3.msra.mxu1 %v8694_v46  ;;  %v10158_v46 = vpop.f32.mrf.mxu1 }
 0x731   :  { %v10384_v8 = vpop.f32.mrf.mxu0  ;;  %10400 = vmatmul.mubr.msk.f32.gmra.mxu1 %vm306_vm1, %v10381_v1  ;;  %10481 = vmatprep.subr.mxu1 %v8725_v40 }
 0x732   :  { %10505 = vmatprep.subr.mxu0 %v4864_v9  ;;  %v12530_v1 = vpop.f32.mrf.mxu1 }
 0x733   :  { %v4129_v30 = vpop.f32.mrf.mxu0  ;;  %10506 = vmatpush3.msra.mxu0 %v4864_v9  ;;  %v2852_v54 = vadd.f32 %v12530_v1, %v12377_v11 }
 0x734   :  { %10402 = vmatprep.mubr.msk.f32.mxu1 %vm306_vm1, %v4129_v30  ;;  %10507 = vmatprep.subr.mxu0 %v4863_v19 }
 0x735   :  { %10403 = vmatmul.mubr.msk.f32.gmra.mxu1 %vm306_vm1, %v10384_v8  ;;  %v10423_v18 = vpop.f32.mrf.mxu0  ;;  %10508 = vmatpush3.msra.mxu0 %v4863_v19 }
 0x737   :  { %v4379_v10 = vpop.f32.mrf.mxu0 }
 0x738   :  { %10441 = vmatprep.mubr.msk.f32.mxu1 %vm306_vm1, %v4379_v10 }
 0x739   :  { %v10426_v39 = vpop.f32.mrf.mxu0  ;;  %10442 = vmatmul.mubr.msk.f32.vlgmr.msra.gmra.mxu1 %vm306_vm1, %v10423_v18  ;;  %v2847_v18 = vadd.f32 %v10155_v38, %v12371_v20 }
 0x73a   :  { %10482 = vmatpush3.msra.mxu1 %v8725_v40  ;;  %v10161_v40 = vpop.f32.mrf.mxu1 }
 0x73b   :  { %v4389_v45 = vpop.f32.mrf.mxu0  ;;  %10483 = vmatprep.subr.mxu1 %v8724_v49 }
 0x73c   :  { %10444 = vmatprep.mubr.msk.f32.mxu1 %vm306_vm1, %v4389_v45  ;;  %10484 = vmatpush3.msra.mxu1 %v8724_v49  ;;  %v12532_v56 = vpop.f32.mrf.mxu1 }
 0x73d   :  { %v10429_v51 = vpop.f32.mrf.mxu0  ;;  %10445 = vmatmul.mubr.msk.f32.gmra.mxu1 %vm306_vm1, %v10426_v39  ;;  %10485 = vmatprep.subr.mxu1 %v8723_v43  ;;  %v2862_v25 = vadd.f32 %v12532_v56, %v12381_v42 }
 0x73e   :  { %10486 = vmatpush3.msra.mxu1 %v8723_v43  ;;  %v10164_v8 = vpop.f32.mrf.mxu1  ;;  %v2857_v43 = vadd.f32 %v10158_v46, %v12375_v37 }
 0x73f   :  { %v4399_v52 = vpop.f32.mrf.mxu0  ;;  %10487 = vmatprep.subr.mxu1 %v8722_v50 }
 0x740   :  { %10447 = vmatprep.mubr.msk.f32.mxu1 %vm306_vm1, %v4399_v52  ;;  %10488 = vmatpush3.msra.mxu1 %v8722_v50  ;;  %v12534_v30 = vpop.f32.mrf.mxu1  ;;  %v2867_v52 = vadd.f32 %v10161_v40, %v12379_v14 }
 0x741   :  { %v10432_v24 = vpop.f32.mrf.mxu0  ;;  %10448 = vmatmul.mubr.msk.f32.gmra.mxu1 %vm306_vm1, %v10429_v51 }
 0x743   :  { %v4409_v53 = vpop.f32.mrf.mxu0 }
 0x744   :  { %10450 = vmatprep.mubr.msk.f32.mxu1 %vm306_vm1, %v4409_v53 }
 0x745   :  { %10451 = vmatmul.mubr.msk.f32.gmra.mxu1 %vm306_vm1, %v10432_v24  ;;  %v10471_v57 = vpop.f32.mrf.mxu0 }
 0x747   :  { %v4659_v62 = vpop.f32.mrf.mxu0 }
 0x748   :  { %10489 = vmatprep.mubr.msk.f32.mxu1 %vm306_vm1, %v4659_v62  ;;  %v2877_v62 = vadd.f32 %v10164_v8, %v12383_v21 }
 0x749   :  { %v10474_v16 = vpop.f32.mrf.mxu0  ;;  %10490 = vmatmul.mubr.msk.f32.vlgmr.msra.gmra.mxu1 %vm306_vm1, %v10471_v57 }
 0x74b   :  { %v4669_v41 = vpop.f32.mrf.mxu0 }
 0x74c   :  { %10492 = vmatprep.mubr.msk.f32.mxu1 %vm306_vm1, %v4669_v41 }
 0x74d   :  { %v10477_v44 = vpop.f32.mrf.mxu0  ;;  %10493 = vmatmul.mubr.msk.f32.gmra.mxu1 %vm306_vm1, %v10474_v16 }
 0x74f   :  { %v4679_v5 = vpop.f32.mrf.mxu0 }
 0x750   :  { %10495 = vmatprep.mubr.msk.f32.mxu1 %vm306_vm1, %v4679_v5 }
 0x751   :  { %v10480_v27 = vpop.f32.mrf.mxu0  ;;  %10496 = vmatmul.mubr.msk.f32.gmra.mxu1 %vm306_vm1, %v10477_v44 }
 0x753   :  { %v4689_v4 = vpop.f32.mrf.mxu0 }
 0x754   :  { %10498 = vmatprep.mubr.msk.f32.mxu1 %vm306_vm1, %v4689_v4 }
 0x755   :  { %10499 = vmatmul.mubr.msk.f32.gmra.mxu1 %vm306_vm1, %v10480_v27 }
 0x756   :  { %5166 = vmatprep.mubr.f32.mxu1 %v13737_v47 }
 0x7a9   :  { %v10203_v10 = vpop.f32.mrf.mxu1 }
 0x7aa   :  { %v3153_v49 = vadd.f32 %v10203_v10, %v2847_v18 }
 0x7ab   :  { %v3113_v39 = vpop.f32.mrf.mxu1 }
 0x7ac   :  { %v3152_v2 = vadd.f32 %v3113_v39, %v2842_v29 }
 0x7ad   :  { %v10206_v45 = vpop.f32.mrf.mxu1 }
 0x7ae   :  { %v3155_v50 = vadd.f32 %v10206_v45, %v2857_v43 }
 0x7af   :  { %v3123_v51 = vpop.f32.mrf.mxu1 }
 0x7b0   :  { %v3154_v59 = vadd.f32 %v3123_v51, %v2852_v54 }
 0x7b1   :  { %v10209_v24 = vpop.f32.mrf.mxu1 }
 0x7b2   :  { %v3157_v53 = vadd.f32 %v10209_v24, %v2867_v52 }
 0x7b3   :  { %v3133_v57 = vpop.f32.mrf.mxu1 }
 0x7b4   :  { %v3156_v61 = vadd.f32 %v3133_v57, %v2862_v25 }
 0x7b5   :  { %v10212_v16 = vpop.f32.mrf.mxu1 }
 0x7b6   :  { %v3159_v41 = vadd.f32 %v10212_v16, %v2877_v62 }
 0x7b7   :  { %v12540_v44 = vpop.f32.mrf.mxu1 }
 0x7b9   :  { %v10251_v20 = vpop.f32.mrf.mxu1 }
 0x7ba   :  { %v3433_v5 = vadd.f32 %v10251_v20, %v3153_v49 }
 0x7bb   :  { %v3393_v27 = vpop.f32.mrf.mxu1 }
 0x7bc   :  { %v3432_v12 = vadd.f32 %v3393_v27, %v3152_v2  ;;  %v2872_v2 = vadd.f32 %v12534_v30, %v12385_v60 }
 0x7bd   :  { %v10254_v4 = vpop.f32.mrf.mxu1 }
 0x7be   :  { %v3435_v38 = vadd.f32 %v10254_v4, %v3155_v50 }
 0x7bf   :  { %v3403_v37 = vpop.f32.mrf.mxu1 }
 0x7c0   :  { %v3434_v63 = vadd.f32 %v3403_v37, %v3154_v59  ;;  %v8734_v59 = vld [vmem:[%s13731_s13] ss:$0 sm:$0xff] }
 0x7c1   :  { %v10257_v35 = vpop.f32.mrf.mxu1 }
 0x7c2   :  { %v3437_v13 = vadd.f32 %v10257_v35, %v3157_v53 }
 0x7c3   :  { %v3413_v9 = vpop.f32.mrf.mxu1 }
 0x7c4   :  { %v3436_v54 = vadd.f32 %v3413_v9, %v3156_v61  ;;  %v13769_v61 = vmov 0.0  }
 0x7c5   :  { %v10260_v19 = vpop.f32.mrf.mxu1 }
 0x7c6   :  { %v12542_v14 = vadd.f32 %v10260_v19, %v3159_v41 }
 0x7c7   :  { %v12544_v46 = vpop.f32.mrf.mxu1 }
 0x7c9   :  { %v10299_v40 = vpop.f32.mrf.mxu1 }
 0x7ca   :  { %v3713_v32 = vadd.f32 %v10299_v40, %v3433_v5 }
 0x7cb   :  { %v3673_v21 = vpop.f32.mrf.mxu1 }
 0x7cc   :  { %v3712_v48 = vadd.f32 %v3673_v21, %v3432_v12 }
 0x7cd   :  { %v10302_v8 = vpop.f32.mrf.mxu1 }
 0x7ce   :  { %v3715_v58 = vadd.f32 %v10302_v8, %v3435_v38 }
 0x7cf   :  { %v3683_v18 = vpop.f32.mrf.mxu1 }
 0x7d0   :  { %v3714_v39 = vadd.f32 %v3683_v18, %v3434_v63 }
 0x7d1   :  { %v10305_v10 = vpop.f32.mrf.mxu1 }
 0x7d2   :  { %v3717_v12 = vadd.f32 %v10305_v10, %v3437_v13 }
 0x7d3   :  { %v3693_v43 = vpop.f32.mrf.mxu1 }
 0x7d4   :  { %v3716_v63 = vadd.f32 %v3693_v43, %v3436_v54  ;;  %v5052_v54 = vld [vmem:[%s13732_s16 + $0x188] sm:$0xff] }
 0x7d5   :  { %v10308_v45 = vpop.f32.mrf.mxu1 }
 0x7d6   :  { %v3719_v30 = vadd.f32 %v10308_v45, %v12542_v14 }
 0x7d7   :  { %v12546_v49 = vpop.f32.mrf.mxu1 }
 0x7d9   :  { %v10347_v52 = vpop.f32.mrf.mxu1 }
 0x7da   :  { %v3993_v22 = vadd.f32 %v10347_v52, %v3713_v32 }
 0x7db   :  { %v3953_v50 = vpop.f32.mrf.mxu1 }
 0x7dc   :  { %v3992_v31 = vadd.f32 %v3953_v50, %v3712_v48 }
 0x7dd   :  { %v10350_v24 = vpop.f32.mrf.mxu1 }
 0x7de   :  { %v3995_v7 = vadd.f32 %v10350_v24, %v3715_v58 }
 0x7df   :  { %v3963_v62 = vpop.f32.mrf.mxu1 }
 0x7e0   :  { %v3994_v1 = vadd.f32 %v3963_v62, %v3714_v39  ;;  %v5062_v39 = vld [vmem:[%s13732_s16 + $0x1d8] sm:$0xff] }
 0x7e1   :  { %v10353_v53 = vpop.f32.mrf.mxu1  ;;  %5189 = vmatprep.subr.mxu0 %v5062_v39  ;;  %v13770_v39 = vld [vmem:[#allocation5_spill] sm:$0xff] }
 0x7e3   :  { %v3973_v16 = vpop.f32.mrf.mxu1 }
 0x7e4   :  { %v3996_v57 = vadd.f32 %v3973_v16, %v3716_v63  ;;  %v5038_v63 = vld [vmem:[%s13732_s16 + $0x118] sm:$0xff] }
 0x7e5   :  { %v12548_v20 = vpop.f32.mrf.mxu1 }
 0x7e7   :  { %v12550_v41 = vpop.f32.mrf.mxu1 }
 0x7e9   :  { %v10395_v4 = vpop.f32.mrf.mxu1 }
 0x7ea   :  { %v4273_v55 = vadd.f32 %v10395_v4, %v3993_v22  ;;  %v3158_v22 = vadd.f32 %v12540_v44, %v2872_v2  ;;  %v3999_v44 = vadd.f32 %v12548_v20, %v3719_v30  ;;  %v5061_v2 = vld [vmem:[%s13732_s16 + $0x1d0] sm:$0xff]  ;;  %v5020_v30 = vld [vmem:[%s13732_s16 + $0x88] sm:$0xff] }
 0x7eb   :  { %v4233_v35 = vpop.f32.mrf.mxu1 }
 0x7ec   :  { %v3438_v60 = vadd.f32 %v12544_v46, %v3158_v22  ;;  %v5036_v22 = vld [vmem:[%s13732_s16 + $0x108] sm:$0xff] }
 0x7ed   :  { %v10398_v19 = vpop.f32.mrf.mxu1 }
 0x7ee   :  { %v4275_v51 = vadd.f32 %v10398_v19, %v3995_v7  ;;  %v3718_v37 = vadd.f32 %v12546_v49, %v3438_v60  ;;  %v5029_v60 = vld [vmem:[%s13732_s16 + $0xd0] sm:$0xff] }
 0x7ef   :  { %v4243_v47 = vpop.f32.mrf.mxu1 }
 0x7f0   :  { %v3998_v46 = vadd.f32 %v12550_v41, %v3718_v37  ;;  %v5004_v37 = vld [vmem:[%s13732_s16 + $0x8] sm:$0xff] }
 0x7f1   :  { %v10401_v3 = vpop.f32.mrf.mxu1 }
 0x7f3   :  { %v4253_v33 = vpop.f32.mrf.mxu1 }
 0x7f4   :  { %v4276_v9 = vadd.f32 %v4253_v33, %v3996_v57  ;;  %v5022_v57 = vld [vmem:[%s13732_s16 + $0x98] sm:$0xff] }
 0x7f5   :  { %v12552_v34 = vpop.f32.mrf.mxu1 }
 0x7f6   :  { %v4279_v18 = vadd.f32 %v12552_v34, %v3999_v44  ;;  %v5006_v44 = vld [vmem:[%s13732_s16 + $0x18] sm:$0xff] }
 0x7f7   :  { %v12554_v26 = vpop.f32.mrf.mxu1 }
 0x7f8   :  { %13767 = vst [vmem:[#allocation26_spill] sm:$0xff] %v12554_v26  ;;  %v4272_v26 = vadd.f32 %v4233_v35, %v3992_v31  ;;  %v3997_v31 = vadd.f32 %v10353_v53, %v3717_v12  ;;  %v5054_v12 = vld [vmem:[%s13732_s16 + $0x198] sm:$0xff] }
 0x7f9   :  { %v10443_v28 = vpop.f32.mrf.mxu1 }
 0x7fa   :  { %v4553_v11 = vadd.f32 %v10443_v28, %v4273_v55  ;;  %v4274_v28 = vadd.f32 %v4243_v47, %v3994_v1  ;;  %v5053_v1 = vld [vmem:[%s13732_s16 + $0x190] sm:$0xff] }
 0x7fb   :  { %v4513_v23 = vpop.f32.mrf.mxu1 }
 0x7fc   :  { %v4552_v42 = vadd.f32 %v4513_v23, %v4272_v26  ;;  %v4277_v26 = vadd.f32 %v10401_v3, %v3997_v31  ;;  %v5037_v31 = vld [vmem:[%s13732_s16 + $0x110] sm:$0xff] }
 0x7fd   :  { %v10446_v6 = vpop.f32.mrf.mxu1 }
 0x7fe   :  { %v4555_v25 = vadd.f32 %v10446_v6, %v4275_v51  ;;  %v5044_v51 = vld [vmem:[%s13732_s16 + $0x148] sm:$0xff] }
 0x7ff   :  { %v4523_v0 = vpop.f32.mrf.mxu1  ;;  %v13768_v45 = vld [vmem:[#allocation26_spill] sm:$0xff] }
 0x800   :  { %v4554_v5 = vadd.f32 %v4523_v0, %v4274_v28  ;;  %v4278_v33 = vadd.f32 %v13768_v45, %v3998_v46  ;;  %v5028_v28 = vld [vmem:[%s13732_s16 + $0xc8] sm:$0xff]  ;;  %v8735_v46 = vld [vmem:[%s13733_s15] ss:$0 sm:$0xff] }
 0x801   :  { %v10449_v36 = vpop.f32.mrf.mxu1 }
 0x802   :  { %v4557_v47 = vadd.f32 %v10449_v36, %v4277_v26  ;;  %v5012_v26 = vld [vmem:[%s13732_s16 + $0x48] sm:$0xff] }
 0x803   :  { %v4533_v15 = vpop.f32.mrf.mxu1 }
 0x804   :  { %v4556_v3 = vadd.f32 %v4533_v15, %v4276_v9  ;;  %v5005_v9 = vld [vmem:[%s13732_s16 + $0x10] sm:$0xff] }
 0x805   :  { %v10452_v17 = vpop.f32.mrf.mxu1 }
 0x806   :  { %v4559_v36 = vadd.f32 %v10452_v17, %v4279_v18 }
 0x807   :  { %v4543_v29 = vpop.f32.mrf.mxu1 }
 0x808   :  { %v4558_v53 = vadd.f32 %v4543_v29, %v4278_v33  ;;  %v5060_v29 = vld [vmem:[%s13732_s16 + $0x1c8] sm:$0xff] }
 0x809   :  { %v10491_v32 = vpop.f32.mrf.mxu1  ;;  %5118 = vmatprep.subr.mxu1 %v5060_v29  ;;  %v5042_v29 = vld [vmem:[%s13732_s16 + $0x138] sm:$0xff] }
 0x80a   :  { %v4833_v56 = vadd.f32 %v10491_v32, %v4553_v11  ;;  %v5059_v11 = vld [vmem:[%s13732_s16 + $0x1c0] sm:$0xff] }
 0x80b   :  { %v4793_v58 = vpop.f32.mrf.mxu1  ;;  %5119 = vmatpush1.msra.mxu1 %v5059_v11  ;;  %v5051_v32 = vld [vmem:[%s13732_s16 + $0x180] sm:$0xff]  ;;  %v13771_v11 = vld [vmem:[#allocation9_spill] sm:$0xff] }
 0x80c   :  { %v4832_v48 = vadd.f32 %v4793_v58, %v4552_v42  ;;  %v4848_v7 = vadd.f32 %v8734_v59, %v4833_v56  ;;  %5120 = vmatprep.subr.mxu1 %v5052_v54  ;;  %v5046_v42 = vld [vmem:[%s13732_s16 + $0x158] sm:$0xff]  ;;  %v5043_v56 = vld [vmem:[%s13732_s16 + $0x140] sm:$0xff] }
 0x80d   :  { %v10494_v23 = vpop.f32.mrf.mxu1  ;;  %5121 = vmatpush1.msra.mxu1 %v5051_v32  ;;  %v5035_v58 = vld [vmem:[%s13732_s16 + $0x100] sm:$0xff]  ;;  %v5032_v32 = vld [vmem:[%s13732_s16 + $0xe8] sm:$0xff] }
 0x80e   :  { %v4847_v27 = vadd.f32 %v8734_v59, %v4832_v48  ;;  %v4835_v38 = vadd.f32 %v10494_v23, %v4555_v25  ;;  %v4856_v21 = vmax.f32 %v4848_v7, 0.0  ;;  %5122 = vmatprep.subr.mxu1 %v5044_v51  ;;  %v5030_v25 = vld [vmem:[%s13732_s16 + $0xd8] sm:$0xff]  ;;  %v5027_v48 = vld [vmem:[%s13732_s16 + $0xc0] sm:$0xff]  ;;  %v5021_v23 = vld [vmem:[%s13732_s16 + $0x90] sm:$0xff] }
 0x80f   :  { %v4803_v13 = vpop.f32.mrf.mxu1  ;;  %5123 = vmatpush1.msra.mxu1 %v5043_v56  ;;  %v5019_v7 = vld [vmem:[%s13732_s16 + $0x80] sm:$0xff]  ;;  %v13772_v51 = vld [vmem:[#allocation13_spill] sm:$0xff] }
 0x810   :  { %v4855_v6 = vmax.f32 %v4847_v27, 0.0  ;;  %v4834_v40 = vadd.f32 %v4803_v13, %v4554_v5  ;;  %v4850_v14 = vadd.f32 %v8734_v59, %v4835_v38  ;;  %5124 = vmatprep.subr.mxu1 %v5036_v22  ;;  %v5014_v5 = vld [vmem:[%s13732_s16 + $0x58] sm:$0xff]  ;;  %v5011_v27 = vld [vmem:[%s13732_s16 + $0x40] sm:$0xff]  ;;  %v5013_v38 = vld [vmem:[%s13732_s16 + $0x50] sm:$0xff] }
 0x811   :  { %v10497_v8 = vpop.f32.mrf.mxu1  ;;  %5125 = vmatpush1.msra.mxu1 %v5035_v58  ;;  %v5003_v13 = vld [vmem:[%s13732_s16] sm:$0xff]  ;;  %v5024_v22 = vld [vmem:[%s13732_s16 + $0xa8] sm:$0xff]  ;;  %v13773_v58 = vld [vmem:[#allocation4_spill] sm:$0xff] }
 0x812   :  { %v4849_v0 = vadd.f32 %v8734_v59, %v4834_v40  ;;  %v4837_v10 = vadd.f32 %v10497_v8, %v4557_v47  ;;  %10509 = vmatprep.mubr.msk.f32.mxu0 %vm306_vm1, %v4855_v6  ;;  %v4858_v50 = vmax.f32 %v4850_v14, 0.0  ;;  %5126 = vmatprep.subr.mxu1 %v5028_v28  ;;  %v5064_v47 = vld [vmem:[%s13732_s16 + $0x1e8] sm:$0xff]  ;;  %v5066_v6 = vld [vmem:[%s13732_s16 + $0x1f8] sm:$0xff]  ;;  %v5039_v54 = vld [vmem:[%s13732_s16 + $0x120] sm:$0xff] }
 0x813   :  { %v4813_v43 = vpop.f32.mrf.mxu1  ;;  %10510 = vmatmul.mubr.msk.f32.vlgmr.msra.gmra.mxu0 %vm306_vm1, %v4856_v21  ;;  %5127 = vmatpush1.msra.mxu1 %v5027_v48  ;;  %v5031_v56 = vld [vmem:[%s13732_s16 + $0xe0] sm:$0xff] }
 0x814   :  { %v4857_v49 = vmax.f32 %v4849_v0, 0.0  ;;  %v4836_v52 = vadd.f32 %v4813_v43, %v4556_v3  ;;  %v4852_v24 = vadd.f32 %v8734_v59, %v4837_v10  ;;  %5190 = vmatpush1.msra.mxu0 %v5061_v2  ;;  %5128 = vmatprep.subr.mxu1 %v5020_v30  ;;  %v1074_v2 = vadd.f32 %v13771_v11, %v13770_v39  ;;  %v5025_v30 = vld [vmem:[%s13732_s16 + $0xb0] sm:$0xff]  ;;  %v5535_v39 = vld [vmem:[%s13727_s12] sm:$0xff] }
 0x815   :  { %v10500_v62 = vpop.f32.mrf.mxu1  ;;  %5191 = vmatprep.subr.mxu0 %v5054_v12  ;;  %5129 = vmatpush1.msra.mxu1 %v5019_v7  ;;  %v5041_v12 = vld [vmem:[%s13732_s16 + $0x130] sm:$0xff]  ;;  %v5018_v7 = vld [vmem:[%s13732_s16 + $0x78] sm:$0xff]  ;;  %v13791_v11 = vld [vmem:[#allocation18_spill] sm:$0xff] }
 0x816   :  { %v4851_v16 = vadd.f32 %v8734_v59, %v4836_v52  ;;  %v4839_v20 = vadd.f32 %v10500_v62, %v4559_v36  ;;  %10512 = vmatprep.mubr.msk.f32.mxu0 %vm306_vm1, %v4857_v49  ;;  %v4860_v4 = vmax.f32 %v4852_v24, 0.0  ;;  %5192 = vmatpush1.msra.mxu0 %v5053_v1  ;;  %v5063_v62 = vld [vmem:[%s13732_s16 + $0x1e0] sm:$0xff]  ;;  %v5034_v1 = vld [vmem:[%s13732_s16 + $0xf8] sm:$0xff] }
 0x817   :  { %v4823_v15 = vpop.f32.mrf.mxu1  ;;  %10513 = vmatmul.mubr.msk.f32.gmra.mxu0 %vm306_vm1, %v4858_v50  ;;  %5193 = vmatprep.subr.mxu0 %v5046_v42  ;;  %v1466_v42 = vadd.f32 %v13772_v51, %v1074_v2  ;;  %v5398_v51 = vld [vmem:[%s13728_s11] sm:$0xff] }
 0x818   :  { %v4859_v34 = vmax.f32 %v4851_v16, 0.0  ;;  %v4838_v41 = vadd.f32 %v4823_v15, %v4558_v53  ;;  %v4854_v35 = vadd.f32 %v8734_v59, %v4839_v20  ;;  %5130 = vmatprep.subr.mxu1 %v5012_v26  ;;  %v5065_v53 = vld [vmem:[%s13732_s16 + $0x1f0] sm:$0xff]  ;;  %v5056_v20 = vld [vmem:[%s13732_s16 + $0x1a8] sm:$0xff]  ;;  %v5058_v15 = vld [vmem:[%s13732_s16 + $0x1b8] sm:$0xff] }
 0x819   :  { %5131 = vmatpush1.msra.mxu1 %v5011_v27 }
 0x81a   :  { %v4853_v19 = vadd.f32 %v8734_v59, %v4838_v41  ;;  %10515 = vmatprep.mubr.msk.f32.mxu0 %vm306_vm1, %v4859_v34  ;;  %v4862_v55 = vmax.f32 %v4854_v35, 0.0  ;;  %v5045_v59 = vld [vmem:[%s13732_s16 + $0x150] sm:$0xff]  ;;  %5132 = vmatprep.subr.mxu1 %v5004_v37  ;;  %v5055_v34 = vld [vmem:[%s13732_s16 + $0x1a0] sm:$0xff]  ;;  %v5050_v35 = vld [vmem:[%s13732_s16 + $0x178] sm:$0xff] }
 0x81b   :  { %10516 = vmatmul.mubr.msk.f32.gmra.mxu0 %vm306_vm1, %v4860_v4  ;;  %5133 = vmatpush1.msra.mxu1 %v5003_v13  ;;  %v5057_v41 = vld [vmem:[%s13732_s16 + $0x1b0] sm:$0xff]  ;;  %v5048_v4 = vld [vmem:[%s13732_s16 + $0x168] sm:$0xff]  ;;  %v5010_v13 = vld [vmem:[%s13732_s16 + $0x38] sm:$0xff] }
 0x81c   :  { %v4861_v17 = vmax.f32 %v4853_v19, 0.0  ;;  %5194 = vmatpush1.msra.mxu0 %v5045_v59  ;;  %5260 = vmatprep.subr.mxu1 %v5064_v47  ;;  %v5047_v19 = vld [vmem:[%s13732_s16 + $0x160] sm:$0xff]  ;;  %v5033_v59 = vld [vmem:[%s13732_s16 + $0xf0] sm:$0xff]  ;;  %v13779_v47 = vld [vmem:[#allocation7_spill] sm:$0xff] }
 0x81d   :  { %5195 = vmatprep.subr.mxu0 %v5038_v63  ;;  %v5026_v63 = vld [vmem:[%s13732_s16 + $0xb8] sm:$0xff]  ;;  %v5017_v37 = vld [vmem:[%s13732_s16 + $0x70] sm:$0xff] }
 0x81e   :  { %10518 = vmatprep.mubr.msk.f32.mxu0 %vm306_vm1, %v4861_v17  ;;  %5196 = vmatpush1.msra.mxu0 %v5037_v31  ;;  %v5049_v17 = vld [vmem:[%s13732_s16 + $0x170] sm:$0xff] }
 0x81f   :  { %10519 = vmatmul.mubr.msk.f32.gmra.mxu0 %vm306_vm1, %v4862_v55  ;;  %5197 = vmatprep.subr.mxu0 %v5030_v25  ;;  %v5040_v55 = vld [vmem:[%s13732_s16 + $0x128] sm:$0xff]  ;;  %v13774_v31 = vld [vmem:[#allocation8_spill] sm:$0xff]  ;;  %v13775_v25 = vld [vmem:[#allocation17_spill] sm:$0xff] }
 0x820   :  { %5237 = vmatprep.mubr.f32.mxu0 %v13769_v61  ;;  %5198 = vmatpush1.msra.mxu0 %v5029_v60  ;;  %v1064_v28 = vadd.f32 %v13774_v31, %v13773_v58  ;;  %v1852_v48 = vadd.f32 %v13775_v25, %v1466_v42  ;;  %v5023_v60 = vld [vmem:[%s13732_s16 + $0xa0] sm:$0xff]  ;;  %v5399_v58 = vld [vmem:[%s13728_s11 + $0x8] sm:$0xff]  ;;  %v8751_v31 = vld [vmem:[%s13727_s12 + $0x98] sm:$0xff] }
 0x821   :  { %5199 = vmatprep.subr.mxu0 %v5022_v57  ;;  %v5016_v57 = vld [vmem:[%s13732_s16 + $0x68] sm:$0xff]  ;;  %v8750_v25 = vld [vmem:[%s13727_s12 + $0x90] sm:$0xff] }
 0x822   :  { %5200 = vmatpush1.msra.mxu0 %v5021_v23  ;;  %v13776_v23 = vld [vmem:[#allocation12_spill] sm:$0xff] }
 0x823   :  { %5201 = vmatprep.subr.mxu0 %v5014_v5  ;;  %v1464_v26 = vadd.f32 %v13776_v23, %v1064_v28  ;;  %v13777_v5 = vld [vmem:[#allocation25_spill] sm:$0xff]  ;;  %v5400_v28 = vld [vmem:[%s13728_s11 + $0x10] sm:$0xff] }
 0x824   :  { %5202 = vmatpush1.msra.mxu0 %v5013_v38  ;;  %v2434_v27 = vadd.f32 %v13777_v5, %v1852_v48  ;;  %v5015_v38 = vld [vmem:[%s13732_s16 + $0x60] sm:$0xff]  ;;  %v5401_v48 = vld [vmem:[%s13728_s11 + $0x18] sm:$0xff]  ;;  %v5404_v23 = vld [vmem:[%s13728_s11 + $0x30] sm:$0xff] }
 0x825   :  { %5203 = vmatprep.subr.mxu0 %v5006_v44  ;;  %v5008_v44 = vld [vmem:[%s13732_s16 + $0x28] sm:$0xff] }
 0x826   :  { %5204 = vmatpush1.msra.mxu0 %v5005_v9  ;;  %v13778_v9 = vld [vmem:[#allocation3_spill] sm:$0xff] }
 0x827   :  { %5331 = vmatprep.subr.mxu0 %v5066_v6  ;;  %v1054_v6 = vadd.f32 %v13779_v47, %v13778_v9 }
 0x8d3   :  { %v10511_v40 = vpop.f32.mrf.mxu0 }
 0x8d4   :  { %v4970_v18 = vadd.f32 %v10511_v40, %v8735_v46  ;;  %v13780_v40 = vld [vmem:[#allocation16_spill] sm:$0xff] }
 0x8d5   :  { %v4964_v21 = vpop.f32.mrf.mxu0 }
 0x8d6   :  { %v4965_v14 = vadd.f32 %v8735_v46, %v4964_v21  ;;  %v5007_v21 = vld [vmem:[%s13732_s16 + $0x20] sm:$0xff] }
 0x8d7   :  { %v10514_v8 = vpop.f32.mrf.mxu0 }
 0x8d8   :  { %5067 = vxpose.xlu0.b32.start [1/8] (short) (narrow) %v4965_v14, 8  ;;  %v4980_v43 = vadd.f32 %v10514_v8, %v8735_v46  ;;  %v5009_v14 = vld [vmem:[%s13732_s16 + $0x30] sm:$0xff]  ;;  %v13781_v8 = vld [vmem:[#allocation11_spill] sm:$0xff] }
 0x8d9   :  { %v4974_v3 = vpop.f32.mrf.mxu0 }
 0x8da   :  { %v4975_v0 = vadd.f32 %v8735_v46, %v4974_v3  ;;  %v13782_v3 = vld [vmem:[#allocation22_spill] sm:$0xff] }
 0x8db   :  { %v10517_v10 = vpop.f32.mrf.mxu0 }
 0x8dc   :  { %5068 = vxpose.xlu0.b32.cont [2/8] (short) (narrow) %v4970_v18, 8  ;;  %v4990_v49 = vadd.f32 %v10517_v10, %v8735_v46  ;;  %v1462_v18 = vadd.f32 %v13781_v8, %v1054_v6  ;;  %v10951_v10 = vld [vmem:[%s13729_s10] ss:$0 sm:$0xff] }
 0x8dd   :  { %v4984_v45 = vpop.f32.mrf.mxu0 }
 0x8de   :  { %v4985_v33 = vadd.f32 %v8735_v46, %v4984_v45  ;;  %v5538_v45 = vld [vmem:[%s13727_s12 + $0x18] sm:$0xff] }
 0x8df   :  { %v10520_v36 = vpop.f32.mrf.mxu0 }
 0x8e0   :  { %5069 = vxpose.xlu0.b32.cont [3/8] (short) (narrow) %v4975_v0, 8  ;;  %v5000_v24 = vadd.f32 %v10520_v36, %v8735_v46  ;;  %v13784_v36 = vld [vmem:[#allocation6_spill] sm:$0xff] }
 0x8e1   :  { %v4994_v52 = vpop.f32.mrf.mxu0 }
 0x8e2   :  { %v4995_v50 = vadd.f32 %v8735_v46, %v4994_v52  ;;  %v1850_v46 = vadd.f32 %v13780_v40, %v1464_v26  ;;  %v13785_v52 = vld [vmem:[#allocation15_spill] sm:$0xff]  ;;  %v5405_v26 = vld [vmem:[%s13728_s11 + $0x38] sm:$0xff] }
 0x8e4   :  { %5070 = vxpose.xlu0.b32.cont [4/8] (short) (narrow) %v4980_v43, 8  ;;  %v2432_v0 = vadd.f32 %v13782_v3, %v1850_v46  ;;  %v2457_v43 = vadd.f32 %v10951_v10, %v2434_v27 }
 0x8e8   :  { %5071 = vxpose.xlu0.b32.cont [5/8] (short) (narrow) %v4985_v33, 8  ;;  %v13783_v33 = vld [vmem:[#allocation2_spill] sm:$0xff] }
 0x8ec   :  { %5072 = vxpose.xlu0.b32.cont [6/8] (short) (narrow) %v4990_v49, 8  ;;  %v1044_v49 = vadd.f32 %v13784_v36, %v13783_v33  ;;  %v8780_v33 = vld [vmem:[%s13728_s11 + $0x60] sm:$0xff]  ;;  %v8781_v36 = vld [vmem:[%s13728_s11 + $0x68] sm:$0xff] }
 0x8f0   :  { %5073 = vxpose.xlu0.b32.cont [7/8] (short) (narrow) %v4995_v50, 8  ;;  %v1848_v50 = vadd.f32 %v13785_v52, %v1462_v18  ;;  %v8783_v52 = vld [vmem:[%s13728_s11 + $0x78] sm:$0xff] }
 0x8f4   :  { %5074 = vxpose.xlu0.b32.end [8/8] (short) (narrow) %v5000_v24, 8  ;;  %v13786_v24 = vld [vmem:[#allocation24_spill] sm:$0xff] }
 0x954   :  { %v12695_v16 = vpop.trf.xlu0 }
 0x955   :  { %8744 = vmatmul.mubr.msk.f32.vlgmr.msra.gmra.mxu1 %vm2488_vm6, %v12695_v16  ;;  %8745 = vmatmul.mubr.msk.f32.vlgmr.msra.gmra.mxu0 %vm2488_vm6, %v12695_v16 }
 0x956   :  { %5261 = vmatpush1.msra.mxu1 %v5063_v62  ;;  %5332 = vmatpush1.msra.mxu0 %v5065_v53  ;;  %v12809_v62 = vmax.f32 %v13786_v24, 0.0  ;;  %v5537_v53 = vld [vmem:[%s13727_s12 + $0x10] sm:$0xff]  ;;  %v8805_v24 = vld [vmem:[%s13728_s11 + $0x88] sm:$0xff] }
 0x957   :  { %5262 = vmatprep.subr.mxu1 %v5056_v20  ;;  %5333 = vmatprep.subr.mxu0 %v5058_v15  ;;  %v13787_v20 = vld [vmem:[#allocation10_spill] sm:$0xff] }
 0x958   :  { %5263 = vmatpush1.msra.mxu1 %v5055_v34  ;;  %5334 = vmatpush1.msra.mxu0 %v5057_v41  ;;  %v1460_v15 = vadd.f32 %v13787_v20, %v1044_v49  ;;  %v13788_v34 = vld [vmem:[#allocation20_spill] sm:$0xff]  ;;  %v8807_v20 = vld [vmem:[%s13728_s11 + $0x98] sm:$0xff] }
 0x959   :  { %5264 = vmatprep.subr.mxu1 %v5048_v4  ;;  %5335 = vmatprep.subr.mxu0 %v5050_v35  ;;  %v2430_v41 = vadd.f32 %v13788_v34, %v1848_v50  ;;  %v2455_v4 = vadd.f32 %v10951_v10, %v2432_v0  ;;  %v12821_v35 = vmax.f32 %v2457_v43, 0.0  ;;  %v8776_v0 = vld [vmem:[%s13728_s11 + $0x40] sm:$0xff]  ;;  %v8778_v43 = vld [vmem:[%s13728_s11 + $0x50] sm:$0xff]  ;;  %v8809_v34 = vld [vmem:[%s13728_s11 + $0xa8] sm:$0xff] }
 0x95a   :  { %5265 = vmatpush1.msra.mxu1 %v5047_v19  ;;  %5336 = vmatpush1.msra.mxu0 %v5049_v17  ;;  %v13789_v19 = vld [vmem:[#allocation14_spill] sm:$0xff]  ;;  %v8782_v49 = vld [vmem:[%s13728_s11 + $0x70] sm:$0xff] }
 0x95b   :  { %5266 = vmatprep.subr.mxu1 %v5040_v55  ;;  %5337 = vmatprep.subr.mxu0 %v5042_v29  ;;  %v1846_v17 = vadd.f32 %v13789_v19, %v1460_v15  ;;  %v13790_v55 = vld [vmem:[#allocation23_spill] sm:$0xff]  ;;  %v8804_v50 = vld [vmem:[%s13728_s11 + $0x80] sm:$0xff] }
 0x95c   :  { %5267 = vmatpush1.msra.mxu1 %v5039_v54  ;;  %5338 = vmatpush1.msra.mxu0 %v5041_v12  ;;  %v12830_v29 = vmax.f32 %v13790_v55, 0.0  ;;  %v2453_v54 = vadd.f32 %v10951_v10, %v2430_v41  ;;  %v12838_v12 = vmax.f32 %v2455_v4, 0.0  ;;  %v8808_v15 = vld [vmem:[%s13728_s11 + $0xa0] sm:$0xff]  ;;  %v8810_v41 = vld [vmem:[%s13728_s11 + $0xb0] sm:$0xff]  ;;  %v8811_v4 = vld [vmem:[%s13728_s11 + $0xb8] sm:$0xff] }
 0x95d   :  { %5268 = vmatprep.subr.mxu1 %v5032_v32  ;;  %5339 = vmatprep.subr.mxu0 %v5034_v1  ;;  %v2428_v2 = vadd.f32 %v13791_v11, %v1846_v17  ;;  %v13792_v32 = vld [vmem:[#allocation21_spill] sm:$0xff]  ;;  %v8833_v19 = vld [vmem:[%s13728_s11 + $0xc8] sm:$0xff]  ;;  %v8834_v17 = vld [vmem:[%s13728_s11 + $0xd0] sm:$0xff] }
 0x95e   :  { %5269 = vmatpush1.msra.mxu1 %v5031_v56  ;;  %5340 = vmatpush1.msra.mxu0 %v5033_v59  ;;  %v12843_v1 = vmax.f32 %v13792_v32, 0.0  ;;  %v12850_v56 = vmax.f32 %v2453_v54, 0.0  ;;  %v13793_v59 = vld [vmem:[#allocation19_spill] sm:$0xff]  ;;  %v8835_v55 = vld [vmem:[%s13728_s11 + $0xd8] sm:$0xff]  ;;  %v8860_v32 = vld [vmem:[%s13728_s11 + $0x140] sm:$0xff] }
 0x95f   :  { %5270 = vmatprep.subr.mxu1 %v5024_v22  ;;  %5341 = vmatprep.subr.mxu0 %v5026_v63  ;;  %v2451_v42 = vadd.f32 %v10951_v10, %v2428_v2  ;;  %v12857_v22 = vmax.f32 %v13793_v59, 0.0  ;;  %v8777_v10 = vld [vmem:[%s13728_s11 + $0x48] sm:$0xff]  ;;  %v8838_v2 = vld [vmem:[%s13728_s11 + $0xf0] sm:$0xff]  ;;  %v8839_v54 = vld [vmem:[%s13728_s11 + $0xf8] sm:$0xff] }
 0x960   :  { %5271 = vmatpush1.msra.mxu1 %v5023_v60  ;;  %5342 = vmatpush1.msra.mxu0 %v5025_v30  ;;  %v8749_v60 = vld [vmem:[%s13727_s12 + $0x88] sm:$0xff]  ;;  %v5402_v30 = vld [vmem:[%s13728_s11 + $0x20] sm:$0xff]  ;;  %v8863_v59 = vld [vmem:[%s13728_s11 + $0x158] sm:$0xff] }
 0x961   :  { %5272 = vmatprep.subr.mxu1 %v5016_v57  ;;  %5343 = vmatprep.subr.mxu0 %v5018_v7  ;;  %v12861_v63 = vmax.f32 %v2451_v42, 0.0  ;;  %v8748_v57 = vld [vmem:[%s13727_s12 + $0x80] sm:$0xff]  ;;  %v5403_v7 = vld [vmem:[%s13728_s11 + $0x28] sm:$0xff]  ;;  %v8862_v42 = vld [vmem:[%s13728_s11 + $0x150] sm:$0xff] }
 0x962   :  { %5273 = vmatpush1.msra.mxu1 %v5015_v38  ;;  %5344 = vmatpush1.msra.mxu0 %v5017_v37  ;;  %v8837_v11 = vld [vmem:[%s13728_s11 + $0xe8] sm:$0xff] }
 0x963   :  { %5274 = vmatprep.subr.mxu1 %v5008_v44  ;;  %5345 = vmatprep.subr.mxu0 %v5010_v13 }
 0x964   :  { %5275 = vmatpush1.msra.mxu1 %v5007_v21  ;;  %5308 = vmatprep.mubr.f32.mxu1 %v13769_v61 }
 0x965   :  { %5346 = vmatpush1.msra.mxu0 %v5009_v14  ;;  %5379 = vmatprep.mubr.f32.mxu0 %v13769_v61 }
 0x966   :  { %8746 = vmatmul.mubr.msk.f32.vlgmr.msra.gmra.mxu1 %vm2488_vm6, %v12695_v16  ;;  %8747 = vmatmul.mubr.msk.f32.vlgmr.msra.gmra.mxu0 %vm2488_vm6, %v12695_v16  ;;  %v5536_v16 = vld [vmem:[%s13727_s12 + $0x8] sm:$0xff] }
 0x967   :  { %10521 = vmatprep.subr.mxu1 %v12809_v62  ;;  %10549 = vmatprep.subr.mxu0 %v5538_v45 }
 0x968   :  { %10522 = vmatpush3.msra.mxu1 %v12809_v62  ;;  %10550 = vmatpush3.msra.mxu0 %v5538_v45  ;;  %v8779_v45 = vld [vmem:[%s13728_s11 + $0x58] sm:$0xff] }
 0x969   :  { %10523 = vmatprep.subr.mxu1 %v12821_v35  ;;  %10551 = vmatprep.subr.mxu0 %v5537_v53 }
 0x96a   :  { %10524 = vmatpush3.msra.mxu1 %v12821_v35  ;;  %10552 = vmatpush3.msra.mxu0 %v5537_v53  ;;  %v8806_v53 = vld [vmem:[%s13728_s11 + $0x90] sm:$0xff] }
 0x96b   :  { %10525 = vmatprep.subr.mxu1 %v12830_v29  ;;  %10553 = vmatprep.subr.mxu0 %v5536_v16 }
 0x96c   :  { %10526 = vmatpush3.msra.mxu1 %v12830_v29  ;;  %10554 = vmatpush3.msra.mxu0 %v5536_v16  ;;  %v8832_v16 = vld [vmem:[%s13728_s11 + $0xc0] sm:$0xff] }
 0x96d   :  { %10527 = vmatprep.subr.mxu1 %v12838_v12  ;;  %10555 = vmatprep.subr.mxu0 %v5535_v39 }
 0x96e   :  { %10528 = vmatpush3.msra.mxu1 %v12838_v12  ;;  %10556 = vmatpush3.msra.mxu0 %v5535_v39  ;;  %v8836_v39 = vld [vmem:[%s13728_s11 + $0xe0] sm:$0xff] }
 0x96f   :  { %10529 = vmatprep.subr.mxu1 %v12843_v1  ;;  %10589 = vmatprep.subr.mxu0 %v12809_v62 }
 0x970   :  { %10530 = vmatpush3.msra.mxu1 %v12843_v1  ;;  %10537 = vmatprep.mubr.msk.f32.mxu1 %vm2488_vm6, %v5398_v51  ;;  %v8861_v51 = vld [vmem:[%s13728_s11 + $0x148] sm:$0xff] }
 0x971   :  { %10531 = vmatprep.subr.mxu1 %v12850_v56 }
 0x972   :  { %10532 = vmatpush3.msra.mxu1 %v12850_v56 }
 0x973   :  { %10533 = vmatprep.subr.mxu1 %v12857_v22 }
 0x974   :  { %10534 = vmatpush3.msra.mxu1 %v12857_v22 }
 0x975   :  { %10535 = vmatprep.subr.mxu1 %v12861_v63 }
 0x976   :  { %10536 = vmatpush3.msra.mxu1 %v12861_v63 }
 0x977   :  { %10538 = vmatmul.mubr.msk.f32.vlgmr.msra.gmra.mxu1 %vm2488_vm6, %v5399_v58  ;;  %10569 = vmatprep.subr.mxu1 %v8751_v31  ;;  %v8864_v58 = vld [vmem:[%s13728_s11 + $0x160] sm:$0xff] }
 0x978   :  { %10540 = vmatprep.mubr.msk.f32.mxu1 %vm2488_vm6, %v5400_v28  ;;  %10570 = vmatpush3.msra.mxu1 %v8751_v31  ;;  %v8865_v31 = vld [vmem:[%s13728_s11 + $0x168] sm:$0xff]  ;;  %v8866_v28 = vld [vmem:[%s13728_s11 + $0x170] sm:$0xff] }
 0x979   :  { %10571 = vmatprep.subr.mxu1 %v8750_v25 }
 0x97a   :  { %10572 = vmatpush3.msra.mxu1 %v8750_v25  ;;  %v8867_v25 = vld [vmem:[%s13728_s11 + $0x178] sm:$0xff] }
 0x97b   :  { %10541 = vmatmul.mubr.msk.f32.gmra.mxu1 %vm2488_vm6, %v5401_v48  ;;  %10573 = vmatprep.subr.mxu1 %v8749_v60  ;;  %v8888_v48 = vld [vmem:[%s13728_s11 + $0x180] sm:$0xff] }
 0x97c   :  { %10543 = vmatprep.mubr.msk.f32.mxu1 %vm2488_vm6, %v5402_v30  ;;  %10574 = vmatpush3.msra.mxu1 %v8749_v60  ;;  %v8795_v60 = vld [vmem:[%s13727_s12 + $0x38] sm:$0xff]  ;;  %v8889_v30 = vld [vmem:[%s13728_s11 + $0x188] sm:$0xff] }
 0x97d   :  { %10575 = vmatprep.subr.mxu1 %v8748_v57 }
 0x97e   :  { %10576 = vmatpush3.msra.mxu1 %v8748_v57  ;;  %v8890_v57 = vld [vmem:[%s13728_s11 + $0x190] sm:$0xff] }
 0x97f   :  { %10544 = vmatmul.mubr.msk.f32.gmra.mxu1 %vm2488_vm6, %v5403_v7  ;;  %10617 = vmatprep.subr.mxu1 %v8795_v60  ;;  %v8794_v7 = vld [vmem:[%s13727_s12 + $0x30] sm:$0xff] }
 0x980   :  { %10546 = vmatprep.mubr.msk.f32.mxu1 %vm2488_vm6, %v5404_v23  ;;  %v8891_v23 = vld [vmem:[%s13728_s11 + $0x198] sm:$0xff] }
 0x983   :  { %10547 = vmatmul.mubr.msk.f32.gmra.mxu1 %vm2488_vm6, %v5405_v26  ;;  %v8892_v26 = vld [vmem:[%s13728_s11 + $0x1a0] sm:$0xff] }
 0x984   :  { %10577 = vmatprep.mubr.msk.f32.mxu1 %vm306_vm1, %v12861_v63 }
 0x987   :  { %10578 = vmatmul.mubr.msk.f32.vlgmr.msra.gmra.mxu1 %vm306_vm1, %v12857_v22 }
 0x988   :  { %10580 = vmatprep.mubr.msk.f32.mxu1 %vm306_vm1, %v12850_v56  ;;  %10618 = vmatpush3.msra.mxu1 %v8795_v60 }
 0x989   :  { %10619 = vmatprep.subr.mxu1 %v8794_v7 }
 0x98a   :  { %10620 = vmatpush3.msra.mxu1 %v8794_v7  ;;  %v8876_v7 = vld [vmem:[%s13727_s12 + $0xa0] sm:$0xff] }
 0x98b   :  { %10581 = vmatmul.mubr.msk.f32.gmra.mxu1 %vm306_vm1, %v12843_v1 }
 0x98c   :  { %10583 = vmatprep.mubr.msk.f32.mxu1 %vm306_vm1, %v12838_v12 }
 0x98f   :  { %10584 = vmatmul.mubr.msk.f32.gmra.mxu1 %vm306_vm1, %v12830_v29 }
 0x990   :  { %10586 = vmatprep.mubr.msk.f32.mxu1 %vm306_vm1, %v12821_v35 }
 0x993   :  { %10587 = vmatmul.mubr.msk.f32.gmra.mxu1 %vm306_vm1, %v12809_v62 }
 0xa15   :  { %v5168_v5 = vpop.f32.mrf.mxu1  ;;  %v5239_v27 = vpop.f32.mrf.mxu0 }
 0xa16   :  { %5386 = vst [vmem:[%s13734_s17] sm:$0x1f] %v5168_v5  ;;  %5388 = vst [vmem:[%s13734_s17 + $0x10] sm:$0x1f] %v5239_v27  ;;  %v8793_v5 = vld [vmem:[%s13727_s12 + $0x28] sm:$0xff] }
 0xa17   :  { %v5170_v38 = vpop.f32.mrf.mxu1  ;;  %v5241_v37 = vpop.f32.mrf.mxu0  ;;  %v8893_v27 = vld [vmem:[%s13728_s11 + $0x1a8] sm:$0xff]  ;;  %10621 = vmatprep.subr.mxu1 %v8793_v5 }
 0xa18   :  { %5387 = vst [vmem:[%s13734_s17 + $0x8] sm:$0x1f] %v5170_v38  ;;  %5389 = vst [vmem:[%s13734_s17 + $0x18] sm:$0x1f] %v5241_v37  ;;  %v8894_v38 = vld [vmem:[%s13728_s11 + $0x1b0] sm:$0xff]  ;;  %10622 = vmatpush3.msra.mxu1 %v8793_v5  ;;  %v8792_v37 = vld [vmem:[%s13727_s12 + $0x20] sm:$0xff] }
 0xa19   :  { %10623 = vmatprep.subr.mxu1 %v8792_v37 }
 0xa1a   :  { %10624 = vmatpush3.msra.mxu1 %v8792_v37 }
 0xa26   :  { %v5310_v44 = vpop.f32.mrf.mxu1  ;;  %v5381_v13 = vpop.f32.mrf.mxu0 }
 0xa27   :  { %5390 = vst [vmem:[%s13734_s17 + $0x20] sm:$0x1f] %v5310_v44  ;;  %5392 = vst [vmem:[%s13734_s17 + $0x30] sm:$0x1f] %v5381_v13  ;;  %v8895_v44 = vld [vmem:[%s13728_s11 + $0x1b8] sm:$0xff]  ;;  %v8916_v13 = vld [vmem:[%s13728_s11 + $0x1c0] sm:$0xff] }
 0xa28   :  { %v5312_v9 = vpop.f32.mrf.mxu1  ;;  %v5383_v47 = vpop.f32.mrf.mxu0 }
 0xa29   :  { %5391 = vst [vmem:[%s13734_s17 + $0x28] sm:$0x1f] %v5312_v9  ;;  %5393 = vst [vmem:[%s13734_s17 + $0x38] sm:$0x1f] %v5383_v47  ;;  %v13225_v9 = vld [vmem:[%s13727_s12 + $0x58] sm:$0xff]  ;;  %v8917_v47 = vld [vmem:[%s13728_s11 + $0x1c8] sm:$0xff] }
 0xa2a   :  { %10665 = vmatprep.subr.mxu1 %v13225_v9 }
 0xa37   :  { %v10539_v6 = vpop.f32.mrf.mxu1 }
 0xa39   :  { %v5496_v40 = vpop.f32.mrf.mxu1 }
 0xa3a   :  { %10557 = vmatprep.mubr.msk.f32.mxu0 %vm306_vm1, %v5496_v40  ;;  %v8919_v40 = vld [vmem:[%s13728_s11 + $0x1d8] sm:$0xff] }
 0xa3b   :  { %v10542_v46 = vpop.f32.mrf.mxu1  ;;  %10558 = vmatmul.mubr.msk.f32.vlgmr.msra.gmra.mxu0 %vm306_vm1, %v10539_v6  ;;  %v8918_v6 = vld [vmem:[%s13728_s11 + $0x1d0] sm:$0xff] }
 0xa3c   :  { %10590 = vmatpush3.msra.mxu0 %v12809_v62 }
 0xa3d   :  { %10591 = vmatprep.subr.mxu0 %v12821_v35  ;;  %v5506_v21 = vpop.f32.mrf.mxu1 }
 0xa3e   :  { %10592 = vmatpush3.msra.mxu0 %v12821_v35  ;;  %10560 = vmatprep.mubr.msk.f32.mxu0 %vm306_vm1, %v5506_v21  ;;  %v8922_v21 = vld [vmem:[%s13728_s11 + $0x1f0] sm:$0xff] }
 0xa3f   :  { %10593 = vmatprep.subr.mxu0 %v12830_v29  ;;  %v10545_v14 = vpop.f32.mrf.mxu1  ;;  %10561 = vmatmul.mubr.msk.f32.gmra.mxu0 %vm306_vm1, %v10542_v46  ;;  %v8920_v46 = vld [vmem:[%s13728_s11 + $0x1e0] sm:$0xff] }
 0xa40   :  { %10594 = vmatpush3.msra.mxu0 %v12830_v29 }
 0xa41   :  { %10595 = vmatprep.subr.mxu0 %v12838_v12  ;;  %v5516_v8 = vpop.f32.mrf.mxu1 }
 0xa42   :  { %10596 = vmatpush3.msra.mxu0 %v12838_v12  ;;  %10563 = vmatprep.mubr.msk.f32.mxu0 %vm306_vm1, %v5516_v8  ;;  %v8951_v8 = vld [vmem:[%s13728_s11 + $0x238] sm:$0xff] }
 0xa43   :  { %10597 = vmatprep.subr.mxu0 %v12843_v1  ;;  %v10548_v18 = vpop.f32.mrf.mxu1  ;;  %10564 = vmatmul.mubr.msk.f32.gmra.mxu0 %vm306_vm1, %v10545_v14  ;;  %v8950_v14 = vld [vmem:[%s13728_s11 + $0x230] sm:$0xff] }
 0xa44   :  { %10598 = vmatpush3.msra.mxu0 %v12843_v1 }
 0xa45   :  { %10599 = vmatprep.subr.mxu0 %v12850_v56  ;;  %v5526_v3 = vpop.f32.mrf.mxu1 }
 0xa46   :  { %10600 = vmatpush3.msra.mxu0 %v12850_v56  ;;  %10566 = vmatprep.mubr.msk.f32.mxu0 %vm306_vm1, %v5526_v3 }
 0xa47   :  { %10601 = vmatprep.subr.mxu0 %v12857_v22  ;;  %10567 = vmatmul.mubr.msk.f32.gmra.mxu0 %vm306_vm1, %v10548_v18 }
 0xa48   :  { %10602 = vmatpush3.msra.mxu0 %v12857_v22  ;;  %10605 = vmatprep.mubr.msk.f32.mxu0 %vm2488_vm6, %v8776_v0 }
 0xa49   :  { %10603 = vmatprep.subr.mxu0 %v12861_v63 }
 0xa4a   :  { %10604 = vmatpush3.msra.mxu0 %v12861_v63 }
 0xa4b   :  { %10637 = vmatprep.subr.mxu0 %v12809_v62  ;;  %10606 = vmatmul.mubr.msk.f32.vlgmr.msra.gmra.mxu0 %vm2488_vm6, %v8777_v10 }
 0xa4c   :  { %10638 = vmatpush3.msra.mxu0 %v12809_v62  ;;  %10608 = vmatprep.mubr.msk.f32.mxu0 %vm2488_vm6, %v8778_v43 }
 0xa4d   :  { %10639 = vmatprep.subr.mxu0 %v12821_v35 }
 0xa4e   :  { %10640 = vmatpush3.msra.mxu0 %v12821_v35 }
 0xa4f   :  { %10641 = vmatprep.subr.mxu0 %v12830_v29  ;;  %10609 = vmatmul.mubr.msk.f32.gmra.mxu0 %vm2488_vm6, %v8779_v45 }
 0xa50   :  { %10642 = vmatpush3.msra.mxu0 %v12830_v29  ;;  %10611 = vmatprep.mubr.msk.f32.mxu0 %vm2488_vm6, %v8780_v33 }
 0xa51   :  { %10643 = vmatprep.subr.mxu0 %v12838_v12 }
 0xa52   :  { %10644 = vmatpush3.msra.mxu0 %v12838_v12 }
 0xa53   :  { %10645 = vmatprep.subr.mxu0 %v12843_v1  ;;  %10612 = vmatmul.mubr.msk.f32.gmra.mxu0 %vm2488_vm6, %v8781_v36 }
 0xa54   :  { %10646 = vmatpush3.msra.mxu0 %v12843_v1  ;;  %10614 = vmatprep.mubr.msk.f32.mxu0 %vm2488_vm6, %v8782_v49 }
 0xa55   :  { %10647 = vmatprep.subr.mxu0 %v12850_v56 }
 0xa56   :  { %10648 = vmatpush3.msra.mxu0 %v12850_v56 }
 0xa57   :  { %10649 = vmatprep.subr.mxu0 %v12857_v22  ;;  %10615 = vmatmul.mubr.msk.f32.gmra.mxu0 %vm2488_vm6, %v8783_v52 }
 0xa58   :  { %10650 = vmatpush3.msra.mxu0 %v12857_v22  ;;  %10653 = vmatprep.mubr.msk.f32.mxu0 %vm2488_vm6, %v8804_v50  ;;  %v8822_v50 = vld [vmem:[%s13727_s12 + $0x50] sm:$0xff] }
 0xa59   :  { %10651 = vmatprep.subr.mxu0 %v12861_v63 }
 0xa5a   :  { %10652 = vmatpush3.msra.mxu0 %v12861_v63 }
 0xa5b   :  { %10685 = vmatprep.subr.mxu0 %v12809_v62  ;;  %10654 = vmatmul.mubr.msk.f32.vlgmr.msra.gmra.mxu0 %vm2488_vm6, %v8805_v24 }
 0xa5c   :  { %10686 = vmatpush3.msra.mxu0 %v12809_v62  ;;  %10656 = vmatprep.mubr.msk.f32.mxu0 %vm2488_vm6, %v8806_v53  ;;  %v8821_v53 = vld [vmem:[%s13727_s12 + $0x48] sm:$0xff] }
 0xa5d   :  { %10687 = vmatprep.subr.mxu0 %v12821_v35 }
 0xa5e   :  { %10688 = vmatpush3.msra.mxu0 %v12821_v35 }
 0xa5f   :  { %10689 = vmatprep.subr.mxu0 %v12830_v29  ;;  %10657 = vmatmul.mubr.msk.f32.gmra.mxu0 %vm2488_vm6, %v8807_v20 }
 0xa60   :  { %10690 = vmatpush3.msra.mxu0 %v12830_v29  ;;  %10659 = vmatprep.mubr.msk.f32.mxu0 %vm2488_vm6, %v8808_v15  ;;  %v8820_v15 = vld [vmem:[%s13727_s12 + $0x40] sm:$0xff] }
 0xa61   :  { %10691 = vmatprep.subr.mxu0 %v12838_v12 }
 0xa62   :  { %10692 = vmatpush3.msra.mxu0 %v12838_v12 }
 0xa63   :  { %10693 = vmatprep.subr.mxu0 %v12843_v1  ;;  %10660 = vmatmul.mubr.msk.f32.gmra.mxu0 %vm2488_vm6, %v8809_v34 }
 0xa64   :  { %10694 = vmatpush3.msra.mxu0 %v12843_v1  ;;  %10662 = vmatprep.mubr.msk.f32.mxu0 %vm2488_vm6, %v8810_v41  ;;  %v8851_v41 = vld [vmem:[%s13727_s12 + $0x78] sm:$0xff] }
 0xa65   :  { %10695 = vmatprep.subr.mxu0 %v12850_v56 }
 0xa66   :  { %10696 = vmatpush3.msra.mxu0 %v12850_v56 }
 0xa67   :  { %10697 = vmatprep.subr.mxu0 %v12857_v22  ;;  %10663 = vmatmul.mubr.msk.f32.gmra.mxu0 %vm2488_vm6, %v8811_v4 }
 0xa68   :  { %10698 = vmatpush3.msra.mxu0 %v12857_v22  ;;  %10701 = vmatprep.mubr.msk.f32.mxu0 %vm2488_vm6, %v8832_v16 }
 0xa69   :  { %10699 = vmatprep.subr.mxu0 %v12861_v63 }
 0xa6a   :  { %10700 = vmatpush3.msra.mxu0 %v12861_v63 }
 0xa6b   :  { %10733 = vmatprep.subr.mxu0 %v12809_v62  ;;  %10702 = vmatmul.mubr.msk.f32.vlgmr.msra.gmra.mxu0 %vm2488_vm6, %v8833_v19 }
 0xa6c   :  { %10734 = vmatpush3.msra.mxu0 %v12809_v62  ;;  %10704 = vmatprep.mubr.msk.f32.mxu0 %vm2488_vm6, %v8834_v17 }
 0xa6d   :  { %10735 = vmatprep.subr.mxu0 %v12821_v35 }
 0xa6e   :  { %10736 = vmatpush3.msra.mxu0 %v12821_v35 }
 0xa6f   :  { %10737 = vmatprep.subr.mxu0 %v12830_v29  ;;  %10705 = vmatmul.mubr.msk.f32.gmra.mxu0 %vm2488_vm6, %v8835_v55 }
 0xa70   :  { %10738 = vmatpush3.msra.mxu0 %v12830_v29  ;;  %10707 = vmatprep.mubr.msk.f32.mxu0 %vm2488_vm6, %v8836_v39  ;;  %v8850_v39 = vld [vmem:[%s13727_s12 + $0x70] sm:$0xff] }
 0xa71   :  { %10739 = vmatprep.subr.mxu0 %v12838_v12 }
 0xa72   :  { %10740 = vmatpush3.msra.mxu0 %v12838_v12 }
 0xa73   :  { %10741 = vmatprep.subr.mxu0 %v12843_v1  ;;  %10708 = vmatmul.mubr.msk.f32.gmra.mxu0 %vm2488_vm6, %v8837_v11 }
 0xa74   :  { %10742 = vmatpush3.msra.mxu0 %v12843_v1  ;;  %10710 = vmatprep.mubr.msk.f32.mxu0 %vm2488_vm6, %v8838_v2  ;;  %v8849_v2 = vld [vmem:[%s13727_s12 + $0x68] sm:$0xff] }
 0xa75   :  { %10743 = vmatprep.subr.mxu0 %v12850_v56 }
 0xa76   :  { %10744 = vmatpush3.msra.mxu0 %v12850_v56 }
 0xa77   :  { %10745 = vmatprep.subr.mxu0 %v12857_v22  ;;  %10711 = vmatmul.mubr.msk.f32.gmra.mxu0 %vm2488_vm6, %v8839_v54 }
 0xa78   :  { %10746 = vmatpush3.msra.mxu0 %v12857_v22  ;;  %10749 = vmatprep.mubr.msk.f32.mxu0 %vm2488_vm6, %v8860_v32  ;;  %v8848_v32 = vld [vmem:[%s13727_s12 + $0x60] sm:$0xff] }
 0xa79   :  { %10747 = vmatprep.subr.mxu0 %v12861_v63 }
 0xa7a   :  { %10748 = vmatpush3.msra.mxu0 %v12861_v63 }
 0xa7b   :  { %10781 = vmatprep.subr.mxu0 %v12809_v62  ;;  %10750 = vmatmul.mubr.msk.f32.vlgmr.msra.gmra.mxu0 %vm2488_vm6, %v8861_v51 }
 0xa7c   :  { %10782 = vmatpush3.msra.mxu0 %v12809_v62  ;;  %10752 = vmatprep.mubr.msk.f32.mxu0 %vm2488_vm6, %v8862_v42  ;;  %v8879_v42 = vld [vmem:[%s13727_s12 + $0xb8] sm:$0xff] }
 0xa7d   :  { %10783 = vmatprep.subr.mxu0 %v12821_v35 }
 0xa7e   :  { %10784 = vmatpush3.msra.mxu0 %v12821_v35 }
 0xa7f   :  { %10785 = vmatprep.subr.mxu0 %v12830_v29  ;;  %10753 = vmatmul.mubr.msk.f32.gmra.mxu0 %vm2488_vm6, %v8863_v59 }
 0xa80   :  { %10786 = vmatpush3.msra.mxu0 %v12830_v29  ;;  %10755 = vmatprep.mubr.msk.f32.mxu0 %vm2488_vm6, %v8864_v58 }
 0xa81   :  { %10787 = vmatprep.subr.mxu0 %v12838_v12 }
 0xa82   :  { %10788 = vmatpush3.msra.mxu0 %v12838_v12 }
 0xa83   :  { %10789 = vmatprep.subr.mxu0 %v12843_v1  ;;  %10756 = vmatmul.mubr.msk.f32.gmra.mxu0 %vm2488_vm6, %v8865_v31 }
 0xa84   :  { %10790 = vmatpush3.msra.mxu0 %v12843_v1  ;;  %10758 = vmatprep.mubr.msk.f32.mxu0 %vm2488_vm6, %v8866_v28 }
 0xa85   :  { %10791 = vmatprep.subr.mxu0 %v12850_v56 }
 0xa86   :  { %10792 = vmatpush3.msra.mxu0 %v12850_v56 }
 0xa87   :  { %10793 = vmatprep.subr.mxu0 %v12857_v22  ;;  %10759 = vmatmul.mubr.msk.f32.gmra.mxu0 %vm2488_vm6, %v8867_v25 }
 0xa88   :  { %10794 = vmatpush3.msra.mxu0 %v12857_v22  ;;  %10797 = vmatprep.mubr.msk.f32.mxu0 %vm2488_vm6, %v8888_v48  ;;  %v8878_v48 = vld [vmem:[%s13727_s12 + $0xb0] sm:$0xff] }
 0xa89   :  { %10795 = vmatprep.subr.mxu0 %v12861_v63 }
 0xa8a   :  { %10796 = vmatpush3.msra.mxu0 %v12861_v63 }
 0xa8b   :  { %10829 = vmatprep.subr.mxu0 %v12809_v62  ;;  %10798 = vmatmul.mubr.msk.f32.vlgmr.msra.gmra.mxu0 %vm2488_vm6, %v8889_v30  ;;  %v8877_v30 = vld [vmem:[%s13727_s12 + $0xa8] sm:$0xff] }
 0xa8c   :  { %10830 = vmatpush3.msra.mxu0 %v12809_v62  ;;  %10800 = vmatprep.mubr.msk.f32.mxu0 %vm2488_vm6, %v8890_v57 }
 0xa8d   :  { %10831 = vmatprep.subr.mxu0 %v12821_v35 }
 0xa8e   :  { %10832 = vmatpush3.msra.mxu0 %v12821_v35 }
 0xa8f   :  { %10833 = vmatprep.subr.mxu0 %v12830_v29  ;;  %10801 = vmatmul.mubr.msk.f32.gmra.mxu0 %vm2488_vm6, %v8891_v23 }
 0xa90   :  { %10834 = vmatpush3.msra.mxu0 %v12830_v29  ;;  %10803 = vmatprep.mubr.msk.f32.mxu0 %vm2488_vm6, %v8892_v26  ;;  %v8907_v26 = vld [vmem:[%s13727_s12 + $0xd8] sm:$0xff] }
 0xa91   :  { %10835 = vmatprep.subr.mxu0 %v12838_v12 }
 0xa92   :  { %10836 = vmatpush3.msra.mxu0 %v12838_v12 }
 0xa93   :  { %10837 = vmatprep.subr.mxu0 %v12843_v1  ;;  %10804 = vmatmul.mubr.msk.f32.gmra.mxu0 %vm2488_vm6, %v8893_v27 }
 0xa94   :  { %10838 = vmatpush3.msra.mxu0 %v12843_v1  ;;  %10806 = vmatprep.mubr.msk.f32.mxu0 %vm2488_vm6, %v8894_v38 }
 0xa95   :  { %10839 = vmatprep.subr.mxu0 %v12850_v56 }
 0xa96   :  { %10840 = vmatpush3.msra.mxu0 %v12850_v56 }
 0xa97   :  { %10841 = vmatprep.subr.mxu0 %v12857_v22  ;;  %10807 = vmatmul.mubr.msk.f32.gmra.mxu0 %vm2488_vm6, %v8895_v44 }
 0xa98   :  { %10842 = vmatpush3.msra.mxu0 %v12857_v22  ;;  %10845 = vmatprep.mubr.msk.f32.mxu0 %vm2488_vm6, %v8916_v13  ;;  %v8906_v13 = vld [vmem:[%s13727_s12 + $0xd0] sm:$0xff] }
 0xa99   :  { %10843 = vmatprep.subr.mxu0 %v12861_v63 }
 0xa9a   :  { %10844 = vmatpush3.msra.mxu0 %v12861_v63 }
 0xa9b   :  { %10877 = vmatprep.subr.mxu0 %v12809_v62  ;;  %10846 = vmatmul.mubr.msk.f32.vlgmr.msra.gmra.mxu0 %vm2488_vm6, %v8917_v47  ;;  %v8905_v47 = vld [vmem:[%s13727_s12 + $0xc8] sm:$0xff] }
 0xa9c   :  { %10878 = vmatpush3.msra.mxu0 %v12809_v62  ;;  %10848 = vmatprep.mubr.msk.f32.mxu0 %vm2488_vm6, %v8918_v6  ;;  %v8921_v62 = vld [vmem:[%s13728_s11 + $0x1e8] sm:$0xff] }
 0xa9d   :  { %10879 = vmatprep.subr.mxu0 %v12821_v35 }
 0xa9e   :  { %10880 = vmatpush3.msra.mxu0 %v12821_v35  ;;  %v8923_v35 = vld [vmem:[%s13728_s11 + $0x1f8] sm:$0xff] }
 0xa9f   :  { %10881 = vmatprep.subr.mxu0 %v12830_v29  ;;  %10849 = vmatmul.mubr.msk.f32.gmra.mxu0 %vm2488_vm6, %v8919_v40  ;;  %v8904_v40 = vld [vmem:[%s13727_s12 + $0xc0] sm:$0xff] }
 0xaa0   :  { %10882 = vmatpush3.msra.mxu0 %v12830_v29  ;;  %10851 = vmatprep.mubr.msk.f32.mxu0 %vm2488_vm6, %v8920_v46  ;;  %v8944_v29 = vld [vmem:[%s13728_s11 + $0x200] sm:$0xff] }
 0xaa1   :  { %10883 = vmatprep.subr.mxu0 %v12838_v12 }
 0xaa2   :  { %10884 = vmatpush3.msra.mxu0 %v12838_v12  ;;  %v8945_v12 = vld [vmem:[%s13728_s11 + $0x208] sm:$0xff] }
 0xaa3   :  { %10885 = vmatprep.subr.mxu0 %v12843_v1  ;;  %10852 = vmatmul.mubr.msk.f32.gmra.mxu0 %vm2488_vm6, %v8921_v62  ;;  %v8935_v62 = vld [vmem:[%s13727_s12 + $0xf8] sm:$0xff] }
 0xaa4   :  { %10886 = vmatpush3.msra.mxu0 %v12843_v1  ;;  %10854 = vmatprep.mubr.msk.f32.mxu0 %vm2488_vm6, %v8922_v21  ;;  %v8946_v1 = vld [vmem:[%s13728_s11 + $0x210] sm:$0xff] }
 0xaa5   :  { %10887 = vmatprep.subr.mxu0 %v12850_v56 }
 0xaa6   :  { %10888 = vmatpush3.msra.mxu0 %v12850_v56  ;;  %v8947_v56 = vld [vmem:[%s13728_s11 + $0x218] sm:$0xff] }
 0xaa7   :  { %10889 = vmatprep.subr.mxu0 %v12857_v22  ;;  %10855 = vmatmul.mubr.msk.f32.gmra.mxu0 %vm2488_vm6, %v8923_v35 }
 0xaa8   :  { %10890 = vmatpush3.msra.mxu0 %v12857_v22  ;;  %10893 = vmatprep.mubr.msk.f32.mxu0 %vm2488_vm6, %v8944_v29  ;;  %v8948_v22 = vld [vmem:[%s13728_s11 + $0x220] sm:$0xff] }
 0xaa9   :  { %10891 = vmatprep.subr.mxu0 %v12861_v63 }
 0xaaa   :  { %10892 = vmatpush3.msra.mxu0 %v12861_v63  ;;  %v8949_v63 = vld [vmem:[%s13728_s11 + $0x228] sm:$0xff] }
 0xaab   :  { %10894 = vmatmul.mubr.msk.f32.vlgmr.msra.gmra.mxu0 %vm2488_vm6, %v8945_v12 }
 0xaac   :  { %10896 = vmatprep.mubr.msk.f32.mxu0 %vm2488_vm6, %v8946_v1 }
 0xaaf   :  { %10897 = vmatmul.mubr.msk.f32.gmra.mxu0 %vm2488_vm6, %v8947_v56  ;;  %v8934_v56 = vld [vmem:[%s13727_s12 + $0xf0] sm:$0xff] }
 0xab0   :  { %10899 = vmatprep.mubr.msk.f32.mxu0 %vm2488_vm6, %v8948_v22 }
 0xab3   :  { %10900 = vmatmul.mubr.msk.f32.gmra.mxu0 %vm2488_vm6, %v8949_v63  ;;  %v8933_v63 = vld [vmem:[%s13727_s12 + $0xe8] sm:$0xff] }
 0xab4   :  { %10902 = vmatprep.mubr.msk.f32.mxu0 %vm2488_vm6, %v8950_v14 }
 0xab7   :  { %10903 = vmatmul.mubr.msk.f32.gmra.mxu0 %vm2488_vm6, %v8951_v8  ;;  %v8932_v8 = vld [vmem:[%s13727_s12 + $0xe0] sm:$0xff] }
 0xafb   :  { %v13308_v18 = vpop.f32.mrf.mxu0 }
 0xafd   :  { %v13310_v3 = vpop.f32.mrf.mxu0 }
 0xaff   :  { %v13312_v0 = vpop.f32.mrf.mxu0 }
 0xb01   :  { %v13314_v10 = vpop.f32.mrf.mxu0 }
 0xb03   :  { %v13316_v43 = vpop.f32.mrf.mxu0 }
 0xb05   :  { %v13318_v45 = vpop.f32.mrf.mxu0 }
 0xb07   :  { %v13320_v33 = vpop.f32.mrf.mxu0 }
 0xb09   :  { %v13322_v36 = vpop.f32.mrf.mxu0 }
 0xb0b   :  { %v10607_v49 = vpop.f32.mrf.mxu0 }
 0xb0d   :  { %v5895_v52 = vpop.f32.mrf.mxu0 }
 0xb0e   :  { %10625 = vmatprep.mubr.msk.f32.mxu1 %vm306_vm1, %v5895_v52  ;;  %v8963_v52 = vld [vmem:[%s13727_s12 + $0x118] sm:$0xff] }
 0xb0f   :  { %v10610_v24 = vpop.f32.mrf.mxu0  ;;  %10626 = vmatmul.mubr.msk.f32.vlgmr.msra.gmra.mxu1 %vm306_vm1, %v10607_v49 }
 0xb10   :  { %10666 = vmatpush3.msra.mxu1 %v13225_v9 }
 0xb11   :  { %v5905_v20 = vpop.f32.mrf.mxu0  ;;  %10667 = vmatprep.subr.mxu1 %v8822_v50 }
 0xb12   :  { %10628 = vmatprep.mubr.msk.f32.mxu1 %vm306_vm1, %v5905_v20  ;;  %10668 = vmatpush3.msra.mxu1 %v8822_v50 }
 0xb13   :  { %v10613_v34 = vpop.f32.mrf.mxu0  ;;  %10629 = vmatmul.mubr.msk.f32.gmra.mxu1 %vm306_vm1, %v10610_v24  ;;  %10669 = vmatprep.subr.mxu1 %v8821_v53 }
 0xb14   :  { %10670 = vmatpush3.msra.mxu1 %v8821_v53 }
 0xb15   :  { %v5915_v4 = vpop.f32.mrf.mxu0  ;;  %10671 = vmatprep.subr.mxu1 %v8820_v15 }
 0xb16   :  { %10631 = vmatprep.mubr.msk.f32.mxu1 %vm306_vm1, %v5915_v4  ;;  %10672 = vmatpush3.msra.mxu1 %v8820_v15  ;;  %v8961_v4 = vld [vmem:[%s13727_s12 + $0x108] sm:$0xff] }
 0xb17   :  { %v10616_v16 = vpop.f32.mrf.mxu0  ;;  %10632 = vmatmul.mubr.msk.f32.gmra.mxu1 %vm306_vm1, %v10613_v34  ;;  %10713 = vmatprep.subr.mxu1 %v8851_v41  ;;  %v8962_v34 = vld [vmem:[%s13727_s12 + $0x110] sm:$0xff] }
 0xb19   :  { %v5925_v19 = vpop.f32.mrf.mxu0 }
 0xb1a   :  { %10634 = vmatprep.mubr.msk.f32.mxu1 %vm306_vm1, %v5925_v19  ;;  %v8960_v19 = vld [vmem:[%s13727_s12 + $0x100] sm:$0xff] }
 0xb1b   :  { %10635 = vmatmul.mubr.msk.f32.gmra.mxu1 %vm306_vm1, %v10616_v16  ;;  %v10655_v17 = vpop.f32.mrf.mxu0 }
 0xb1d   :  { %v6173_v55 = vpop.f32.mrf.mxu0 }
 0xb1e   :  { %10673 = vmatprep.mubr.msk.f32.mxu1 %vm306_vm1, %v6173_v55 }
 0xb1f   :  { %v10658_v11 = vpop.f32.mrf.mxu0  ;;  %10674 = vmatmul.mubr.msk.f32.vlgmr.msra.gmra.mxu1 %vm306_vm1, %v10655_v17 }
 0xb20   :  { %10714 = vmatpush3.msra.mxu1 %v8851_v41 }
 0xb21   :  { %v6183_v54 = vpop.f32.mrf.mxu0  ;;  %10715 = vmatprep.subr.mxu1 %v8850_v39 }
 0xb22   :  { %10676 = vmatprep.mubr.msk.f32.mxu1 %vm306_vm1, %v6183_v54  ;;  %10716 = vmatpush3.msra.mxu1 %v8850_v39 }
 0xb23   :  { %v10661_v51 = vpop.f32.mrf.mxu0  ;;  %10677 = vmatmul.mubr.msk.f32.gmra.mxu1 %vm306_vm1, %v10658_v11  ;;  %10717 = vmatprep.subr.mxu1 %v8849_v2 }
 0xb24   :  { %10718 = vmatpush3.msra.mxu1 %v8849_v2 }
 0xb25   :  { %v6193_v59 = vpop.f32.mrf.mxu0  ;;  %10719 = vmatprep.subr.mxu1 %v8848_v32 }
 0xb26   :  { %10679 = vmatprep.mubr.msk.f32.mxu1 %vm306_vm1, %v6193_v59  ;;  %10720 = vmatpush3.msra.mxu1 %v8848_v32 }
 0xb27   :  { %v10664_v58 = vpop.f32.mrf.mxu0  ;;  %10680 = vmatmul.mubr.msk.f32.gmra.mxu1 %vm306_vm1, %v10661_v51  ;;  %10761 = vmatprep.subr.mxu1 %v8879_v42 }
 0xb29   :  { %v6203_v31 = vpop.f32.mrf.mxu0 }
 0xb2a   :  { %10682 = vmatprep.mubr.msk.f32.mxu1 %vm306_vm1, %v6203_v31 }
 0xb2b   :  { %10683 = vmatmul.mubr.msk.f32.gmra.mxu1 %vm306_vm1, %v10664_v58  ;;  %v10703_v28 = vpop.f32.mrf.mxu0 }
 0xb2d   :  { %v6451_v25 = vpop.f32.mrf.mxu0 }
 0xb2e   :  { %10721 = vmatprep.mubr.msk.f32.mxu1 %vm306_vm1, %v6451_v25  ;;  %v7769_v25 = vld [vmem:[%s13730_s14 + $0x18] sm:$0xff] }
 0xb2f   :  { %v10706_v60 = vpop.f32.mrf.mxu0  ;;  %10722 = vmatmul.mubr.msk.f32.vlgmr.msra.gmra.mxu1 %vm306_vm1, %v10703_v28  ;;  %v10579_v28 = vpop.f32.mrf.mxu1  ;;  %10925 = vmatprep.subr.mxu0 %v7769_v25 }
 0xb30   :  { %10762 = vmatpush3.msra.mxu1 %v8879_v42  ;;  %10926 = vmatpush3.msra.mxu0 %v7769_v25 }
 0xb31   :  { %v6461_v57 = vpop.f32.mrf.mxu0  ;;  %10763 = vmatprep.subr.mxu1 %v8878_v48 }
 0xb32   :  { %10724 = vmatprep.mubr.msk.f32.mxu1 %vm306_vm1, %v6461_v57  ;;  %10764 = vmatpush3.msra.mxu1 %v8878_v48  ;;  %v7768_v48 = vld [vmem:[%s13730_s14 + $0x10] sm:$0xff]  ;;  %v7766_v57 = vld [vmem:[%s13730_s14] sm:$0xff] }
 0xb33   :  { %v10709_v23 = vpop.f32.mrf.mxu0  ;;  %10725 = vmatmul.mubr.msk.f32.gmra.mxu1 %vm306_vm1, %v10706_v60  ;;  %10765 = vmatprep.subr.mxu1 %v8877_v30  ;;  %v5758_v60 = vpop.f32.mrf.mxu1 }
 0xb34   :  { %10766 = vmatpush3.msra.mxu1 %v8877_v30  ;;  %10927 = vmatprep.subr.mxu0 %v7768_v48  ;;  %v7767_v30 = vld [vmem:[%s13730_s14 + $0x8] sm:$0xff] }
 0xb35   :  { %v6471_v5 = vpop.f32.mrf.mxu0  ;;  %10767 = vmatprep.subr.mxu1 %v8876_v7  ;;  %10928 = vmatpush3.msra.mxu0 %v7768_v48 }
 0xb36   :  { %10727 = vmatprep.mubr.msk.f32.mxu1 %vm306_vm1, %v6471_v5  ;;  %10768 = vmatpush3.msra.mxu1 %v8876_v7  ;;  %v10582_v7 = vpop.f32.mrf.mxu1 }
 0xb37   :  { %v10712_v27 = vpop.f32.mrf.mxu0  ;;  %10728 = vmatmul.mubr.msk.f32.gmra.mxu1 %vm306_vm1, %v10709_v23  ;;  %10809 = vmatprep.subr.mxu1 %v8907_v26 }
 0xb38   :  { %10929 = vmatprep.subr.mxu0 %v7767_v30  ;;  %v5768_v23 = vpop.f32.mrf.mxu1 }
 0xb39   :  { %v6481_v38 = vpop.f32.mrf.mxu0  ;;  %10930 = vmatpush3.msra.mxu0 %v7767_v30 }
 0xb3a   :  { %10730 = vmatprep.mubr.msk.f32.mxu1 %vm306_vm1, %v6481_v38  ;;  %10931 = vmatprep.subr.mxu0 %v7766_v57 }
 0xb3b   :  { %10731 = vmatmul.mubr.msk.f32.gmra.mxu1 %vm306_vm1, %v10712_v27  ;;  %v10751_v37 = vpop.f32.mrf.mxu0  ;;  %10932 = vmatpush3.msra.mxu0 %v7766_v57 }
 0xb3d   :  { %v6729_v44 = vpop.f32.mrf.mxu0 }
 0xb3e   :  { %10769 = vmatprep.mubr.msk.f32.mxu1 %vm306_vm1, %v6729_v44 }
 0xb3f   :  { %v10754_v9 = vpop.f32.mrf.mxu0  ;;  %10770 = vmatmul.mubr.msk.f32.vlgmr.msra.gmra.mxu1 %vm306_vm1, %v10751_v37  ;;  %v5764_v37 = vadd.f32 %v10579_v28, %v13308_v18 }
 0xb40   :  { %10810 = vmatpush3.msra.mxu1 %v8907_v26  ;;  %v10585_v26 = vpop.f32.mrf.mxu1 }
 0xb41   :  { %v6739_v6 = vpop.f32.mrf.mxu0  ;;  %10811 = vmatprep.subr.mxu1 %v8906_v13 }
 0xb42   :  { %10772 = vmatprep.mubr.msk.f32.mxu1 %vm306_vm1, %v6739_v6  ;;  %10812 = vmatpush3.msra.mxu1 %v8906_v13  ;;  %v5778_v5 = vpop.f32.mrf.mxu1  ;;  %v5759_v13 = vadd.f32 %v5758_v60, %v13310_v3  ;;  %v5774_v6 = vadd.f32 %v10582_v7, %v13312_v0 }
 0xb43   :  { %v10757_v46 = vpop.f32.mrf.mxu0  ;;  %10773 = vmatmul.mubr.msk.f32.gmra.mxu1 %vm306_vm1, %v10754_v9  ;;  %10813 = vmatprep.subr.mxu1 %v8905_v47 }
 0xb44   :  { %10814 = vmatpush3.msra.mxu1 %v8905_v47  ;;  %v10588_v27 = vpop.f32.mrf.mxu1 }
 0xb45   :  { %v6749_v21 = vpop.f32.mrf.mxu0  ;;  %10815 = vmatprep.subr.mxu1 %v8904_v40  ;;  %v5794_v3 = vadd.f32 %v10588_v27, %v13320_v33 }
 0xb46   :  { %10775 = vmatprep.mubr.msk.f32.mxu1 %vm306_vm1, %v6749_v21  ;;  %10816 = vmatpush3.msra.mxu1 %v8904_v40  ;;  %v5788_v38 = vpop.f32.mrf.mxu1 }
 0xb47   :  { %v10760_v35 = vpop.f32.mrf.mxu0  ;;  %10776 = vmatmul.mubr.msk.f32.gmra.mxu1 %vm306_vm1, %v10757_v46  ;;  %10857 = vmatprep.subr.mxu1 %v8935_v62  ;;  %v5789_v0 = vadd.f32 %v5788_v38, %v13322_v36 }
 0xb49   :  { %v6759_v29 = vpop.f32.mrf.mxu0 }
 0xb4a   :  { %10778 = vmatprep.mubr.msk.f32.mxu1 %vm306_vm1, %v6759_v29  ;;  %v5784_v29 = vadd.f32 %v10585_v26, %v13316_v43 }
 0xb4b   :  { %10779 = vmatmul.mubr.msk.f32.gmra.mxu1 %vm306_vm1, %v10760_v35  ;;  %v10799_v12 = vpop.f32.mrf.mxu0 }
 0xb4d   :  { %v7007_v1 = vpop.f32.mrf.mxu0 }
 0xb4e   :  { %10817 = vmatprep.mubr.msk.f32.mxu1 %vm306_vm1, %v7007_v1 }
 0xb4f   :  { %v10802_v22 = vpop.f32.mrf.mxu0  ;;  %10818 = vmatmul.mubr.msk.f32.vlgmr.msra.gmra.mxu1 %vm306_vm1, %v10799_v12 }
 0xb50   :  { %10858 = vmatpush3.msra.mxu1 %v8935_v62  ;;  %v5769_v62 = vadd.f32 %v5768_v23, %v13314_v10 }
 0xb51   :  { %v7017_v14 = vpop.f32.mrf.mxu0  ;;  %10859 = vmatprep.subr.mxu1 %v8934_v56 }
 0xb52   :  { %10820 = vmatprep.mubr.msk.f32.mxu1 %vm306_vm1, %v7017_v14  ;;  %10860 = vmatpush3.msra.mxu1 %v8934_v56  ;;  %v5779_v56 = vadd.f32 %v5778_v5, %v13318_v45 }
 0xb53   :  { %v10805_v49 = vpop.f32.mrf.mxu0  ;;  %10821 = vmatmul.mubr.msk.f32.gmra.mxu1 %vm306_vm1, %v10802_v22  ;;  %10861 = vmatprep.subr.mxu1 %v8933_v63 }
 0xb54   :  { %10862 = vmatpush3.msra.mxu1 %v8933_v63 }
 0xb55   :  { %v7027_v50 = vpop.f32.mrf.mxu0  ;;  %10863 = vmatprep.subr.mxu1 %v8932_v8 }
 0xb56   :  { %10823 = vmatprep.mubr.msk.f32.mxu1 %vm306_vm1, %v7027_v50  ;;  %10864 = vmatpush3.msra.mxu1 %v8932_v8 }
 0xb57   :  { %v10808_v24 = vpop.f32.mrf.mxu0  ;;  %10824 = vmatmul.mubr.msk.f32.gmra.mxu1 %vm306_vm1, %v10805_v49  ;;  %10905 = vmatprep.subr.mxu1 %v8963_v52 }
 0xb59   :  { %v7037_v53 = vpop.f32.mrf.mxu0 }
 0xb5a   :  { %10826 = vmatprep.mubr.msk.f32.mxu1 %vm306_vm1, %v7037_v53 }
 0xb5b   :  { %10827 = vmatmul.mubr.msk.f32.gmra.mxu1 %vm306_vm1, %v10808_v24  ;;  %v10847_v20 = vpop.f32.mrf.mxu0 }
 0xb5d   :  { %v7285_v15 = vpop.f32.mrf.mxu0 }
 0xb5e   :  { %10865 = vmatprep.mubr.msk.f32.mxu1 %vm306_vm1, %v7285_v15 }
 0xb5f   :  { %v10850_v41 = vpop.f32.mrf.mxu0  ;;  %10866 = vmatmul.mubr.msk.f32.vlgmr.msra.gmra.mxu1 %vm306_vm1, %v10847_v20 }
 0xb60   :  { %10906 = vmatpush3.msra.mxu1 %v8963_v52 }
 0xb61   :  { %v7295_v16 = vpop.f32.mrf.mxu0  ;;  %10907 = vmatprep.subr.mxu1 %v8962_v34 }
 0xb62   :  { %10868 = vmatprep.mubr.msk.f32.mxu1 %vm306_vm1, %v7295_v16  ;;  %10908 = vmatpush3.msra.mxu1 %v8962_v34 }
 0xb63   :  { %v10853_v17 = vpop.f32.mrf.mxu0  ;;  %10869 = vmatmul.mubr.msk.f32.gmra.mxu1 %vm306_vm1, %v10850_v41  ;;  %10909 = vmatprep.subr.mxu1 %v8961_v4 }
 0xb64   :  { %10910 = vmatpush3.msra.mxu1 %v8961_v4 }
 0xb65   :  { %v7305_v55 = vpop.f32.mrf.mxu0  ;;  %10911 = vmatprep.subr.mxu1 %v8960_v19 }
 0xb66   :  { %10871 = vmatprep.mubr.msk.f32.mxu1 %vm306_vm1, %v7305_v55  ;;  %10912 = vmatpush3.msra.mxu1 %v8960_v19 }
 0xb67   :  { %v10856_v39 = vpop.f32.mrf.mxu0  ;;  %10872 = vmatmul.mubr.msk.f32.gmra.mxu1 %vm306_vm1, %v10853_v17 }
 0xb69   :  { %v7315_v11 = vpop.f32.mrf.mxu0 }
 0xb6a   :  { %10874 = vmatprep.mubr.msk.f32.mxu1 %vm306_vm1, %v7315_v11 }
 0xb6b   :  { %10875 = vmatmul.mubr.msk.f32.gmra.mxu1 %vm306_vm1, %v10856_v39  ;;  %v10895_v2 = vpop.f32.mrf.mxu0 }
 0xb6d   :  { %v7563_v54 = vpop.f32.mrf.mxu0 }
 0xb6e   :  { %10913 = vmatprep.mubr.msk.f32.mxu1 %vm306_vm1, %v7563_v54 }
 0xb6f   :  { %v10898_v32 = vpop.f32.mrf.mxu0  ;;  %10914 = vmatmul.mubr.msk.f32.vlgmr.msra.gmra.mxu1 %vm306_vm1, %v10895_v2 }
 0xb71   :  { %v7573_v51 = vpop.f32.mrf.mxu0 }
 0xb72   :  { %10916 = vmatprep.mubr.msk.f32.mxu1 %vm306_vm1, %v7573_v51 }
 0xb73   :  { %v10901_v42 = vpop.f32.mrf.mxu0  ;;  %10917 = vmatmul.mubr.msk.f32.gmra.mxu1 %vm306_vm1, %v10898_v32 }
 0xb75   :  { %v7583_v59 = vpop.f32.mrf.mxu0 }
 0xb76   :  { %10919 = vmatprep.mubr.msk.f32.mxu1 %vm306_vm1, %v7583_v59 }
 0xb77   :  { %v10904_v58 = vpop.f32.mrf.mxu0  ;;  %10920 = vmatmul.mubr.msk.f32.gmra.mxu1 %vm306_vm1, %v10901_v42 }
 0xb79   :  { %v7593_v31 = vpop.f32.mrf.mxu0 }
 0xb7a   :  { %10922 = vmatprep.mubr.msk.f32.mxu1 %vm306_vm1, %v7593_v31 }
 0xb7b   :  { %10923 = vmatmul.mubr.msk.f32.gmra.mxu1 %vm306_vm1, %v10904_v58 }
 0xb7c   :  { %8069 = vmatprep.mubr.f32.mxu1 %v13769_v61 }
 0xbcf   :  { %v10627_v44 = vpop.f32.mrf.mxu1 }
 0xbd0   :  { %v6068_v9 = vadd.f32 %v10627_v44, %v5764_v37 }
 0xbd1   :  { %v6028_v47 = vpop.f32.mrf.mxu1 }
 0xbd2   :  { %v6067_v40 = vadd.f32 %v6028_v47, %v5759_v13 }
 0xbd3   :  { %v10630_v46 = vpop.f32.mrf.mxu1 }
 0xbd4   :  { %v6070_v21 = vadd.f32 %v10630_v46, %v5774_v6 }
 0xbd5   :  { %v6038_v35 = vpop.f32.mrf.mxu1 }
 0xbd6   :  { %v6069_v12 = vadd.f32 %v6038_v35, %v5769_v62 }
 0xbd7   :  { %v10633_v1 = vpop.f32.mrf.mxu1 }
 0xbd8   :  { %v6072_v18 = vadd.f32 %v10633_v1, %v5784_v29 }
 0xbd9   :  { %v6048_v22 = vpop.f32.mrf.mxu1 }
 0xbda   :  { %v6071_v63 = vadd.f32 %v6048_v22, %v5779_v56 }
 0xbdb   :  { %v10636_v14 = vpop.f32.mrf.mxu1 }
 0xbdc   :  { %v6074_v8 = vadd.f32 %v10636_v14, %v5794_v3 }
 0xbdd   :  { %v6058_v49 = vpop.f32.mrf.mxu1 }
 0xbde   :  { %v6073_v52 = vadd.f32 %v6058_v49, %v5789_v0 }
 0xbdf   :  { %v10675_v10 = vpop.f32.mrf.mxu1 }
 0xbe0   :  { %v6346_v50 = vadd.f32 %v10675_v10, %v6068_v9 }
 0xbe1   :  { %v6306_v24 = vpop.f32.mrf.mxu1 }
 0xbe2   :  { %v6345_v53 = vadd.f32 %v6306_v24, %v6067_v40 }
 0xbe3   :  { %v10678_v43 = vpop.f32.mrf.mxu1 }
 0xbe4   :  { %v6348_v20 = vadd.f32 %v10678_v43, %v6070_v21 }
 0xbe5   :  { %v6316_v15 = vpop.f32.mrf.mxu1 }
 0xbe6   :  { %v6347_v34 = vadd.f32 %v6316_v15, %v6069_v12 }
 0xbe7   :  { %v10681_v45 = vpop.f32.mrf.mxu1 }
 0xbe8   :  { %v6350_v41 = vadd.f32 %v10681_v45, %v6072_v18 }
 0xbe9   :  { %v6326_v4 = vpop.f32.mrf.mxu1 }
 0xbea   :  { %v6349_v16 = vadd.f32 %v6326_v4, %v6071_v63 }
 0xbeb   :  { %v10684_v33 = vpop.f32.mrf.mxu1 }
 0xbec   :  { %v6352_v19 = vadd.f32 %v10684_v33, %v6074_v8 }
 0xbed   :  { %v6336_v17 = vpop.f32.mrf.mxu1 }
 0xbee   :  { %v13471_v55 = vadd.f32 %v6336_v17, %v6073_v52 }
 0xbef   :  { %v10723_v36 = vpop.f32.mrf.mxu1 }
 0xbf0   :  { %v6624_v40 = vadd.f32 %v10723_v36, %v6346_v50  ;;  %v8972_v50 = vld [vmem:[%s13731_s13] ss:$0 sm:$0xff] }
 0xbf1   :  { %v6584_v39 = vpop.f32.mrf.mxu1 }
 0xbf2   :  { %v6623_v62 = vadd.f32 %v6584_v39, %v6345_v53 }
 0xbf3   :  { %v10726_v11 = vpop.f32.mrf.mxu1 }
 0xbf4   :  { %v6626_v29 = vadd.f32 %v10726_v11, %v6348_v20 }
 0xbf5   :  { %v6594_v2 = vpop.f32.mrf.mxu1 }
 0xbf6   :  { %v6625_v18 = vadd.f32 %v6594_v2, %v6347_v34 }
 0xbf7   :  { %v10729_v54 = vpop.f32.mrf.mxu1 }
 0xbf8   :  { %v6628_v14 = vadd.f32 %v10729_v54, %v6350_v41 }
 0xbf9   :  { %v6604_v32 = vpop.f32.mrf.mxu1 }
 0xbfa   :  { %v6627_v24 = vadd.f32 %v6604_v32, %v6349_v16 }
 0xbfb   :  { %v10732_v51 = vpop.f32.mrf.mxu1 }
 0xbfc   :  { %v6630_v34 = vadd.f32 %v10732_v51, %v6352_v19 }
 0xbfd   :  { %v6614_v42 = vpop.f32.mrf.mxu1 }
 0xbfe   :  { %v6629_v2 = vadd.f32 %v6614_v42, %v13471_v55 }
 0xbff   :  { %v10771_v59 = vpop.f32.mrf.mxu1 }
 0xc00   :  { %v6902_v21 = vadd.f32 %v10771_v59, %v6624_v40 }
 0xc01   :  { %v6862_v58 = vpop.f32.mrf.mxu1 }
 0xc02   :  { %v6901_v12 = vadd.f32 %v6862_v58, %v6623_v62 }
 0xc03   :  { %v10774_v31 = vpop.f32.mrf.mxu1 }
 0xc04   :  { %v6904_v22 = vadd.f32 %v10774_v31, %v6626_v29  ;;  %v7963_v29 = vld [vmem:[%s13732_s16 + $0x1c8] sm:$0xff] }
 0xc05   :  { %v6872_v28 = vpop.f32.mrf.mxu1  ;;  %8021 = vmatprep.subr.mxu1 %v7963_v29  ;;  %v7945_v29 = vld [vmem:[%s13732_s16 + $0x138] sm:$0xff] }
 0xc06   :  { %v6903_v8 = vadd.f32 %v6872_v28, %v6625_v18  ;;  %v7955_v18 = vld [vmem:[%s13732_s16 + $0x188] sm:$0xff] }
 0xc07   :  { %v10777_v25 = vpop.f32.mrf.mxu1 }
 0xc08   :  { %v6906_v43 = vadd.f32 %v10777_v25, %v6628_v14  ;;  %v7947_v14 = vld [vmem:[%s13732_s16 + $0x148] sm:$0xff] }
 0xc09   :  { %v6882_v48 = vpop.f32.mrf.mxu1 }
 0xc0a   :  { %v6905_v4 = vadd.f32 %v6882_v48, %v6627_v24  ;;  %v7940_v24 = vld [vmem:[%s13732_s16 + $0x110] sm:$0xff] }
 0xc0b   :  { %v10780_v60 = vpop.f32.mrf.mxu1 }
 0xc0c   :  { %v6908_v54 = vadd.f32 %v10780_v60, %v6630_v34  ;;  %v7925_v34 = vld [vmem:[%s13732_s16 + $0x98] sm:$0xff] }
 0xc0d   :  { %v6892_v30 = vpop.f32.mrf.mxu1 }
 0xc0e   :  { %v6907_v28 = vadd.f32 %v6892_v30, %v6629_v2  ;;  %v7909_v2 = vld [vmem:[%s13732_s16 + $0x18] sm:$0xff] }
 0xc0f   :  { %v10819_v57 = vpop.f32.mrf.mxu1 }
 0xc10   :  { %v7180_v1 = vadd.f32 %v10819_v57, %v6902_v21 }
 0xc11   :  { %v7140_v7 = vpop.f32.mrf.mxu1 }
 0xc12   :  { %v7179_v3 = vadd.f32 %v7140_v7, %v6901_v12  ;;  %v7965_v12 = vld [vmem:[%s13732_s16 + $0x1d8] sm:$0xff] }
 0xc13   :  { %v10822_v23 = vpop.f32.mrf.mxu1  ;;  %8092 = vmatprep.subr.mxu0 %v7965_v12  ;;  %v7942_v12 = vld [vmem:[%s13732_s16 + $0x120] sm:$0xff] }
 0xc14   :  { %v7182_v49 = vadd.f32 %v10822_v23, %v6904_v22  ;;  %v7957_v22 = vld [vmem:[%s13732_s16 + $0x198] sm:$0xff] }
 0xc15   :  { %v7150_v26 = vpop.f32.mrf.mxu1 }
 0xc16   :  { %v7181_v20 = vadd.f32 %v7150_v26, %v6903_v8  ;;  %v7946_v8 = vld [vmem:[%s13732_s16 + $0x140] sm:$0xff] }
 0xc17   :  { %v10825_v5 = vpop.f32.mrf.mxu1 }
 0xc18   :  { %v7184_v41 = vadd.f32 %v10825_v5, %v6906_v43  ;;  %v7933_v43 = vld [vmem:[%s13732_s16 + $0xd8] sm:$0xff] }
 0xc19   :  { %v7160_v27 = vpop.f32.mrf.mxu1 }
 0xc1a   :  { %v7183_v58 = vadd.f32 %v7160_v27, %v6905_v4  ;;  %v7922_v4 = vld [vmem:[%s13732_s16 + $0x80] sm:$0xff] }
 0xc1b   :  { %v10828_v38 = vpop.f32.mrf.mxu1 }
 0xc1c   :  { %v7186_v19 = vadd.f32 %v10828_v38, %v6908_v54  ;;  %v7906_v54 = vld [vmem:[%s13732_s16] sm:$0xff] }
 0xc1d   :  { %v7170_v37 = vpop.f32.mrf.mxu1 }
 0xc1e   :  { %v7185_v55 = vadd.f32 %v7170_v37, %v6907_v28 }
 0xc1f   :  { %v10867_v44 = vpop.f32.mrf.mxu1 }
 0xc20   :  { %v7458_v63 = vadd.f32 %v10867_v44, %v7180_v1  ;;  %v7962_v1 = vld [vmem:[%s13732_s16 + $0x1c0] sm:$0xff] }
 0xc21   :  { %v7418_v13 = vpop.f32.mrf.mxu1  ;;  %8022 = vmatpush1.msra.mxu1 %v7962_v1  ;;  %v7944_v1 = vld [vmem:[%s13732_s16 + $0x130] sm:$0xff] }
 0xc22   :  { %v7457_v52 = vadd.f32 %v7418_v13, %v7179_v3  ;;  %v7954_v3 = vld [vmem:[%s13732_s16 + $0x180] sm:$0xff]  ;;  %8023 = vmatprep.subr.mxu1 %v7955_v18  ;;  %v7937_v18 = vld [vmem:[%s13732_s16 + $0xf8] sm:$0xff] }
 0xc23   :  { %v10870_v9 = vpop.f32.mrf.mxu1  ;;  %8024 = vmatpush1.msra.mxu1 %v7954_v3  ;;  %v7936_v3 = vld [vmem:[%s13732_s16 + $0xf0] sm:$0xff] }
 0xc24   :  { %v7460_v15 = vadd.f32 %v10870_v9, %v7182_v49  ;;  %v7948_v49 = vld [vmem:[%s13732_s16 + $0x150] sm:$0xff]  ;;  %8025 = vmatprep.subr.mxu1 %v7947_v14  ;;  %v7929_v14 = vld [vmem:[%s13732_s16 + $0xb8] sm:$0xff] }
 0xc25   :  { %v7428_v47 = vpop.f32.mrf.mxu1  ;;  %8026 = vmatpush1.msra.mxu1 %v7946_v8  ;;  %v7928_v8 = vld [vmem:[%s13732_s16 + $0xb0] sm:$0xff] }
 0xc26   :  { %v7459_v36 = vadd.f32 %v7428_v47, %v7181_v20  ;;  %v7930_v20 = vld [vmem:[%s13732_s16 + $0xc0] sm:$0xff] }
 0xc27   :  { %v10873_v6 = vpop.f32.mrf.mxu1 }
 0xc28   :  { %v7462_v31 = vadd.f32 %v10873_v6, %v7184_v41  ;;  %v7917_v41 = vld [vmem:[%s13732_s16 + $0x58] sm:$0xff] }
 0xc29   :  { %v7438_v46 = vpop.f32.mrf.mxu1 }
 0xc2a   :  { %v7461_v51 = vadd.f32 %v7438_v46, %v7183_v58  ;;  %v7967_v58 = vld [vmem:[%s13732_s16 + $0x1e8] sm:$0xff] }
 0xc2b   :  { %v10876_v35 = vpop.f32.mrf.mxu1 }
 0xc2c   :  { %v7464_v42 = vadd.f32 %v10876_v35, %v7186_v19 }
 0xc2d   :  { %v7448_v56 = vpop.f32.mrf.mxu1 }
 0xc2e   :  { %v7463_v30 = vadd.f32 %v7448_v56, %v7185_v55  ;;  %v7964_v56 = vld [vmem:[%s13732_s16 + $0x1d0] sm:$0xff] }
 0xc2f   :  { %v10915_v0 = vpop.f32.mrf.mxu1 }
 0xc30   :  { %v7736_v10 = vadd.f32 %v10915_v0, %v7458_v63  ;;  %v7956_v63 = vld [vmem:[%s13732_s16 + $0x190] sm:$0xff]  ;;  %v7949_v0 = vld [vmem:[%s13732_s16 + $0x158] sm:$0xff] }
 0xc31   :  { %v7696_v53 = vpop.f32.mrf.mxu1 }
 0xc32   :  { %v7735_v45 = vadd.f32 %v7696_v53, %v7457_v52  ;;  %v7751_v33 = vadd.f32 %v8972_v50, %v7736_v10  ;;  %v7939_v52 = vld [vmem:[%s13732_s16 + $0x108] sm:$0xff]  ;;  %v7941_v10 = vld [vmem:[%s13732_s16 + $0x118] sm:$0xff] }
 0xc33   :  { %v10918_v17 = vpop.f32.mrf.mxu1  ;;  %v7931_v53 = vld [vmem:[%s13732_s16 + $0xc8] sm:$0xff]  ;;  %8027 = vmatprep.subr.mxu1 %v7939_v52  ;;  %v7921_v52 = vld [vmem:[%s13732_s16 + $0x78] sm:$0xff] }
 0xc34   :  { %v7750_v39 = vadd.f32 %v8972_v50, %v7735_v45  ;;  %v7738_v11 = vadd.f32 %v10918_v17, %v7460_v15  ;;  %v7759_v25 = vmax.f32 %v7751_v33, 0.0  ;;  %v7932_v15 = vld [vmem:[%s13732_s16 + $0xd0] sm:$0xff]  ;;  %v7923_v45 = vld [vmem:[%s13732_s16 + $0x88] sm:$0xff] }
 0xc35   :  { %v7706_v59 = vpop.f32.mrf.mxu1  ;;  %v7924_v33 = vld [vmem:[%s13732_s16 + $0x90] sm:$0xff]  ;;  %v7915_v17 = vld [vmem:[%s13732_s16 + $0x48] sm:$0xff] }
 0xc36   :  { %v7758_v16 = vmax.f32 %v7750_v39, 0.0  ;;  %v7737_v32 = vadd.f32 %v7706_v59, %v7459_v36  ;;  %v7753_v57 = vadd.f32 %v8972_v50, %v7738_v11  ;;  %v7914_v36 = vld [vmem:[%s13732_s16 + $0x40] sm:$0xff]  ;;  %v7916_v39 = vld [vmem:[%s13732_s16 + $0x50] sm:$0xff]  ;;  %v7907_v11 = vld [vmem:[%s13732_s16 + $0x8] sm:$0xff] }
 0xc37   :  { %v10921_v7 = vpop.f32.mrf.mxu1  ;;  %v7908_v59 = vld [vmem:[%s13732_s16 + $0x10] sm:$0xff] }
 0xc38   :  { %v7752_v48 = vadd.f32 %v8972_v50, %v7737_v32  ;;  %v7740_v23 = vadd.f32 %v10921_v7, %v7462_v31  ;;  %10933 = vmatprep.mubr.msk.f32.mxu0 %vm306_vm1, %v7758_v16  ;;  %v7761_v27 = vmax.f32 %v7753_v57, 0.0  ;;  %v7969_v31 = vld [vmem:[%s13732_s16 + $0x1f8] sm:$0xff]  ;;  %v8973_v32 = vld [vmem:[%s13733_s15] ss:$0 sm:$0xff] }
 0xc39   :  { %v7716_v26 = vpop.f32.mrf.mxu1  ;;  %10934 = vmatmul.mubr.msk.f32.vlgmr.msra.gmra.mxu0 %vm306_vm1, %v7759_v25 }
 0xc3a   :  { %v7760_v60 = vmax.f32 %v7752_v48, 0.0  ;;  %v7739_v5 = vadd.f32 %v7716_v26, %v7461_v51  ;;  %v7755_v44 = vadd.f32 %v8972_v50, %v7740_v23  ;;  %8093 = vmatpush1.msra.mxu0 %v7964_v56  ;;  %v7935_v56 = vld [vmem:[%s13732_s16 + $0xe8] sm:$0xff] }
 0xc3b   :  { %v10924_v13 = vpop.f32.mrf.mxu1  ;;  %8094 = vmatprep.subr.mxu0 %v7957_v22  ;;  %v7934_v22 = vld [vmem:[%s13732_s16 + $0xe0] sm:$0xff] }
 0xc3c   :  { %v7754_v9 = vadd.f32 %v8972_v50, %v7739_v5  ;;  %v7742_v47 = vadd.f32 %v10924_v13, %v7464_v42  ;;  %10936 = vmatprep.mubr.msk.f32.mxu0 %vm306_vm1, %v7760_v60  ;;  %v7763_v46 = vmax.f32 %v7755_v44, 0.0  ;;  %8095 = vmatpush1.msra.mxu0 %v7956_v63  ;;  %v7966_v13 = vld [vmem:[%s13732_s16 + $0x1e0] sm:$0xff]  ;;  %v7927_v63 = vld [vmem:[%s13732_s16 + $0xa8] sm:$0xff] }
 0xc3d   :  { %v7726_v38 = vpop.f32.mrf.mxu1  ;;  %10937 = vmatmul.mubr.msk.f32.gmra.mxu0 %vm306_vm1, %v7761_v27  ;;  %8096 = vmatprep.subr.mxu0 %v7949_v0  ;;  %v7926_v0 = vld [vmem:[%s13732_s16 + $0xa0] sm:$0xff] }
 0xc3e   :  { %v7762_v6 = vmax.f32 %v7754_v9, 0.0  ;;  %v7741_v40 = vadd.f32 %v7726_v38, %v7463_v30  ;;  %v7757_v62 = vadd.f32 %v8972_v50, %v7742_v47  ;;  %8097 = vmatpush1.msra.mxu0 %v7948_v49  ;;  %v7968_v30 = vld [vmem:[%s13732_s16 + $0x1f0] sm:$0xff]  ;;  %v7959_v47 = vld [vmem:[%s13732_s16 + $0x1a8] sm:$0xff]  ;;  %v7961_v38 = vld [vmem:[%s13732_s16 + $0x1b8] sm:$0xff] }
 0xc3f   :  { %8098 = vmatprep.subr.mxu0 %v7941_v10  ;;  %v7919_v49 = vld [vmem:[%s13732_s16 + $0x68] sm:$0xff]  ;;  %v7918_v10 = vld [vmem:[%s13732_s16 + $0x60] sm:$0xff] }
 0xc40   :  { %v7756_v21 = vadd.f32 %v8972_v50, %v7741_v40  ;;  %10939 = vmatprep.mubr.msk.f32.mxu0 %vm306_vm1, %v7762_v6  ;;  %v7765_v35 = vmax.f32 %v7757_v62, 0.0  ;;  %v7938_v50 = vld [vmem:[%s13732_s16 + $0x100] sm:$0xff]  ;;  %8099 = vmatpush1.msra.mxu0 %v7940_v24  ;;  %v7960_v40 = vld [vmem:[%s13732_s16 + $0x1b0] sm:$0xff]  ;;  %v7953_v62 = vld [vmem:[%s13732_s16 + $0x178] sm:$0xff] }
 0xc41   :  { %10940 = vmatmul.mubr.msk.f32.gmra.mxu0 %vm306_vm1, %v7763_v46  ;;  %8028 = vmatpush1.msra.mxu1 %v7938_v50  ;;  %v7958_v6 = vld [vmem:[%s13732_s16 + $0x1a0] sm:$0xff]  ;;  %v7951_v46 = vld [vmem:[%s13732_s16 + $0x168] sm:$0xff]  ;;  %v7920_v50 = vld [vmem:[%s13732_s16 + $0x70] sm:$0xff] }
 0xc42   :  { %v7764_v37 = vmax.f32 %v7756_v21, 0.0  ;;  %8029 = vmatprep.subr.mxu1 %v7931_v53  ;;  %8100 = vmatprep.subr.mxu0 %v7933_v43  ;;  %v7950_v21 = vld [vmem:[%s13732_s16 + $0x160] sm:$0xff]  ;;  %v7911_v24 = vld [vmem:[%s13732_s16 + $0x28] sm:$0xff]  ;;  %v7913_v53 = vld [vmem:[%s13732_s16 + $0x38] sm:$0xff] }
 0xc43   :  { %8030 = vmatpush1.msra.mxu1 %v7930_v20  ;;  %8101 = vmatpush1.msra.mxu0 %v7932_v15  ;;  %v7910_v43 = vld [vmem:[%s13732_s16 + $0x20] sm:$0xff]  ;;  %v7912_v20 = vld [vmem:[%s13732_s16 + $0x30] sm:$0xff] }
 0xc44   :  { %10942 = vmatprep.mubr.msk.f32.mxu0 %vm306_vm1, %v7764_v37  ;;  %8031 = vmatprep.subr.mxu1 %v7923_v45  ;;  %v7952_v37 = vld [vmem:[%s13732_s16 + $0x170] sm:$0xff] }
 0xc45   :  { %10943 = vmatmul.mubr.msk.f32.gmra.mxu0 %vm306_vm1, %v7765_v35  ;;  %8102 = vmatprep.subr.mxu0 %v7925_v34  ;;  %v7943_v35 = vld [vmem:[%s13732_s16 + $0x128] sm:$0xff] }
 0xc46   :  { %8140 = vmatprep.mubr.f32.mxu0 %v13769_v61  ;;  %8032 = vmatpush1.msra.mxu1 %v7922_v4 }
 0xc47   :  { %8103 = vmatpush1.msra.mxu0 %v7924_v33  ;;  %8033 = vmatprep.subr.mxu1 %v7915_v17 }
 0xc48   :  { %8104 = vmatprep.subr.mxu0 %v7917_v41  ;;  %8034 = vmatpush1.msra.mxu1 %v7914_v36 }
 0xc49   :  { %8105 = vmatpush1.msra.mxu0 %v7916_v39  ;;  %8035 = vmatprep.subr.mxu1 %v7907_v11 }
 0xc4a   :  { %8106 = vmatprep.subr.mxu0 %v7909_v2  ;;  %8036 = vmatpush1.msra.mxu1 %v7906_v54 }
 0xc4b   :  { %8107 = vmatpush1.msra.mxu0 %v7908_v59  ;;  %8163 = vmatprep.subr.mxu1 %v7967_v58 }
 0xc4c   :  { %8234 = vmatprep.subr.mxu0 %v7969_v31 }
 0xcf9   :  { %v10935_v16 = vpop.f32.mrf.mxu0 }
 0xcfa   :  { %v7873_v7 = vadd.f32 %v10935_v16, %v8973_v32 }
 0xcfb   :  { %v7867_v28 = vpop.f32.mrf.mxu0 }
 0xcfc   :  { %v7868_v25 = vadd.f32 %v8973_v32, %v7867_v28 }
 0xcfd   :  { %v10938_v57 = vpop.f32.mrf.mxu0 }
 0xcfe   :  { %7970 = vxpose.xlu1.b32.start [1/8] (short) (narrow) %v7868_v25, 8  ;;  %v7883_v23 = vadd.f32 %v10938_v57, %v8973_v32 }
 0xcff   :  { %v7877_v19 = vpop.f32.mrf.mxu0 }
 0xd00   :  { %v7878_v51 = vadd.f32 %v8973_v32, %v7877_v19 }
 0xd01   :  { %v10941_v48 = vpop.f32.mrf.mxu0 }
 0xd02   :  { %7971 = vxpose.xlu1.b32.cont [2/8] (short) (narrow) %v7873_v7, 8  ;;  %v7893_v60 = vadd.f32 %v10941_v48, %v8973_v32 }
 0xd03   :  { %v7887_v26 = vpop.f32.mrf.mxu0 }
 0xd04   :  { %v7888_v55 = vadd.f32 %v8973_v32, %v7887_v26 }
 0xd05   :  { %v10944_v42 = vpop.f32.mrf.mxu0 }
 0xd06   :  { %7972 = vxpose.xlu1.b32.cont [3/8] (short) (narrow) %v7878_v51, 8  ;;  %v7903_v44 = vadd.f32 %v10944_v42, %v8973_v32 }
 0xd07   :  { %v7897_v5 = vpop.f32.mrf.mxu0 }
 0xd08   :  { %v7898_v27 = vadd.f32 %v8973_v32, %v7897_v5 }
 0xd0a   :  { %7973 = vxpose.xlu1.b32.cont [4/8] (short) (narrow) %v7883_v23, 8 }
 0xd0e   :  { %7974 = vxpose.xlu1.b32.cont [5/8] (short) (narrow) %v7888_v55, 8 }
 0xd12   :  { %7975 = vxpose.xlu1.b32.cont [6/8] (short) (narrow) %v7893_v60, 8 }
 0xd16   :  { %7976 = vxpose.xlu1.b32.cont [7/8] (short) (narrow) %v7898_v27, 8 }
 0xd1a   :  { %7977 = vxpose.xlu1.b32.end [8/8] (short) (narrow) %v7903_v44, 8 }
 0xd7a   :  { %v13597_v9 = vpop.trf.xlu1 }
 0xd7b   :  { %8982 = vmatmul.mubr.msk.f32.vlgmr.msra.gmra.mxu1 %vm2488_vm6, %v13597_v9  ;;  %8983 = vmatmul.mubr.msk.f32.vlgmr.msra.gmra.mxu0 %vm2488_vm6, %v13597_v9 }
 0xd7c   :  { %8164 = vmatpush1.msra.mxu1 %v7966_v13  ;;  %8235 = vmatpush1.msra.mxu0 %v7968_v30 }
 0xd7d   :  { %8165 = vmatprep.subr.mxu1 %v7959_v47  ;;  %8236 = vmatprep.subr.mxu0 %v7961_v38 }
 0xd7e   :  { %8166 = vmatpush1.msra.mxu1 %v7958_v6  ;;  %8237 = vmatpush1.msra.mxu0 %v7960_v40 }
 0xd7f   :  { %8167 = vmatprep.subr.mxu1 %v7951_v46  ;;  %8238 = vmatprep.subr.mxu0 %v7953_v62 }
 0xd80   :  { %8168 = vmatpush1.msra.mxu1 %v7950_v21  ;;  %8239 = vmatpush1.msra.mxu0 %v7952_v37 }
 0xd81   :  { %8169 = vmatprep.subr.mxu1 %v7943_v35  ;;  %8240 = vmatprep.subr.mxu0 %v7945_v29 }
 0xd82   :  { %8170 = vmatpush1.msra.mxu1 %v7942_v12  ;;  %8241 = vmatpush1.msra.mxu0 %v7944_v1 }
 0xd83   :  { %8171 = vmatprep.subr.mxu1 %v7935_v56  ;;  %8242 = vmatprep.subr.mxu0 %v7937_v18 }
 0xd84   :  { %8172 = vmatpush1.msra.mxu1 %v7934_v22  ;;  %8243 = vmatpush1.msra.mxu0 %v7936_v3 }
 0xd85   :  { %8173 = vmatprep.subr.mxu1 %v7927_v63  ;;  %8244 = vmatprep.subr.mxu0 %v7929_v14 }
 0xd86   :  { %8174 = vmatpush1.msra.mxu1 %v7926_v0  ;;  %8245 = vmatpush1.msra.mxu0 %v7928_v8 }
 0xd87   :  { %8175 = vmatprep.subr.mxu1 %v7919_v49  ;;  %8246 = vmatprep.subr.mxu0 %v7921_v52 }
 0xd88   :  { %8176 = vmatpush1.msra.mxu1 %v7918_v10  ;;  %8247 = vmatpush1.msra.mxu0 %v7920_v50 }
 0xd89   :  { %8177 = vmatprep.subr.mxu1 %v7911_v24  ;;  %8248 = vmatprep.subr.mxu0 %v7913_v53 }
 0xd8a   :  { %8178 = vmatpush1.msra.mxu1 %v7910_v43  ;;  %8211 = vmatprep.mubr.f32.mxu1 %v13769_v61 }
 0xd8b   :  { %8249 = vmatpush1.msra.mxu0 %v7912_v20  ;;  %8282 = vmatprep.mubr.f32.mxu0 %v13769_v61 }
 0xd8c   :  { %8984 = vmatmul.mubr.msk.f32.vlgmr.msra.gmra.mxu1 %vm2488_vm6, %v13597_v9  ;;  %8985 = vmatmul.mubr.msk.f32.vlgmr.msra.gmra.mxu0 %vm2488_vm6, %v13597_v9 }
 0xe3b   :  { %v8071_v15 = vpop.f32.mrf.mxu1  ;;  %v8142_v45 = vpop.f32.mrf.mxu0 }
 0xe3c   :  { %8986 = vst [vmem:[%s13734_s17 + $0x40] sm:$0x1f] %v8071_v15  ;;  %8988 = vst [vmem:[%s13734_s17 + $0x50] sm:$0x1f] %v8142_v45 }
 0xe3d   :  { %v8073_v34 = vpop.f32.mrf.mxu1  ;;  %v8144_v4 = vpop.f32.mrf.mxu0 }
 0xe3e   :  { %8987 = vst [vmem:[%s13734_s17 + $0x48] sm:$0x1f] %v8073_v34  ;;  %8989 = vst [vmem:[%s13734_s17 + $0x58] sm:$0x1f] %v8144_v4 }
 0xe4c   :  { %v8213_v61 = vpop.f32.mrf.mxu1  ;;  %v8284_v33 = vpop.f32.mrf.mxu0 }
 0xe4d   :  { %8990 = vst [vmem:[%s13734_s17 + $0x60] sm:$0x1f] %v8213_v61  ;;  %8992 = vst [vmem:[%s13734_s17 + $0x70] sm:$0x1f] %v8284_v33 }
 0xe4e   :  { %v8215_v17 = vpop.f32.mrf.mxu1  ;;  %v8286_v41 = vpop.f32.mrf.mxu0 }
 0xe4f   :  { %8991 = vst [vmem:[%s13734_s17 + $0x68] sm:$0x1f] %v8215_v17  ;;  %8993 = vst [vmem:[%s13734_s17 + $0x78] sm:$0x1f] %v8286_v41 }

</bundles_post_ra>
